<compile_context>
chip_gen: v5e
topology: v5e:2x2
jax: 0.10.0
libtpu: 0.0.40
codegen_flags: <defaults>
</compile_context>

<pallas_src>
import functools

import jax
import jax.numpy as jnp
from jax.experimental import pallas as pl
from jax.experimental.pallas import tpu as pltpu

LANE = 128


def _make_conv_bn_relu_kernel(KH, KW, stride, dilation, th, W_out, cout_pad):
    taps = [(kh, kw) for kh in range(KH) for kw in range(KW)]

    def kernel(x_ref, w_ref, shift_ref, o_ref):
        # x_ref     : (H_p, W_p, Cin)        padded image for this batch element
        # w_ref     : (KH*KW, Cin, Cout_pad) BN-scale-folded conv weight (bf16)
        # shift_ref : (1, Cout_pad)          BN shift (f32)
        # o_ref     : (th, W_out, Cout_pad)  output row-slab (f32)
        row_base = pl.multiple_of(pl.program_id(1) * (th * stride), th * stride)

        acc = jnp.zeros((th * W_out, cout_pad), jnp.float32)
        for idx, (kh, kw) in enumerate(taps):
            r0 = row_base + kh * dilation
            c0 = kw * dilation
            if stride == 1:
                sl = x_ref[pl.ds(r0, th), pl.ds(c0, W_out), :]
            else:
                sl = x_ref[pl.ds(r0, th, stride), pl.ds(c0, W_out, stride), :]
            x2 = sl.reshape(th * W_out, sl.shape[-1])
            acc = acc + jnp.dot(x2, w_ref[idx],
                                preferred_element_type=jnp.float32)

        y = jnp.maximum(acc + shift_ref[...], 0.0)              # BN shift + ReLU
        o_ref[...] = y.reshape(th, W_out, cout_pad).astype(o_ref.dtype)

    return kernel


def _prepare_inputs(x_nchw, weight, gamma, beta, running_mean, running_var, *,
                    stride, padding, dilation, eps, compute_dtype,
                    target_tile_rows):
    """Shared prep for the Pallas kernel and the quantized reference."""
    N, Cin, H, W = x_nchw.shape
    Cout, Cin_w, KH, KW = weight.shape
    assert Cin_w == Cin, "groups != 1 not supported"

    H_out = (H + 2 * padding - dilation * (KH - 1) - 1) // stride + 1
    W_out = (W + 2 * padding - dilation * (KW - 1) - 1) // stride + 1

    cout_pad = ((Cout + LANE - 1) // LANE) * LANE

    # output-row tile so that th * W_out ~= target_tile_rows flattened pixels
    th = max(1, min(H_out, -(-target_tile_rows // W_out)))
    n_ht = -(-H_out // th)
    H_out_pad = n_ht * th

    # NCHW -> NHWC, zero-pad spatially (extra bottom rows so the last H-tile's
    # reads stay in-bounds), cast operands to the MXU compute dtype.
    x = jnp.transpose(x_nchw, (0, 2, 3, 1))
    H_in_needed = (H_out_pad - 1) * stride + dilation * (KH - 1) + 1
    pad_h_extra = max(0, H_in_needed - (H + 2 * padding))
    xp = jnp.pad(x, ((0, 0),
                     (padding, padding + pad_h_extra),
                     (padding, padding),
                     (0, 0))).astype(compute_dtype)

    # Fold BN(eval) scale into the conv weight; keep only the shift separate.
    scale = (gamma / jnp.sqrt(running_var + eps)).astype(jnp.float32)   # (Cout,)
    shift = (beta - running_mean * scale).astype(jnp.float32)           # (Cout,)
    w_folded = weight.astype(jnp.float32) * scale[:, None, None, None]  # (Cout,Cin,KH,KW)
    w_mat = jnp.transpose(w_folded, (2, 3, 1, 0)).reshape(KH * KW, Cin, Cout)
    w_mat = jnp.pad(w_mat, ((0, 0), (0, 0), (0, cout_pad - Cout))).astype(compute_dtype)
    shift_pad = jnp.pad(shift, (0, cout_pad - Cout)).reshape(1, cout_pad)

    geom = dict(N=N, Cin=Cin, Cout=Cout, cout_pad=cout_pad, KH=KH, KW=KW,
                H_out=H_out, W_out=W_out, H_out_pad=H_out_pad,
                th=th, n_ht=n_ht,
                H_p=xp.shape[1], W_p=xp.shape[2])
    return xp, w_mat, shift_pad, geom


def basic_conv_pallas(x_nchw, weight, gamma, beta, running_mean, running_var,
                      *, stride=1, padding=0, dilation=1, eps=1e-5,
                      compute_dtype=jnp.bfloat16, target_tile_rows=512):
    xp, w_mat, shift_pad, g = _prepare_inputs(
        x_nchw, weight, gamma, beta, running_mean, running_var,
        stride=stride, padding=padding, dilation=dilation, eps=eps,
        compute_dtype=compute_dtype, target_tile_rows=target_tile_rows)

    N, H_out, W_out = g["N"], g["H_out"], g["W_out"]
    KH, KW, Cin, Cout = g["KH"], g["KW"], g["Cin"], g["Cout"]
    th, n_ht, H_out_pad, cout_pad = g["th"], g["n_ht"], g["H_out_pad"], g["cout_pad"]
    H_p, W_p = g["H_p"], g["W_p"]

    kernel = _make_conv_bn_relu_kernel(KH, KW, stride, dilation, th, W_out,
                                       cout_pad)

    out = pl.pallas_call(
        kernel,
        out_shape=jax.ShapeDtypeStruct((N, H_out_pad, W_out, cout_pad),
                                       jnp.float32),
        grid_spec=pltpu.PrefetchScalarGridSpec(
            num_scalar_prefetch=0,
            grid=(N, n_ht),
            in_specs=[
                # full padded image per batch element (resident across H-tiles)
                pl.BlockSpec((None, H_p, W_p, Cin), lambda n, t: (n, 0, 0, 0)),
                # full BN-folded weight, resident for the whole grid
                pl.BlockSpec((KH * KW, Cin, cout_pad), lambda n, t: (0, 0, 0)),
                # BN shift
                pl.BlockSpec((1, cout_pad), lambda n, t: (0, 0)),
            ],
            out_specs=pl.BlockSpec((None, th, W_out, cout_pad),
                                   lambda n, t: (n, t, 0, 0)),
        ),
        compiler_params=pltpu.CompilerParams(
            dimension_semantics=("parallel", "parallel")),
    )(xp, w_mat, shift_pad)

    out = out[:, :H_out, :, :Cout]
    # TODO(synk): skip this transpose (return NHWC) when the consumer allows it.
    return jnp.transpose(out, (0, 3, 1, 2))                     # back to NCHW


# ---------------------------------------------------------------------------
# References
# ---------------------------------------------------------------------------
def _reference_quantized(x_nchw, weight, gamma, beta, mean, var, *, stride,
                         padding, dilation, eps, compute_dtype=jnp.bfloat16,
                         target_tile_rows=512):
    """Plain-JAX recomputation using the exact bf16-rounded operands the
    kernel consumes (validates the kernel implementation itself)."""
    xp, w_mat, shift_pad, g = _prepare_inputs(
        x_nchw, weight, gamma, beta, mean, var,
        stride=stride, padding=padding, dilation=dilation, eps=eps,
        compute_dtype=compute_dtype, target_tile_rows=target_tile_rows)
    xf = xp.astype(jnp.float32)
    wf = w_mat.astype(jnp.float32)
    N, H_out, W_out = g["N"], g["H_out"], g["W_out"]
    KH, KW, Cout = g["KH"], g["KW"], g["Cout"]
    acc = jnp.zeros((N, H_out, W_out, wf.shape[-1]), jnp.float32)
    for kh in range(KH):
        for kw in range(KW):
            sl = xf[:, kh * dilation: kh * dilation + stride * (H_out - 1) + 1: stride,
                       kw * dilation: kw * dilation + stride * (W_out - 1) + 1: stride, :]
            acc = acc + jnp.einsum("nhwc,co->nhwo", sl, wf[kh * KW + kw])
    y = jnp.maximum(acc + shift_pad.reshape(1, 1, 1, -1), 0.0)[..., :Cout]
    return jnp.transpose(y, (0, 3, 1, 2))


def _reference_f32(x_nchw, weight, gamma, beta, mean, var, *, stride, padding,
                   dilation, eps):
    """Exact f32 BasicConv (eval-mode BN) semantics."""
    y = jax.lax.conv_general_dilated(
        x_nchw.astype(jnp.float32), weight.astype(jnp.float32),
        window_strides=(stride, stride),
        padding=[(padding, padding), (padding, padding)],
        rhs_dilation=(dilation, dilation),
        dimension_numbers=("NCHW", "OIHW", "NCHW"),
    )
    scale = gamma / jnp.sqrt(var + eps)
    shift = beta - mean * scale
    y = y * scale[None, :, None, None] + shift[None, :, None, None]
    return jnp.maximum(y, 0.0)


if __name__ == "__main__":
    # BasicConv(in_planes=4, out_planes=8, kernel_size=3, stride=1, padding=1,
    #           relu=True, bn=True, bias=False)
    N, Cin, H, W = 2, 4, 16, 16
    Cout, KH, KW = 8, 3, 3
    stride, padding, dilation, eps = 1, 1, 1, 1e-5

    key = jax.random.PRNGKey(0)
    kx, kw_, kg, kb, km, kv = jax.random.split(key, 6)

    x = jax.random.normal(kx, (N, Cin, H, W), dtype=jnp.float32)
    weight = jax.random.normal(kw_, (Cout, Cin, KH, KW), dtype=jnp.float32) * 0.1
    gamma = 1.0 + 0.1 * jax.random.normal(kg, (Cout,), dtype=jnp.float32)
    beta = 0.1 * jax.random.normal(kb, (Cout,), dtype=jnp.float32)
    running_mean = 0.1 * jax.random.normal(km, (Cout,), dtype=jnp.float32)
    running_var = jax.random.uniform(kv, (Cout,), dtype=jnp.float32,
                                     minval=0.5, maxval=1.5)

    fn = jax.jit(functools.partial(
        basic_conv_pallas,
        stride=stride, padding=padding, dilation=dilation, eps=eps))
    out = jax.block_until_ready(fn(x, weight, gamma, beta, running_mean,
                                   running_var))
    assert out.shape == (N, Cout, H, W), out.shape

    # Strict check vs a plain-JAX recomputation on the *same* bf16-rounded
    # operands (validates the Pallas kernel math / tiling exactly).
    ref_q = _reference_quantized(x, weight, gamma, beta, running_mean,
                                 running_var, stride=stride, padding=padding,
                                 dilation=dilation, eps=eps)
    assert jnp.allclose(out, ref_q, atol=2e-3, rtol=2e-3), float(
        jnp.max(jnp.abs(out - ref_q)))

    # Looser check vs exact f32 module math (difference = bf16 operand rounding).
    ref = _reference_f32(x, weight, gamma, beta, running_mean, running_var,
                         stride=stride, padding=padding, dilation=dilation,
                         eps=eps)
    assert jnp.allclose(out, ref, atol=3e-2, rtol=3e-2), float(
        jnp.max(jnp.abs(out - ref)))

    print("KERNEL_OK")
</pallas_src>

<mosaic_0001>
module attributes {stable_mosaic.version = 11 : i64} {
  func.func @kernel(%arg0: i32, %arg1: i32, %arg2: memref<1x18x18x4xbf16, #tpu.memory_space<vmem>>, %arg3: memref<9x4x128xbf16, #tpu.memory_space<vmem>>, %arg4: memref<1x128xf32, #tpu.memory_space<vmem>>, %arg5: memref<1x16x16x128xf32, #tpu.memory_space<vmem>>) attributes {dimension_semantics = [#tpu.dimension_semantics<parallel>, #tpu.dimension_semantics<parallel>], iteration_bounds = array<i64: 2, 1>, scalar_prefetch = 0 : i64, scratch_operands = 0 : i64, tpu.core_type = #tpu.core_type<tc>, window_params = [{transform_indices = @transform_0, window_bounds = array<i64: 1, 18, 18, 4>}, {pipeline_mode = #tpu.pipeline_mode<synchronous>, transform_indices = @transform_1, window_bounds = array<i64: 9, 4, 128>}, {pipeline_mode = #tpu.pipeline_mode<synchronous>, transform_indices = @transform_2, window_bounds = array<i64: 1, 128>}, {transform_indices = @transform_3, window_bounds = array<i64: 1, 16, 16, 128>}]} {
    %c16_i32 = arith.constant 16 : i32
    %0 = arith.muli %arg1, %c16_i32 : i32
    %1 = tpu.assume_multiple %0, 16 : i32
    %cst = arith.constant 0.000000e+00 : f32
    %2 = vector.broadcast %cst : f32 to vector<256x128xf32>
    %c0_i32 = arith.constant 0 : i32
    %3 = arith.addi %1, %c0_i32 : i32
    %c0 = arith.constant 0 : index
    %4 = arith.index_cast %3 : i32 to index
    %c0_0 = arith.constant 0 : index
    %c0_1 = arith.constant 0 : index
    %5 = vector.load %arg2[%c0, %4, %c0_0, %c0_1] : memref<1x18x18x4xbf16, #tpu.memory_space<vmem>>, vector<1x16x16x4xbf16>
    %6 = vector.shape_cast %5 : vector<1x16x16x4xbf16> to vector<16x16x4xbf16>
    %7 = vector.shape_cast %6 : vector<16x16x4xbf16> to vector<256x4xbf16>
    %c0_2 = arith.constant 0 : index
    %c0_3 = arith.constant 0 : index
    %c0_4 = arith.constant 0 : index
    %8 = vector.load %arg3[%c0_2, %c0_3, %c0_4] : memref<9x4x128xbf16, #tpu.memory_space<vmem>>, vector<1x4x128xbf16>
    %9 = vector.shape_cast %8 : vector<1x4x128xbf16> to vector<4x128xbf16>
    %cst_5 = arith.constant dense<0.000000e+00> : vector<256x128xf32>
    %10 = tpu.matmul %7, %9, %cst_5 {dimension_numbers = #tpu.dot_dimension_numbers<[1], [0], [0], [1], [0, 0, 1, 1], [], []>} : vector<256x4xbf16>, vector<4x128xbf16>, vector<256x128xf32> -> vector<256x128xf32>
    %11 = arith.addf %2, %10 : vector<256x128xf32>
    %c0_i32_6 = arith.constant 0 : i32
    %12 = arith.addi %1, %c0_i32_6 : i32
    %c0_7 = arith.constant 0 : index
    %13 = arith.index_cast %12 : i32 to index
    %c1 = arith.constant 1 : index
    %c0_8 = arith.constant 0 : index
    %14 = vector.load %arg2[%c0_7, %13, %c1, %c0_8] : memref<1x18x18x4xbf16, #tpu.memory_space<vmem>>, vector<1x16x16x4xbf16>
    %15 = vector.shape_cast %14 : vector<1x16x16x4xbf16> to vector<16x16x4xbf16>
    %16 = vector.shape_cast %15 : vector<16x16x4xbf16> to vector<256x4xbf16>
    %c1_9 = arith.constant 1 : index
    %c0_10 = arith.constant 0 : index
    %c0_11 = arith.constant 0 : index
    %17 = vector.load %arg3[%c1_9, %c0_10, %c0_11] : memref<9x4x128xbf16, #tpu.memory_space<vmem>>, vector<1x4x128xbf16>
    %18 = vector.shape_cast %17 : vector<1x4x128xbf16> to vector<4x128xbf16>
    %cst_12 = arith.constant dense<0.000000e+00> : vector<256x128xf32>
    %19 = tpu.matmul %16, %18, %cst_12 {dimension_numbers = #tpu.dot_dimension_numbers<[1], [0], [0], [1], [0, 0, 1, 1], [], []>} : vector<256x4xbf16>, vector<4x128xbf16>, vector<256x128xf32> -> vector<256x128xf32>
    %20 = arith.addf %11, %19 : vector<256x128xf32>
    %c0_i32_13 = arith.constant 0 : i32
    %21 = arith.addi %1, %c0_i32_13 : i32
    %c0_14 = arith.constant 0 : index
    %22 = arith.index_cast %21 : i32 to index
    %c2 = arith.constant 2 : index
    %c0_15 = arith.constant 0 : index
    %23 = vector.load %arg2[%c0_14, %22, %c2, %c0_15] : memref<1x18x18x4xbf16, #tpu.memory_space<vmem>>, vector<1x16x16x4xbf16>
    %24 = vector.shape_cast %23 : vector<1x16x16x4xbf16> to vector<16x16x4xbf16>
    %25 = vector.shape_cast %24 : vector<16x16x4xbf16> to vector<256x4xbf16>
    %c2_16 = arith.constant 2 : index
    %c0_17 = arith.constant 0 : index
    %c0_18 = arith.constant 0 : index
    %26 = vector.load %arg3[%c2_16, %c0_17, %c0_18] : memref<9x4x128xbf16, #tpu.memory_space<vmem>>, vector<1x4x128xbf16>
    %27 = vector.shape_cast %26 : vector<1x4x128xbf16> to vector<4x128xbf16>
    %cst_19 = arith.constant dense<0.000000e+00> : vector<256x128xf32>
    %28 = tpu.matmul %25, %27, %cst_19 {dimension_numbers = #tpu.dot_dimension_numbers<[1], [0], [0], [1], [0, 0, 1, 1], [], []>} : vector<256x4xbf16>, vector<4x128xbf16>, vector<256x128xf32> -> vector<256x128xf32>
    %29 = arith.addf %20, %28 : vector<256x128xf32>
    %c1_i32 = arith.constant 1 : i32
    %30 = arith.addi %1, %c1_i32 : i32
    %c0_20 = arith.constant 0 : index
    %31 = arith.index_cast %30 : i32 to index
    %c0_21 = arith.constant 0 : index
    %c0_22 = arith.constant 0 : index
    %32 = vector.load %arg2[%c0_20, %31, %c0_21, %c0_22] : memref<1x18x18x4xbf16, #tpu.memory_space<vmem>>, vector<1x16x16x4xbf16>
    %33 = vector.shape_cast %32 : vector<1x16x16x4xbf16> to vector<16x16x4xbf16>
    %34 = vector.shape_cast %33 : vector<16x16x4xbf16> to vector<256x4xbf16>
    %c3 = arith.constant 3 : index
    %c0_23 = arith.constant 0 : index
    %c0_24 = arith.constant 0 : index
    %35 = vector.load %arg3[%c3, %c0_23, %c0_24] : memref<9x4x128xbf16, #tpu.memory_space<vmem>>, vector<1x4x128xbf16>
    %36 = vector.shape_cast %35 : vector<1x4x128xbf16> to vector<4x128xbf16>
    %cst_25 = arith.constant dense<0.000000e+00> : vector<256x128xf32>
    %37 = tpu.matmul %34, %36, %cst_25 {dimension_numbers = #tpu.dot_dimension_numbers<[1], [0], [0], [1], [0, 0, 1, 1], [], []>} : vector<256x4xbf16>, vector<4x128xbf16>, vector<256x128xf32> -> vector<256x128xf32>
    %38 = arith.addf %29, %37 : vector<256x128xf32>
    %c1_i32_26 = arith.constant 1 : i32
    %39 = arith.addi %1, %c1_i32_26 : i32
    %c0_27 = arith.constant 0 : index
    %40 = arith.index_cast %39 : i32 to index
    %c1_28 = arith.constant 1 : index
    %c0_29 = arith.constant 0 : index
    %41 = vector.load %arg2[%c0_27, %40, %c1_28, %c0_29] : memref<1x18x18x4xbf16, #tpu.memory_space<vmem>>, vector<1x16x16x4xbf16>
    %42 = vector.shape_cast %41 : vector<1x16x16x4xbf16> to vector<16x16x4xbf16>
    %43 = vector.shape_cast %42 : vector<16x16x4xbf16> to vector<256x4xbf16>
    %c4 = arith.constant 4 : index
    %c0_30 = arith.constant 0 : index
    %c0_31 = arith.constant 0 : index
    %44 = vector.load %arg3[%c4, %c0_30, %c0_31] : memref<9x4x128xbf16, #tpu.memory_space<vmem>>, vector<1x4x128xbf16>
    %45 = vector.shape_cast %44 : vector<1x4x128xbf16> to vector<4x128xbf16>
    %cst_32 = arith.constant dense<0.000000e+00> : vector<256x128xf32>
    %46 = tpu.matmul %43, %45, %cst_32 {dimension_numbers = #tpu.dot_dimension_numbers<[1], [0], [0], [1], [0, 0, 1, 1], [], []>} : vector<256x4xbf16>, vector<4x128xbf16>, vector<256x128xf32> -> vector<256x128xf32>
    %47 = arith.addf %38, %46 : vector<256x128xf32>
    %c1_i32_33 = arith.constant 1 : i32
    %48 = arith.addi %1, %c1_i32_33 : i32
    %c0_34 = arith.constant 0 : index
    %49 = arith.index_cast %48 : i32 to index
    %c2_35 = arith.constant 2 : index
    %c0_36 = arith.constant 0 : index
    %50 = vector.load %arg2[%c0_34, %49, %c2_35, %c0_36] : memref<1x18x18x4xbf16, #tpu.memory_space<vmem>>, vector<1x16x16x4xbf16>
    %51 = vector.shape_cast %50 : vector<1x16x16x4xbf16> to vector<16x16x4xbf16>
    %52 = vector.shape_cast %51 : vector<16x16x4xbf16> to vector<256x4xbf16>
    %c5 = arith.constant 5 : index
    %c0_37 = arith.constant 0 : index
    %c0_38 = arith.constant 0 : index
    %53 = vector.load %arg3[%c5, %c0_37, %c0_38] : memref<9x4x128xbf16, #tpu.memory_space<vmem>>, vector<1x4x128xbf16>
    %54 = vector.shape_cast %53 : vector<1x4x128xbf16> to vector<4x128xbf16>
    %cst_39 = arith.constant dense<0.000000e+00> : vector<256x128xf32>
    %55 = tpu.matmul %52, %54, %cst_39 {dimension_numbers = #tpu.dot_dimension_numbers<[1], [0], [0], [1], [0, 0, 1, 1], [], []>} : vector<256x4xbf16>, vector<4x128xbf16>, vector<256x128xf32> -> vector<256x128xf32>
    %56 = arith.addf %47, %55 : vector<256x128xf32>
    %c2_i32 = arith.constant 2 : i32
    %57 = arith.addi %1, %c2_i32 : i32
    %c0_40 = arith.constant 0 : index
    %58 = arith.index_cast %57 : i32 to index
    %c0_41 = arith.constant 0 : index
    %c0_42 = arith.constant 0 : index
    %59 = vector.load %arg2[%c0_40, %58, %c0_41, %c0_42] : memref<1x18x18x4xbf16, #tpu.memory_space<vmem>>, vector<1x16x16x4xbf16>
    %60 = vector.shape_cast %59 : vector<1x16x16x4xbf16> to vector<16x16x4xbf16>
    %61 = vector.shape_cast %60 : vector<16x16x4xbf16> to vector<256x4xbf16>
    %c6 = arith.constant 6 : index
    %c0_43 = arith.constant 0 : index
    %c0_44 = arith.constant 0 : index
    %62 = vector.load %arg3[%c6, %c0_43, %c0_44] : memref<9x4x128xbf16, #tpu.memory_space<vmem>>, vector<1x4x128xbf16>
    %63 = vector.shape_cast %62 : vector<1x4x128xbf16> to vector<4x128xbf16>
    %cst_45 = arith.constant dense<0.000000e+00> : vector<256x128xf32>
    %64 = tpu.matmul %61, %63, %cst_45 {dimension_numbers = #tpu.dot_dimension_numbers<[1], [0], [0], [1], [0, 0, 1, 1], [], []>} : vector<256x4xbf16>, vector<4x128xbf16>, vector<256x128xf32> -> vector<256x128xf32>
    %65 = arith.addf %56, %64 : vector<256x128xf32>
    %c2_i32_46 = arith.constant 2 : i32
    %66 = arith.addi %1, %c2_i32_46 : i32
    %c0_47 = arith.constant 0 : index
    %67 = arith.index_cast %66 : i32 to index
    %c1_48 = arith.constant 1 : index
    %c0_49 = arith.constant 0 : index
    %68 = vector.load %arg2[%c0_47, %67, %c1_48, %c0_49] : memref<1x18x18x4xbf16, #tpu.memory_space<vmem>>, vector<1x16x16x4xbf16>
    %69 = vector.shape_cast %68 : vector<1x16x16x4xbf16> to vector<16x16x4xbf16>
    %70 = vector.shape_cast %69 : vector<16x16x4xbf16> to vector<256x4xbf16>
    %c7 = arith.constant 7 : index
    %c0_50 = arith.constant 0 : index
    %c0_51 = arith.constant 0 : index
    %71 = vector.load %arg3[%c7, %c0_50, %c0_51] : memref<9x4x128xbf16, #tpu.memory_space<vmem>>, vector<1x4x128xbf16>
    %72 = vector.shape_cast %71 : vector<1x4x128xbf16> to vector<4x128xbf16>
    %cst_52 = arith.constant dense<0.000000e+00> : vector<256x128xf32>
    %73 = tpu.matmul %70, %72, %cst_52 {dimension_numbers = #tpu.dot_dimension_numbers<[1], [0], [0], [1], [0, 0, 1, 1], [], []>} : vector<256x4xbf16>, vector<4x128xbf16>, vector<256x128xf32> -> vector<256x128xf32>
    %74 = arith.addf %65, %73 : vector<256x128xf32>
    %c2_i32_53 = arith.constant 2 : i32
    %75 = arith.addi %1, %c2_i32_53 : i32
    %c0_54 = arith.constant 0 : index
    %76 = arith.index_cast %75 : i32 to index
    %c2_55 = arith.constant 2 : index
    %c0_56 = arith.constant 0 : index
    %77 = vector.load %arg2[%c0_54, %76, %c2_55, %c0_56] : memref<1x18x18x4xbf16, #tpu.memory_space<vmem>>, vector<1x16x16x4xbf16>
    %78 = vector.shape_cast %77 : vector<1x16x16x4xbf16> to vector<16x16x4xbf16>
    %79 = vector.shape_cast %78 : vector<16x16x4xbf16> to vector<256x4xbf16>
    %c8 = arith.constant 8 : index
    %c0_57 = arith.constant 0 : index
    %c0_58 = arith.constant 0 : index
    %80 = vector.load %arg3[%c8, %c0_57, %c0_58] : memref<9x4x128xbf16, #tpu.memory_space<vmem>>, vector<1x4x128xbf16>
    %81 = vector.shape_cast %80 : vector<1x4x128xbf16> to vector<4x128xbf16>
    %cst_59 = arith.constant dense<0.000000e+00> : vector<256x128xf32>
    %82 = tpu.matmul %79, %81, %cst_59 {dimension_numbers = #tpu.dot_dimension_numbers<[1], [0], [0], [1], [0, 0, 1, 1], [], []>} : vector<256x4xbf16>, vector<4x128xbf16>, vector<256x128xf32> -> vector<256x128xf32>
    %83 = arith.addf %74, %82 : vector<256x128xf32>
    %c0_60 = arith.constant 0 : index
    %c0_61 = arith.constant 0 : index
    %84 = vector.load %arg4[%c0_60, %c0_61] : memref<1x128xf32, #tpu.memory_space<vmem>>, vector<1x128xf32>
    %85 = vector.broadcast %84 : vector<1x128xf32> to vector<256x128xf32>
    %86 = arith.addf %83, %85 : vector<256x128xf32>
    %cst_62 = arith.constant 0.000000e+00 : f32
    %87 = vector.broadcast %cst_62 : f32 to vector<256x128xf32>
    %88 = arith.maximumf %86, %87 : vector<256x128xf32>
    %89 = vector.shape_cast %88 : vector<256x128xf32> to vector<16x16x128xf32>
    %c0_63 = arith.constant 0 : index
    %c0_64 = arith.constant 0 : index
    %c0_65 = arith.constant 0 : index
    %c0_66 = arith.constant 0 : index
    %90 = vector.load %arg5[%c0_63, %c0_64, %c0_65, %c0_66] : memref<1x16x16x128xf32, #tpu.memory_space<vmem>>, vector<1x16x16x128xf32>
    %91 = vector.shape_cast %90 : vector<1x16x16x128xf32> to vector<16x16x128xf32>
    %92 = vector.shape_cast %89 : vector<16x16x128xf32> to vector<1x16x16x128xf32>
    tpu.vector_store %arg5[%c0_63, %c0_64, %c0_65, %c0_66], %92 {strides = array<i32>} : memref<1x16x16x128xf32, #tpu.memory_space<vmem>>, vector<1x16x16x128xf32>,
    return
  }
  func.func @transform_0(%arg0: i32, %arg1: i32) -> (i32, i32, i32, i32) {
    %c0_i32 = arith.constant 0 : i32
    %c0_i32_0 = arith.constant 0 : i32
    %c0_i32_1 = arith.constant 0 : i32
    %c0_i32_2 = arith.constant 0 : i32
    return %arg0, %c0_i32, %c0_i32_0, %c0_i32_1 : i32, i32, i32, i32
  }
  func.func @transform_1(%arg0: i32, %arg1: i32) -> (i32, i32, i32) {
    %c0_i32 = arith.constant 0 : i32
    %c0_i32_0 = arith.constant 0 : i32
    %c0_i32_1 = arith.constant 0 : i32
    %c0_i32_2 = arith.constant 0 : i32
    return %c0_i32, %c0_i32_0, %c0_i32_1 : i32, i32, i32
  }
  func.func @transform_2(%arg0: i32, %arg1: i32) -> (i32, i32) {
    %c0_i32 = arith.constant 0 : i32
    %c0_i32_0 = arith.constant 0 : i32
    %c0_i32_1 = arith.constant 0 : i32
    return %c0_i32, %c0_i32_0 : i32, i32
  }
  func.func @transform_3(%arg0: i32, %arg1: i32) -> (i32, i32, i32, i32) {
    %c0_i32 = arith.constant 0 : i32
    %c0_i32_0 = arith.constant 0 : i32
    %c0_i32_1 = arith.constant 0 : i32
    return %arg0, %arg1, %c0_i32, %c0_i32_0 : i32, i32, i32, i32
  }
}

</mosaic_0001>

<bundles_post_ra>
// kernel: basic_conv_pallas.1
= control target key start
LH: loop header
LB: loop body
LE: loop exit
PB: predicated region body
PF: predicated region fallthrough
CT: control target
= control target key end

     0   :  { %s5082_s12 = smov 0   ;;  %s5084_s13 = smov 0   ;;  %s6499_s0 = inlined_call_operand.vmem [shape: bf16[2,18,18,4], index: 0, kind: input, shape index: {}]   ;;  %s6500_s1 = inlined_call_operand.vmem [shape: bf16[9,4,128], index: 1, kind: input, shape index: {}]   ;;  %s6501_s2 = inlined_call_operand.vmem [shape: f32[1,128], index: 2, kind: input, shape index: {}]   ;;  %s6502_s3 = inlined_call_operand.vmem [shape: f32[2,16,16,128], index: 3, kind: output, shape index: {}]  }
   0x1   :  { %s5086_s14 = smov 0  }
   0x2 LB: > { %s25_s15 = sadd.s32 1, %s5056_s13  ;;  %p4319_p0 = scmp.ge.s32.totalorder %s5060_s14, 1  ;;  %s5060_s14 = sphi %s5086_s14, %s13_s14   ;;  %s5056_s13 = sphi %s5084_s13, %s6514_s13   ;;  %s5052_s12 = sphi %s5082_s12, %s6513_s12  }
   0x3   : > { %p27_p1 = scmp.ge.s32.totalorder %s25_s15, 2  ;;  %p151_p2 = scmp.lt.s32.totalorder %s5060_s14, 3 }
   0x5   : > { %s6516_s15 = smov (%p27_p1, %s25_s15), 0  ;;  %p152_p3 = pnand %p4319_p0, %p151_p2 }
   0x7   : > { %155 = sbr.rel (%p152_p3) target bundleno = 759 (0x2f7), region = 32 }
   0xc   : > { %v4323_v0 = vld [vmem:[%s6500_s1 + $0x2] sm:$0x3]  ;;  %vm736_vm0 = vcmask 1041408   ;;  %p180_p4 = scmp.lt.s32.totalorder %s5052_s12, 1  ;;  %v4436_v2 = vld [vmem:[%s6500_s1 + $0x4] sm:$0x3] }
   0xd   : > { %v738_v1 = vsel %vm736_vm0, %v4323_v0, 0  ;;  %v1311_v3 = vsel %vm736_vm0, %v4436_v2, 0  ;;  %v4485_v4 = vld [vmem:[%s6500_s1 + $0x6] sm:$0x3]  ;;  %v233_v5 = vld [vmem:[%s6500_s1] sm:$0x3] }
   0xe   : > { %4958 = vmatpush.bf16.msra.mxu1 %v738_v1  ;;  %4959 = vmatpush.bf16.msra.mxu2 %v738_v1  ;;  %s6518_s12 = smov (!%p180_p4, %s5052_s12), 1  ;;  %v4614_v6 = vld [vmem:[%s6500_s1 + $0x8] sm:$0x3]  ;;  %v1601_v7 = vsel %vm736_vm0, %v4485_v4, 0  ;;  %v958_v8 = vsel %vm736_vm0, %v233_v5, 0  ;;  %vm687_vm4 = vcmask 31744  }
   0xf   : > { %4960 = vmatpush.bf16.msra.mxu3 %v738_v1  ;;  %747 = vmatpush.bf16.msra.mxu0 %v738_v1  ;;  %s4961_s26 = smul.u32 216, %s6518_s12  ;;  %v2255_v9 = vsel %vm736_vm0, %v4614_v6, 0  ;;  %vm250_vm1 = vsmask.f32 3328  ;;  %vm251_vm2 = vsmask.f32 7440 }
  0x10   : > { %vm5138_vm3 = vmor %vm250_vm1, %vm251_vm2  ;;  %vm1097_vm5 = vcmask 1042432   ;;  %vm1098_vm6 = vcmask 1046532   ;;  %s4909_s17 = sshll.u32 %s6518_s12, 8 }
  0x11   : > { %s5126_s29 = scalar_lea.vmem %s6499_s0, %s4961_s26  ;;  %vm5312_vm7 = vmor %vm1097_vm5, %vm1098_vm6  ;;  %s6188_s19 = scalar_lea.vmem %s6502_s3, %s4909_s17 }
  0x12   : > { %1320 = vmatpush.bf16.msrb.mxu2 %v1311_v3  ;;  %967 = vmatpush.bf16.msrb.mxu1 %v958_v8  ;;  %v209_v10 = vld [vmem:[%s5126_s29 + $0x30] sm:$0xf]  ;;  %v210_v11 = vld [vmem:[%s5126_s29 + $0x34] sm:$0xf]  ;;  %v238_v12 = vld [vmem:[%s5126_s29 + $0x38] sm:$0x1] }
  0x13   : > { %1610 = vmatpush.bf16.msrb.mxu3 %v1601_v7  ;;  %2264 = vmatpush.bf16.msrb.mxu0 %v2255_v9  ;;  %v350_v13 = vshrl.u32 %v209_v10, 16  ;;  %v353_v14 = vshll.u32 %v209_v10, 16  ;;  %v359_v15 = vshll.u32 %v210_v11, 16  ;;  %v363_v16 = vshrl.u32 %v210_v11, 16  ;;  %v217_v17 = vld [vmem:[%s5126_s29 + $0x60] sm:$0xf] }
  0x14   : > { %v369_v18 = vshll.u32 %v238_v12, 16  ;;  %v218_v19 = vld [vmem:[%s5126_s29 + $0x64] sm:$0xf]  ;;  %v242_v20 = vld [vmem:[%s5126_s29 + $0x68] sm:$0x1]  ;;  %v446_v21 = vshrl.u32 %v217_v17, 16 }
  0x15   : > { %v352_v22 = vrot.slane %v350_v13, 4  ;;  %v355_v23 = vrot.slane %v353_v14, 5  ;;  %v361_v24 = vrot.slane %v359_v15, 5  ;;  %v365_v25 = vrot.slane %v363_v16, 4  ;;  %v225_v26 = vld [vmem:[%s5126_s29 + $0x90] sm:$0xf] }
  0x16   : > { %v371_v27 = vrot.slane %v369_v18, 5  ;;  %v448_v28 = vrot.slane %v446_v21, 4  ;;  %v449_v29 = vshll.u32 %v217_v17, 16  ;;  %v455_v30 = vshll.u32 %v218_v19, 16  ;;  %v226_v35 = vld [vmem:[%s5126_s29 + $0x94] sm:$0xf] }
  0x17   : > { %v356_v31 = vor.u32 %v355_v23, %v352_v22  ;;  %v366_v32 = vor.u32 %v365_v25, %v361_v24  ;;  %v459_v33 = vshrl.u32 %v218_v19, 16  ;;  %v465_v34 = vshll.u32 %v242_v20, 16  ;;  %v246_v45 = vld [vmem:[%s5126_s29 + $0x98] sm:$0x1]  ;;  %v201_v61 = vld [vmem:[%s5126_s29] sm:$0xf] }
  0x18   : > { %v451_v37 = vrot.slane %v449_v29, 5  ;;  %v457_v38 = vrot.slane %v455_v30, 5  ;;  %v542_v39 = vshrl.u32 %v225_v26, 16  ;;  %v545_v47 = vshll.u32 %v225_v26, 16  ;;  %v5151_v1 = vld [vmem:[%s5126_s29 + $0x4] sm:$0xf] }
  0x19   : > { %v357_v40 = vrot.slane %v356_v31, 4  ;;  %v367_v41 = vrot.slane %v366_v32, 4  ;;  %v461_v42 = vrot.slane %v459_v33, 4  ;;  %v467_v43 = vrot.slane %v465_v34, 5  ;;  %v5154_v2 = vld [vmem:[%s5126_s29 + $0x8] sm:$0x1] }
  0x1a   : > { %v452_v44 = vor.u32 %v451_v37, %v448_v28  ;;  %v544_v46 = vrot.slane %v542_v39, 4  ;;  %v551_v48 = vshll.u32 %v226_v35, 16  ;;  %v555_v52 = vshrl.u32 %v226_v35, 16  ;;  %v211_v19 = vld [vmem:[%s5126_s29 + $0x3c] sm:$0xf] }
  0x1b   : > { %v362_v49 = vsel %vm5138_vm3, %v357_v40, %v361_v24  ;;  %v372_v50 = vsel %vm5138_vm3, %v367_v41, %v371_v27  ;;  %v462_v51 = vor.u32 %v461_v42, %v457_v38  ;;  %v547_v56 = vrot.slane %v545_v47, 5  ;;  %v5166_v20 = vld [vmem:[%s5126_s29 + $0x40] sm:$0xf]  ;;  %v5171_v25 = vld [vmem:[%s5126_s29 + $0x44] sm:$0x1] }
  0x1c   : > { %v647_v53 = vunpack.c.l.b16 %v362_v49  ;;  %v648_v54 = vunpack.c.l.b16 %v372_v50  ;;  %v453_v55 = vrot.slane %v452_v44, 4  ;;  %v553_v58 = vrot.slane %v551_v48, 5  ;;  %v219_v33 = vld [vmem:[%s5126_s29 + $0x6c] sm:$0xf]  ;;  %v243_v47 = vld [vmem:[%s5126_s29 + $0x74] sm:$0x1] }
  0x1d   : > { %v463_v57 = vrot.slane %v462_v51, 4  ;;  %v557_v59 = vrot.slane %v555_v52, 4  ;;  %v561_v60 = vshll.u32 %v246_v45, 16  ;;  %v548_v0 = vor.u32 %v547_v56, %v544_v46 }
  0x1e   : > { %v675_v62 = vpack.c.b16 %v648_v54, %v647_v53  ;;  %v458_v63 = vsel %vm5138_vm3, %v453_v55, %v457_v38  ;;  %v254_v9 = vshrl.u32 %v201_v61, 16  ;;  %v257_v10 = vshll.u32 %v201_v61, 16  ;;  %v227_v61 = vld [vmem:[%s5126_s29 + $0x9c] sm:$0xf] }
  0x1f   : > { %v468_v3 = vsel %vm5138_vm3, %v463_v57, %v467_v43  ;;  %v655_v4 = vunpack.c.l.b16 %v458_v63  ;;  %v558_v5 = vor.u32 %v557_v59, %v553_v58  ;;  %v563_v6 = vrot.slane %v561_v60, 5  ;;  %v220_v43 = vld [vmem:[%s5126_s29 + $0x70] sm:$0xf] }
  0x20   : > { %4328 = vmatmul.msk.bf16.vlgmr.msra.gmra.mxu1 %vm687_vm4, %v675_v62  ;;  %v656_v7 = vunpack.c.l.b16 %v468_v3  ;;  %v549_v8 = vrot.slane %v548_v0, 4  ;;  %v263_v12 = vshll.u32 %v5151_v1, 16  ;;  %v267_v13 = vshrl.u32 %v5151_v1, 16  ;;  %v228_v3 = vld [vmem:[%s5126_s29 + $0xa0] sm:$0xf] }
  0x21   : > { %v559_v11 = vrot.slane %v558_v5, 4  ;;  %v273_v14 = vshll.u32 %v5154_v2, 16  ;;  %v256_v17 = vrot.slane %v254_v9, 4  ;;  %v259_v18 = vrot.slane %v257_v10, 5 }
  0x22   : > { %v679_v15 = vpack.c.b16 %v656_v7, %v655_v4  ;;  %v554_v16 = vsel %vm5138_vm3, %v549_v8, %v553_v58  ;;  %v265_v23 = vrot.slane %v263_v12, 5  ;;  %v269_v24 = vrot.slane %v267_v13, 4  ;;  %v247_v8 = vld [vmem:[%s5126_s29 + $0xa4] sm:$0x1] }
  0x23   : > { %v564_v21 = vsel %vm5138_vm3, %v559_v11, %v563_v6  ;;  %v663_v22 = vunpack.c.l.b16 %v554_v16  ;;  %v260_v27 = vor.u32 %v259_v18, %v256_v17  ;;  %v275_v28 = vrot.slane %v273_v14, 5 }
  0x24   : > { %4332 = vmatmul.msk.bf16.vlgmr.msra.gmra.mxu2 %vm687_vm4, %v679_v15  ;;  %v664_v26 = vunpack.c.l.b16 %v564_v21  ;;  %v270_v29 = vor.u32 %v269_v24, %v265_v23  ;;  %v374_v30 = vshrl.u32 %v211_v19, 16  ;;  %v377_v31 = vshll.u32 %v211_v19, 16 }
  0x25   : > { %v383_v32 = vshll.u32 %v5166_v20, 16  ;;  %v261_v35 = vrot.slane %v260_v27, 4  ;;  %v387_v37 = vshrl.u32 %v5166_v20, 16  ;;  %v393_v38 = vshll.u32 %v5171_v25, 16 }
  0x26   : > { %v683_v34 = vpack.c.b16 %v664_v26, %v663_v22  ;;  %v271_v39 = vrot.slane %v270_v29, 4  ;;  %v376_v40 = vrot.slane %v374_v30, 4  ;;  %v379_v41 = vrot.slane %v377_v31, 5  ;;  %v203_v22 = vld [vmem:[%s5126_s29 + $0xc] sm:$0xf] }
  0x27   : > { %v385_v42 = vrot.slane %v383_v32, 5  ;;  %v266_v44 = vsel %vm5138_vm3, %v261_v35, %v265_v23  ;;  %v389_v45 = vrot.slane %v387_v37, 4  ;;  %v395_v46 = vrot.slane %v393_v38, 5  ;;  %v5200_v32 = vld [vmem:[%s5126_s29 + $0x14] sm:$0x1] }
  0x28   : > { %4336 = vmatmul.msk.bf16.vlgmr.msra.gmra.mxu3 %vm687_vm4, %v683_v34  ;;  %v470_v48 = vshrl.u32 %v219_v33, 16  ;;  %v276_v49 = vsel %vm5138_vm3, %v271_v39, %v275_v28  ;;  %v639_v50 = vunpack.c.l.b16 %v266_v44  ;;  %v380_v51 = vor.u32 %v379_v41, %v376_v40  ;;  %v5197_v28 = vld [vmem:[%s5126_s29 + $0x10] sm:$0xf] }
  0x29   : > { %v473_v52 = vshll.u32 %v219_v33, 16  ;;  %v640_v53 = vunpack.c.l.b16 %v276_v49  ;;  %v390_v54 = vor.u32 %v389_v45, %v385_v42  ;;  %v479_v56 = vshll.u32 %v220_v43, 16 }
  0x2a   : > { %v472_v55 = vrot.slane %v470_v48, 4  ;;  %v381_v57 = vrot.slane %v380_v51, 4  ;;  %v483_v59 = vshrl.u32 %v220_v43, 16  ;;  %v489_v60 = vshll.u32 %v243_v47, 16  ;;  %v5210_v47 = vld [vmem:[%s5126_s29 + $0x4c] sm:$0xf] }
  0x2b   : > { %v475_v58 = vrot.slane %v473_v52, 5  ;;  %v671_v62 = vpack.c.b16 %v640_v53, %v639_v50  ;;  %v391_v63 = vrot.slane %v390_v54, 4  ;;  %v481_v0 = vrot.slane %v479_v56, 5  ;;  %v5215_v56 = vld [vmem:[%s5126_s29 + $0x50] sm:$0x1] }
  0x2c   : > { %v386_v4 = vsel %vm5138_vm3, %v381_v57, %v385_v42  ;;  %v485_v6 = vrot.slane %v483_v59, 4  ;;  %v491_v7 = vrot.slane %v489_v60, 5  ;;  %v566_v11 = vshrl.u32 %v227_v61, 16  ;;  %v213_v42 = vld [vmem:[%s5126_s29 + $0x48] sm:$0xf] }
  0x2d   : > { %v476_v5 = vor.u32 %v475_v58, %v472_v55  ;;  %4324 = vmatmul.msk.bf16.vlgmr.msra.gmra.mxu0 %vm687_vm4, %v671_v62  ;;  %v396_v9 = vsel %vm5138_vm3, %v391_v63, %v395_v46  ;;  %v649_v10 = vunpack.c.l.b16 %v386_v4  ;;  %v569_v12 = vshll.u32 %v227_v61, 16 }
  0x2e   : > { %v650_v13 = vunpack.c.l.b16 %v396_v9  ;;  %v486_v15 = vor.u32 %v485_v6, %v481_v0  ;;  %v575_v16 = vshll.u32 %v228_v3, 16  ;;  %v568_v17 = vrot.slane %v566_v11, 4 }
  0x2f   : > { %v477_v14 = vrot.slane %v476_v5, 4  ;;  %v571_v18 = vrot.slane %v569_v12, 5  ;;  %v579_v19 = vshrl.u32 %v228_v3, 16  ;;  %v585_v21 = vshll.u32 %v247_v8, 16  ;;  %v221_v3 = vld [vmem:[%s5126_s29 + $0x78] sm:$0xf] }
  0x30   : > { %v676_v23 = vpack.c.b16 %v650_v13, %v649_v10  ;;  %v487_v26 = vrot.slane %v486_v15, 4  ;;  %v577_v27 = vrot.slane %v575_v16, 5  ;;  %v278_v35 = vshrl.u32 %v203_v22, 16  ;;  %v222_v8 = vld [vmem:[%s5126_s29 + $0x7c] sm:$0xf] }
  0x31   : > { %v482_v24 = vsel %vm5138_vm3, %v477_v14, %v481_v0  ;;  %v572_v30 = vor.u32 %v571_v18, %v568_v17  ;;  %v581_v31 = vrot.slane %v579_v19, 4  ;;  %v587_v34 = vrot.slane %v585_v21, 5  ;;  %v244_v16 = vld [vmem:[%s5126_s29 + $0x80] sm:$0x1] }
  0x32   : > { %v657_v29 = vunpack.c.l.b16 %v482_v24  ;;  %4329 = vmatmul.msk.bf16.gmra.mxu1 %vm687_vm4, %v676_v23  ;;  %v492_v33 = vsel %vm5138_vm3, %v487_v26, %v491_v7  ;;  %v281_v37 = vshll.u32 %v203_v22, 16  ;;  %v287_v41 = vshll.u32 %v5197_v28, 16 }
  0x33   : > { %v658_v38 = vunpack.c.l.b16 %v492_v33  ;;  %v573_v39 = vrot.slane %v572_v30, 4  ;;  %v582_v40 = vor.u32 %v581_v31, %v577_v27  ;;  %v280_v43 = vrot.slane %v278_v35, 4 }
  0x34   : > { %v283_v44 = vrot.slane %v281_v37, 5  ;;  %v291_v45 = vshrl.u32 %v5197_v28, 16  ;;  %v297_v46 = vshll.u32 %v5200_v32, 16  ;;  %v289_v51 = vrot.slane %v287_v41, 5 }
  0x35   : > { %v680_v48 = vpack.c.b16 %v658_v38, %v657_v29  ;;  %v578_v49 = vsel %vm5138_vm3, %v573_v39, %v577_v27  ;;  %v583_v50 = vrot.slane %v582_v40, 4  ;;  %v398_v58 = vshrl.u32 %v213_v42, 16  ;;  %v230_v39 = vld [vmem:[%s5126_s29 + $0xac] sm:$0xf]  ;;  %v248_v40 = vld [vmem:[%s5126_s29 + $0xb0] sm:$0x1] }
  0x36   : > { %v665_v52 = vunpack.c.l.b16 %v578_v49  ;;  %v284_v53 = vor.u32 %v283_v44, %v280_v43  ;;  %v293_v54 = vrot.slane %v291_v45, 4  ;;  %v299_v55 = vrot.slane %v297_v46, 5 }
  0x37   : > { %4333 = vmatmul.msk.bf16.gmra.mxu2 %vm687_vm4, %v680_v48  ;;  %v588_v57 = vsel %vm5138_vm3, %v583_v50, %v587_v34  ;;  %v401_v59 = vshll.u32 %v213_v42, 16  ;;  %v407_v60 = vshll.u32 %v5210_v47, 16  ;;  %v411_v0 = vshrl.u32 %v5210_v47, 16  ;;  %v229_v34 = vld [vmem:[%s5126_s29 + $0xa8] sm:$0xf] }
  0x38   : > { %v666_v61 = vunpack.c.l.b16 %v588_v57  ;;  %v285_v62 = vrot.slane %v284_v53, 4  ;;  %v294_v63 = vor.u32 %v293_v54, %v289_v51  ;;  %v400_v4 = vrot.slane %v398_v58, 4 }
  0x39   : > { %v403_v5 = vrot.slane %v401_v59, 5  ;;  %v409_v6 = vrot.slane %v407_v60, 5  ;;  %v417_v7 = vshll.u32 %v5215_v56, 16  ;;  %v413_v12 = vrot.slane %v411_v0, 4  ;;  %v205_v59 = vld [vmem:[%s5126_s29 + $0x18] sm:$0xf] }
  0x3a   : > { %v684_v9 = vpack.c.b16 %v666_v61, %v665_v52  ;;  %v290_v10 = vsel %vm5138_vm3, %v285_v62, %v289_v51  ;;  %v295_v11 = vrot.slane %v294_v63, 4  ;;  %v494_v17 = vshrl.u32 %v221_v3, 16  ;;  %v5243_v63 = vld [vmem:[%s5126_s29 + $0x1c] sm:$0xf]  ;;  %v5246_v0 = vld [vmem:[%s5126_s29 + $0x20] sm:$0x1] }
  0x3b   : > { %v641_v13 = vunpack.c.l.b16 %v290_v10  ;;  %v404_v14 = vor.u32 %v403_v5, %v400_v4  ;;  %v419_v15 = vrot.slane %v417_v7, 5  ;;  %v414_v19 = vor.u32 %v413_v12, %v409_v6 }
  0x3c   : > { %4337 = vmatmul.msk.bf16.gmra.mxu3 %vm687_vm4, %v684_v9  ;;  %v300_v18 = vsel %vm5138_vm3, %v295_v11, %v299_v55  ;;  %v497_v21 = vshll.u32 %v221_v3, 16  ;;  %v503_v22 = vshll.u32 %v222_v8, 16  ;;  %v496_v26 = vrot.slane %v494_v17, 4 }
  0x3d   : > { %v642_v23 = vunpack.c.l.b16 %v300_v18  ;;  %v405_v24 = vrot.slane %v404_v14, 4  ;;  %v507_v27 = vshrl.u32 %v222_v8, 16  ;;  %v415_v29 = vrot.slane %v414_v19, 4 }
  0x3e   : > { %v499_v30 = vrot.slane %v497_v21, 5  ;;  %v505_v31 = vrot.slane %v503_v22, 5  ;;  %v513_v33 = vshll.u32 %v244_v16, 16  ;;  %v590_v48 = vshrl.u32 %v229_v34, 16  ;;  %v5256_v21 = vld [vmem:[%s5126_s29 + $0x58] sm:$0xf] }
  0x3f   : > { %v672_v35 = vpack.c.b16 %v642_v23, %v641_v13  ;;  %v410_v37 = vsel %vm5138_vm3, %v405_v24, %v409_v6  ;;  %v509_v38 = vrot.slane %v507_v27, 4  ;;  %v420_v41 = vsel %vm5138_vm3, %v415_v29, %v419_v15  ;;  %v215_v15 = vld [vmem:[%s5126_s29 + $0x54] sm:$0xf]  ;;  %v5261_v27 = vld [vmem:[%s5126_s29 + $0x5c] sm:$0x1] }
  0x40   : > { %v651_v42 = vunpack.c.l.b16 %v410_v37  ;;  %v500_v43 = vor.u32 %v499_v30, %v496_v26  ;;  %v515_v44 = vrot.slane %v513_v33, 5  ;;  %v652_v45 = vunpack.c.l.b16 %v420_v41 }
  0x41   : > { %4325 = vmatmul.msk.bf16.gmra.mxu0 %vm687_vm4, %v672_v35  ;;  %v510_v46 = vor.u32 %v509_v38, %v505_v31  ;;  %v593_v49 = vshll.u32 %v229_v34, 16  ;;  %v599_v51 = vshll.u32 %v230_v39, 16  ;;  %v603_v52 = vshrl.u32 %v230_v39, 16  ;;  %v223_v39 = vld [vmem:[%s5126_s29 + $0x84] sm:$0xf] }
  0x42   : > { %v501_v50 = vrot.slane %v500_v43, 4  ;;  %v609_v53 = vshll.u32 %v248_v40, 16  ;;  %v677_v54 = vpack.c.b16 %v652_v45, %v651_v42  ;;  %v592_v57 = vrot.slane %v590_v48, 4 }
  0x43   : > { %v511_v55 = vrot.slane %v510_v46, 4  ;;  %v595_v58 = vrot.slane %v593_v49, 5  ;;  %v601_v61 = vrot.slane %v599_v51, 5  ;;  %v605_v62 = vrot.slane %v603_v52, 4  ;;  %v224_v49 = vld [vmem:[%s5126_s29 + $0x88] sm:$0xf] }
  0x44   : > { %v506_v60 = vsel %vm5138_vm3, %v501_v50, %v505_v31  ;;  %4330 = vmatmul.msk.bf16.gmra.mxu1 %vm687_vm4, %v677_v54  ;;  %v611_v6 = vrot.slane %v609_v53, 5  ;;  %v302_v9 = vshrl.u32 %v205_v59, 16  ;;  %v305_v10 = vshll.u32 %v205_v59, 16  ;;  %v245_v53 = vld [vmem:[%s5126_s29 + $0x8c] sm:$0x1] }
  0x45   : > { %v516_v3 = vsel %vm5138_vm3, %v511_v55, %v515_v44  ;;  %v659_v4 = vunpack.c.l.b16 %v506_v60  ;;  %v596_v5 = vor.u32 %v595_v58, %v592_v57  ;;  %v606_v8 = vor.u32 %v605_v62, %v601_v61 }
  0x46   : > { %v660_v7 = vunpack.c.l.b16 %v516_v3  ;;  %v311_v12 = vshll.u32 %v5243_v63, 16  ;;  %v315_v13 = vshrl.u32 %v5243_v63, 16  ;;  %v321_v14 = vshll.u32 %v5246_v0, 16 }
  0x47   : > { %v597_v11 = vrot.slane %v596_v5, 4  ;;  %v607_v17 = vrot.slane %v606_v8, 4  ;;  %v304_v18 = vrot.slane %v302_v9, 4  ;;  %v307_v19 = vrot.slane %v305_v10, 5  ;;  %v231_v8 = vld [vmem:[%s5126_s29 + $0xb4] sm:$0xf] }
  0x48   : > { %v681_v16 = vpack.c.b16 %v660_v7, %v659_v4  ;;  %v313_v23 = vrot.slane %v311_v12, 5  ;;  %v317_v24 = vrot.slane %v315_v13, 4  ;;  %v323_v26 = vrot.slane %v321_v14, 5  ;;  %v232_v12 = vld [vmem:[%s5126_s29 + $0xb8] sm:$0xf] }
  0x49   : > { %v602_v22 = vsel %vm5138_vm3, %v597_v11, %v601_v61  ;;  %v612_v29 = vsel %vm5138_vm3, %v607_v17, %v611_v6  ;;  %v308_v31 = vor.u32 %v307_v19, %v304_v18  ;;  %v422_v33 = vshrl.u32 %v215_v15, 16  ;;  %v249_v17 = vld [vmem:[%s5126_s29 + $0xbc] sm:$0x1] }
  0x4a   : > { %4334 = vmatmul.msk.bf16.gmra.mxu2 %vm687_vm4, %v681_v16  ;;  %v667_v30 = vunpack.c.l.b16 %v602_v22  ;;  %v668_v34 = vunpack.c.l.b16 %v612_v29  ;;  %v318_v35 = vor.u32 %v317_v24, %v313_v23  ;;  %v425_v37 = vshll.u32 %v215_v15, 16 }
  0x4b   : > { %v431_v38 = vshll.u32 %v5256_v21, 16  ;;  %v309_v40 = vrot.slane %v308_v31, 4  ;;  %v424_v41 = vrot.slane %v422_v33, 4  ;;  %v435_v42 = vshrl.u32 %v5256_v21, 16 }
  0x4c   : > { %v441_v43 = vshll.u32 %v5261_v27, 16  ;;  %v685_v44 = vpack.c.b16 %v668_v34, %v667_v30  ;;  %v319_v45 = vrot.slane %v318_v35, 4  ;;  %v427_v46 = vrot.slane %v425_v37, 5  ;;  %v207_v37 = vld [vmem:[%s5126_s29 + $0x24] sm:$0xf] }
  0x4d   : > { %v433_v48 = vrot.slane %v431_v38, 5  ;;  %v314_v50 = vsel %vm5138_vm3, %v309_v40, %v313_v23  ;;  %v437_v51 = vrot.slane %v435_v42, 4  ;;  %v518_v54 = vshrl.u32 %v223_v39, 16  ;;  %v5289_v42 = vld [vmem:[%s5126_s29 + $0x28] sm:$0xf] }
  0x4e   : > { %v443_v52 = vrot.slane %v441_v43, 5  ;;  %4338 = vmatmul.msk.bf16.gmra.mxu3 %vm687_vm4, %v685_v44  ;;  %v324_v55 = vsel %vm5138_vm3, %v319_v45, %v323_v26  ;;  %v643_v57 = vunpack.c.l.b16 %v314_v50  ;;  %v428_v58 = vor.u32 %v427_v46, %v424_v41 }
  0x4f   : > { %v521_v59 = vshll.u32 %v223_v39, 16  ;;  %v644_v60 = vunpack.c.l.b16 %v324_v55  ;;  %v438_v61 = vor.u32 %v437_v51, %v433_v48  ;;  %v520_v62 = vrot.slane %v518_v54, 4 }
  0x50   : > { %v527_v3 = vshll.u32 %v224_v49, 16  ;;  %v429_v4 = vrot.slane %v428_v58, 4  ;;  %v531_v6 = vshrl.u32 %v224_v49, 16  ;;  %v537_v7 = vshll.u32 %v245_v53, 16 }
  0x51   : > { %v523_v5 = vrot.slane %v521_v59, 5  ;;  %v673_v9 = vpack.c.b16 %v644_v60, %v643_v57  ;;  %v439_v10 = vrot.slane %v438_v61, 4  ;;  %v614_v22 = vshrl.u32 %v231_v8, 16  ;;  %v1049_v61 = vld [vmem:[%s5126_s29] sm:$0xe] }
  0x52   : > { %v529_v11 = vrot.slane %v527_v3, 5  ;;  %v434_v13 = vsel %vm5138_vm3, %v429_v4, %v433_v48  ;;  %v533_v15 = vrot.slane %v531_v6, 4  ;;  %v539_v16 = vrot.slane %v537_v7, 5  ;;  %v5293_v48 = vld [vmem:[%s5126_s29 + $0x2c] sm:$0x1] }
  0x53   : > { %v524_v14 = vor.u32 %v523_v5, %v520_v62  ;;  %4326 = vmatmul.msk.bf16.gmra.mxu0 %vm687_vm4, %v673_v9  ;;  %v444_v18 = vsel %vm5138_vm3, %v439_v10, %v443_v52  ;;  %v653_v19 = vunpack.c.l.b16 %v434_v13  ;;  %v617_v23 = vshll.u32 %v231_v8, 16  ;;  %v4566_v6 = vld [vmem:[%s5126_s29 + $0xc] sm:$0xf] }
  0x54   : > { %v654_v24 = vunpack.c.l.b16 %v444_v18  ;;  %v534_v29 = vor.u32 %v533_v15, %v529_v11  ;;  %v623_v30 = vshll.u32 %v232_v12, 16  ;;  %v616_v31 = vrot.slane %v614_v22, 4 }
  0x55   : > { %v525_v26 = vrot.slane %v524_v14, 4  ;;  %v619_v33 = vrot.slane %v617_v23, 5  ;;  %v627_v34 = vshrl.u32 %v232_v12, 16  ;;  %v633_v35 = vshll.u32 %v249_v17, 16  ;;  %v4567_v12 = vld [vmem:[%s5126_s29 + $0x10] sm:$0xf] }
  0x56   : > { %v678_v38 = vpack.c.b16 %v654_v24, %v653_v19  ;;  %v535_v40 = vrot.slane %v534_v29, 4  ;;  %v625_v41 = vrot.slane %v623_v30, 5  ;;  %v1105_v43 = vrot.slane %v5154_v2, 5 }
  0x57   : > { %v530_v39 = vsel %vm5138_vm3, %v525_v26, %v529_v11  ;;  %v620_v45 = vor.u32 %v619_v33, %v616_v31  ;;  %v629_v46 = vrot.slane %v627_v34, 4  ;;  %v635_v50 = vrot.slane %v633_v35, 5  ;;  %v4712_v11 = vld [vmem:[%s6500_s1 + $0xc] sm:$0x3] }
  0x58   : > { %v661_v44 = vunpack.c.l.b16 %v530_v39  ;;  %4331 = vmatmul.msk.bf16.gmra.mxu1 %vm687_vm4, %v678_v38  ;;  %v540_v49 = vsel %vm5138_vm3, %v535_v40, %v539_v16  ;;  %v326_v51 = vshrl.u32 %v207_v37, 16  ;;  %v329_v52 = vshll.u32 %v207_v37, 16  ;;  %v4568_v38 = vld [vmem:[%s5126_s29 + $0x14] sm:$0x1] }
  0x59   : > { %v662_v53 = vunpack.c.l.b16 %v540_v49  ;;  %v621_v54 = vrot.slane %v620_v45, 4  ;;  %v630_v55 = vor.u32 %v629_v46, %v625_v41  ;;  %v335_v2 = vshll.u32 %v5289_v42, 16  ;;  %v4841_v45 = vld [vmem:[%s6500_s1 + $0xe] sm:$0x3] }
  0x5a   : > { %v328_v57 = vrot.slane %v326_v51, 4  ;;  %v331_v58 = vrot.slane %v329_v52, 5  ;;  %v339_v59 = vshrl.u32 %v5289_v42, 16  ;;  %v345_v60 = vshll.u32 %v5293_v48, 16  ;;  %v4910_v51 = vld [vmem:[%s5126_s29] sm:$0xff] }
  0x5b   : > { %v682_v62 = vpack.c.b16 %v662_v53, %v661_v44  ;;  %v626_v3 = vsel %vm5138_vm3, %v621_v54, %v625_v41  ;;  %v631_v4 = vrot.slane %v630_v55, 4  ;;  %v337_v5 = vrot.slane %v335_v2, 5  ;;  %v4890_v2 = vld [vmem:[%s6500_s1 + $0x10] sm:$0x3] }
  0x5c   : > { %v669_v7 = vunpack.c.l.b16 %v626_v3  ;;  %v332_v8 = vor.u32 %v331_v58, %v328_v57  ;;  %v341_v9 = vrot.slane %v339_v59, 4  ;;  %v347_v10 = vrot.slane %v345_v60, 5 }
  0x5d   : > { %4335 = vmatmul.msk.bf16.gmra.mxu2 %vm687_vm4, %v682_v62  ;;  %v636_v13 = vsel %vm5138_vm3, %v631_v4, %v635_v50  ;;  %v4420_v14 = vrot.slane %v1049_v61, 9  ;;  %v1102_v19 = vrot.slane %v5151_v1, 5  ;;  %v2943_v22 = vsel %vm736_vm0, %v4712_v11, 0  ;;  %v4663_v50 = vld [vmem:[%s6500_s1 + $0xa] sm:$0x3] }
  0x5e   : > { %v670_v15 = vunpack.c.l.b16 %v636_v13  ;;  %v333_v16 = vrot.slane %v332_v8, 4  ;;  %v342_v17 = vor.u32 %v341_v9, %v337_v5  ;;  %v1773_v23 = vshrl.u32 %v4566_v6, 16  ;;  %2952 = vmatpush.bf16.msra.mxu2 %v2943_v22  ;;  %v1050_v8 = vld [vmem:[%s5126_s29 + $0xc] sm:$0xe] }
  0x5f   : > { %v1776_v24 = vshll.u32 %v4566_v6, 16  ;;  %v1782_v26 = vshll.u32 %v4567_v12, 16  ;;  %v1103_v33 = vsel %vm5312_vm7, %v4420_v14, %v1102_v19  ;;  %v1104_v35 = vrot.slane %v1102_v19, 4  ;;  %v4570_v6 = vld [vmem:[%s5126_s29 + $0x1c] sm:$0xf] }
  0x60   : > { %v686_v29 = vpack.c.b16 %v670_v15, %v669_v7  ;;  %v338_v30 = vsel %vm5138_vm3, %v333_v16, %v337_v5  ;;  %v343_v31 = vrot.slane %v342_v17, 4  ;;  %v1214_v37 = vunpack.c.l.b16 %v1103_v33  ;;  %v4569_v5 = vld [vmem:[%s5126_s29 + $0x18] sm:$0xf]  ;;  %v4926_v15 = vld [vmem:[%s5126_s29 + $0xc] sm:$0xff] }
  0x61   : > { %v645_v34 = vunpack.c.l.b16 %v338_v30  ;;  %v1775_v1 = vrot.slane %v1773_v23, 4  ;;  %v1778_v40 = vrot.slane %v1776_v24, 5  ;;  %v1784_v41 = vrot.slane %v1782_v26, 5  ;;  %v4571_v30 = vld [vmem:[%s5126_s29 + $0x20] sm:$0x1] }
  0x62   : > { %4339 = vmatmul.msk.bf16.gmra.mxu3 %vm687_vm4, %v686_v29  ;;  %v348_v39 = vsel %vm5138_vm3, %v343_v31, %v347_v10  ;;  %v1786_v44 = vshrl.u32 %v4567_v12, 16  ;;  %v1106_v49 = vsel %vm5312_vm7, %v1104_v35, %v1105_v43  ;;  %v1792_v55 = vshll.u32 %v4568_v38, 16  ;;  %v4911_v35 = vld [vmem:[%s5126_s29 + $0xc] sm:$0xff] }
  0x63   : > { %v646_v46 = vunpack.c.l.b16 %v348_v39  ;;  %v1215_v52 = vunpack.c.l.b16 %v1106_v49  ;;  %v1779_v53 = vor.u32 %v1778_v40, %v1775_v1  ;;  %v3597_v58 = vsel %vm736_vm0, %v4841_v45, 0 }
  0x64   : > { %v1788_v54 = vrot.slane %v1786_v44, 4  ;;  %3606 = vmatpush.bf16.msra.mxu3 %v3597_v58  ;;  %v2653_v60 = vsel %vm736_vm0, %v4663_v50, 0  ;;  %v3995_v61 = vsel %vm736_vm0, %v4890_v2, 0  ;;  %v1794_v4 = vrot.slane %v1792_v55, 5  ;;  %v1051_v50 = vld [vmem:[%s5126_s29 + $0x18] sm:$0xe] }
  0x65   : > { %v674_v57 = vpack.c.b16 %v646_v46, %v645_v34  ;;  %v1246_v43 = vpack.c.b16 %v1215_v52, %v1214_v37  ;;  %2662 = vmatpush.bf16.msra.mxu1 %v2653_v60  ;;  %v1780_v62 = vrot.slane %v1779_v53, 4  ;;  %4004 = vmatpush.bf16.msra.mxu0 %v3995_v61  ;;  %v1109_v7 = vrot.slane %v5197_v28, 5  ;;  %v4573_v46 = vld [vmem:[%s5126_s29 + $0x28] sm:$0xf] }
  0x66   : > { %v1789_v59 = vor.u32 %v1788_v54, %v1784_v41  ;;  %v1797_v9 = vshrl.u32 %v4569_v5, 16  ;;  %v1800_v10 = vshll.u32 %v4569_v5, 16  ;;  %v1806_v13 = vshll.u32 %v4570_v6, 16 }
  0x67   : > { %4327 = vmatmul.msk.bf16.gmra.mxu0 %vm687_vm4, %v674_v57  ;;  %v1785_v11 = vsel %vm5138_vm3, %v1780_v62, %v1784_v41  ;;  %v1810_v14 = vshrl.u32 %v4570_v6, 16  ;;  %v4421_v16 = vrot.slane %v1050_v8, 9  ;;  %v1111_v17 = vrot.slane %v1109_v7, 4  ;;  %v4572_v41 = vld [vmem:[%s5126_s29 + $0x24] sm:$0xf] }
  0x68   : > { %4404 = vmatmul.msk.bf16.vlgmr.msrb.gmra.mxu1 %vm687_vm4, %v4910_v51  ;;  %v1790_v3 = vrot.slane %v1789_v59, 4  ;;  %v1112_v28 = vrot.slane %v5200_v32, 5  ;;  %v2158_v19 = vunpack.c.l.b16 %v1785_v11  ;;  %v1799_v23 = vrot.slane %v1797_v9, 4  ;;  %v4574_v6 = vld [vmem:[%s5126_s29 + $0x2c] sm:$0x1] }
  0x69   : > { %v1802_v24 = vrot.slane %v1800_v10, 5  ;;  %v1808_v26 = vrot.slane %v1806_v13, 5  ;;  %v1812_v29 = vrot.slane %v1810_v14, 4  ;;  %v1110_v31 = vsel %vm5312_vm7, %v4421_v16, %v1109_v7 }
  0x6a   : > { %v1795_v12 = vsel %vm5138_vm3, %v1790_v3, %v1794_v4  ;;  %v1113_v33 = vsel %vm5312_vm7, %v1111_v17, %v1112_v28  ;;  %v1816_v38 = vshll.u32 %v4571_v30, 16  ;;  %v1216_v1 = vunpack.c.l.b16 %v1110_v31 }
  0x6b   : > { %v2159_v22 = vunpack.c.l.b16 %v1795_v12  ;;  %v1803_v32 = vor.u32 %v1802_v24, %v1799_v23  ;;  %v1813_v37 = vor.u32 %v1812_v29, %v1808_v26  ;;  %v1217_v39 = vunpack.c.l.b16 %v1113_v33  ;;  %v4912_v12 = vld [vmem:[%s5126_s29 + $0x18] sm:$0xff]  ;;  %v1052_v29 = vld [vmem:[%s5126_s29 + $0x24] sm:$0xe] }
  0x6c   : > { %v1818_v45 = vrot.slane %v1816_v38, 5  ;;  %v1116_v51 = vrot.slane %v5243_v63, 5  ;;  %v1821_v52 = vshrl.u32 %v4572_v41, 16  ;;  %v1824_v54 = vshll.u32 %v4572_v41, 16 }
  0x6d   : > { %4437 = vmatmul.msk.bf16.vlgmr.msrb.gmra.mxu2 %vm687_vm4, %v1246_v43  ;;  %v2190_v34 = vpack.c.b16 %v2159_v22, %v2158_v19  ;;  %v1804_v40 = vrot.slane %v1803_v32, 4  ;;  %v1814_v44 = vrot.slane %v1813_v37, 4  ;;  %v1247_v49 = vpack.c.b16 %v1217_v39, %v1216_v1  ;;  %v4927_v43 = vld [vmem:[%s5126_s29 + $0x18] sm:$0xff]  ;;  %v4575_v19 = vld [vmem:[%s5126_s29 + $0x30] sm:$0xf]  ;;  %v4928_v32 = vld [vmem:[%s5126_s29 + $0x24] sm:$0xff] }
  0x6e   : > { %v1830_v55 = vshll.u32 %v4573_v46, 16  ;;  %v1834_v2 = vshrl.u32 %v4573_v46, 16  ;;  %v4422_v58 = vrot.slane %v1051_v50, 9  ;;  %v1118_v60 = vrot.slane %v1116_v51, 4  ;;  %v4576_v22 = vld [vmem:[%s5126_s29 + $0x34] sm:$0xf] }
  0x6f   : > { %v1809_v53 = vsel %vm5138_vm3, %v1804_v40, %v1808_v26  ;;  %v1819_v57 = vsel %vm5138_vm3, %v1814_v44, %v1818_v45  ;;  %v1119_v63 = vrot.slane %v5246_v0, 5  ;;  %v1823_v61 = vrot.slane %v1821_v52, 4  ;;  %v4577_v45 = vld [vmem:[%s5126_s29 + $0x38] sm:$0x1] }
  0x70   : > { %v2160_v59 = vunpack.c.l.b16 %v1809_v53  ;;  %v2161_v62 = vunpack.c.l.b16 %v1819_v57  ;;  %v1826_v3 = vrot.slane %v1824_v54, 5  ;;  %v1832_v4 = vrot.slane %v1830_v55, 5  ;;  %v4579_v57 = vld [vmem:[%s5126_s29 + $0x40] sm:$0xf] }
  0x71   : > { %v1836_v5 = vrot.slane %v1834_v2, 4  ;;  %v1117_v7 = vsel %vm5312_vm7, %v4422_v58, %v1116_v51  ;;  %v1120_v8 = vsel %vm5312_vm7, %v1118_v60, %v1119_v63  ;;  %v1840_v0 = vshll.u32 %v4574_v6, 16  ;;  %v4578_v2 = vld [vmem:[%s5126_s29 + $0x3c] sm:$0xf]  ;;  %v4987_v63 = vld [vmem:[%s5126_s29 + $0x34] sm:$0xf] }
  0x72   : > { %4550 = vmatmul.msk.bf16.vlgmr.msrb.gmra.mxu3 %vm687_vm4, %v4926_v15  ;;  %v2191_v9 = vpack.c.b16 %v2161_v62, %v2160_v59  ;;  %v1827_v10 = vor.u32 %v1826_v3, %v1823_v61  ;;  %v1218_v13 = vunpack.c.l.b16 %v1117_v7  ;;  %v1219_v14 = vunpack.c.l.b16 %v1120_v8  ;;  %v1053_v62 = vld [vmem:[%s5126_s29 + $0x30] sm:$0xe] }
  0x73   : > { %v1837_v11 = vor.u32 %v1836_v5, %v1832_v4  ;;  %v1842_v17 = vrot.slane %v1840_v0, 5  ;;  %v1123_v23 = vrot.slane %v5289_v42, 5  ;;  %v1845_v30 = vshrl.u32 %v4575_v19, 16  ;;  %v4988_v0 = vld [vmem:[%s5126_s29 + $0x38] sm:$0x1] }
  0x74   : > { %v1828_v15 = vrot.slane %v1827_v10, 4  ;;  %v1248_v28 = vpack.c.b16 %v1219_v14, %v1218_v13  ;;  %v1848_v31 = vshll.u32 %v4575_v19, 16  ;;  %v1854_v33 = vshll.u32 %v4576_v22, 16  ;;  %v4929_v13 = vld [vmem:[%s5126_s29 + $0x30] sm:$0xff] }
  0x75   : > { %v1838_v16 = vrot.slane %v1837_v11, 4  ;;  %v1125_v37 = vrot.slane %v1123_v23, 4  ;;  %v1126_v42 = vrot.slane %v5293_v48, 5  ;;  %v1847_v39 = vrot.slane %v1845_v30, 4  ;;  %v4913_v48 = vld [vmem:[%s5126_s29 + $0x24] sm:$0xff] }
  0x76   : > { %v1833_v24 = vsel %vm5138_vm3, %v1828_v15, %v1832_v4  ;;  %v1850_v40 = vrot.slane %v1848_v31, 5  ;;  %v1856_v41 = vrot.slane %v1854_v33, 5  ;;  %v1864_v53 = vshll.u32 %v4577_v45, 16  ;;  %v4914_v33 = vld [vmem:[%s5126_s29 + $0x30] sm:$0xff] }
  0x77   : > { %4615 = vmatmul.msk.bf16.vlgmr.msrb.gmra.mxu0 %vm687_vm4, %v2190_v34  ;;  %v1843_v26 = vsel %vm5138_vm3, %v1838_v16, %v1842_v17  ;;  %v1858_v34 = vshrl.u32 %v4576_v22, 16  ;;  %v2162_v38 = vunpack.c.l.b16 %v1833_v24  ;;  %v1130_v61 = vrot.slane %v4987_v63, 5  ;;  %v4580_v22 = vld [vmem:[%s5126_s29 + $0x44] sm:$0x1] }
  0x78   : > { %4405 = vmatmul.msk.bf16.gmra.mxu1 %vm687_vm4, %v4911_v35  ;;  %v4423_v35 = vrot.slane %v1052_v29, 9  ;;  %v2163_v1 = vunpack.c.l.b16 %v1843_v26  ;;  %v1851_v51 = vor.u32 %v1850_v40, %v1847_v39  ;;  %v1866_v59 = vrot.slane %v1864_v53, 5  ;;  %v4581_v39 = vld [vmem:[%s5126_s29 + $0x48] sm:$0xf]  ;;  %v4582_v40 = vld [vmem:[%s5126_s29 + $0x4c] sm:$0xf] }
  0x79   : > { %v1860_v44 = vrot.slane %v1858_v34, 4  ;;  %v1869_v3 = vshrl.u32 %v4578_v2, 16  ;;  %v1872_v4 = vshll.u32 %v4578_v2, 16  ;;  %v1878_v5 = vshll.u32 %v4579_v57, 16  ;;  %v4930_v2 = vld [vmem:[%s5126_s29 + $0x3c] sm:$0xff] }
  0x7a   : > { %v1124_v46 = vsel %vm5312_vm7, %v4423_v35, %v1123_v23  ;;  %v2192_v50 = vpack.c.b16 %v2163_v1, %v2162_v38  ;;  %v1852_v58 = vrot.slane %v1851_v51, 4  ;;  %v1882_v6 = vshrl.u32 %v4579_v57, 16 }
  0x7b   : > { %v1861_v52 = vor.u32 %v1860_v44, %v1856_v41  ;;  %v1220_v54 = vunpack.c.l.b16 %v1124_v46  ;;  %v4424_v10 = vrot.slane %v1053_v62, 9  ;;  %v1132_v11 = vrot.slane %v1130_v61, 4 }
  0x7c   : > { %v1857_v8 = vsel %vm5138_vm3, %v1852_v58, %v1856_v41  ;;  %v1871_v14 = vrot.slane %v1869_v3, 4  ;;  %v1874_v15 = vrot.slane %v1872_v4, 5  ;;  %v1880_v16 = vrot.slane %v1878_v5, 5  ;;  %v4583_v4 = vld [vmem:[%s5126_s29 + $0x50] sm:$0x1] }
  0x7d   : > { %4438 = vmatmul.msk.bf16.gmra.mxu2 %vm687_vm4, %v1247_v49  ;;  %v1127_v49 = vsel %vm5312_vm7, %v1125_v37, %v1126_v42  ;;  %v1884_v17 = vrot.slane %v1882_v6, 4  ;;  %v1131_v23 = vsel %vm5312_vm7, %v4424_v10, %v1130_v61  ;;  %v1888_v30 = vshll.u32 %v4580_v22, 16 }
  0x7e   : > { %v1221_v55 = vunpack.c.l.b16 %v1127_v49  ;;  %v1875_v26 = vor.u32 %v1874_v15, %v1871_v14  ;;  %v1893_v51 = vshrl.u32 %v4581_v39, 16  ;;  %v1902_v53 = vshll.u32 %v4582_v40, 16 }
  0x7f   : > { %v1885_v29 = vor.u32 %v1884_v17, %v1880_v16  ;;  %v1890_v1 = vrot.slane %v1888_v30, 5 }
  0x80   : > { %v1249_v60 = vpack.c.b16 %v1221_v55, %v1220_v54  ;;  %v1876_v42 = vrot.slane %v1875_v26, 4  ;;  %v1906_v54 = vshrl.u32 %v4582_v40, 16  ;;  %v1904_v62 = vrot.slane %v1902_v53, 5 }
  0x81   : > { %v1886_v38 = vrot.slane %v1885_v29, 4  ;;  %v1144_v26 = vrot.slane %v5210_v47, 5 }
  0x82   : > { %4551 = vmatmul.msk.bf16.gmra.mxu3 %vm687_vm4, %v4927_v43  ;;  %v1862_v43 = vrot.slane %v1861_v52, 4  ;;  %v1881_v45 = vsel %vm5138_vm3, %v1876_v42, %v1880_v16  ;;  %v1896_v52 = vshll.u32 %v4581_v39, 16  ;;  %v1908_v3 = vrot.slane %v1906_v54, 4  ;;  %v4586_v54 = vld [vmem:[%s5126_s29 + $0x5c] sm:$0x1] }
  0x83   : > { %v1891_v46 = vsel %vm5138_vm3, %v1886_v38, %v1890_v1  ;;  %v2166_v55 = vunpack.c.l.b16 %v1881_v45  ;;  %v4931_v1 = vld [vmem:[%s5126_s29 + $0x48] sm:$0xff]  ;;  %v1146_v40 = vrot.slane %v1144_v26, 4 }
  0x84   : > { %v2167_v57 = vunpack.c.l.b16 %v1891_v46  ;;  %v1898_v61 = vrot.slane %v1896_v52, 5  ;;  %v1909_v10 = vor.u32 %v1908_v3, %v1904_v62 }
  0x86   : > { %v1910_v16 = vrot.slane %v1909_v10, 4 }
  0x87   : > { %4616 = vmatmul.msk.bf16.gmra.mxu0 %vm687_vm4, %v2191_v9  ;;  %v1867_v9 = vsel %vm5138_vm3, %v1862_v43, %v1866_v59 }
  0x88   : > { %4406 = vmatmul.msk.bf16.gmra.mxu1 %vm687_vm4, %v4912_v12  ;;  %v1133_v12 = vrot.slane %v4988_v0, 5  ;;  %v2165_v19 = vunpack.c.l.b16 %v1867_v9 }
  0x8a   : > { %v1134_v24 = vsel %vm5312_vm7, %v1132_v11, %v1133_v12  ;;  %v1912_v11 = vshll.u32 %v4583_v4, 16  ;;  %v4915_v12 = vld [vmem:[%s5126_s29 + $0x3c] sm:$0xff] }
  0x8b   : > { %v1223_v35 = vunpack.c.l.b16 %v1134_v24  ;;  %v4585_v24 = vld [vmem:[%s5126_s29 + $0x58] sm:$0xf]  ;;  %v4587_v4 = vld [vmem:[%s5126_s29 + $0x60] sm:$0xf] }
  0x8c   : > { %v1914_v17 = vrot.slane %v1912_v11, 5  ;;  %v1930_v42 = vshrl.u32 %v4585_v24, 16 }
  0x8d   : > { %4439 = vmatmul.msk.bf16.gmra.mxu2 %vm687_vm4, %v1248_v28  ;;  %v2164_v28 = vunpack.c.l.b16 %v1857_v8  ;;  %v2194_v8 = vpack.c.b16 %v2167_v57, %v2166_v55 }
  0x8e   : > { %v1915_v30 = vsel %vm5138_vm3, %v1910_v16, %v1914_v17  ;;  %v1932_v52 = vrot.slane %v1930_v42, 4 }
  0x8f   : > { %v2193_v31 = vpack.c.b16 %v2165_v19, %v2164_v28  ;;  %v2169_v46 = vunpack.c.l.b16 %v1915_v30 }
  0x92   : > { %4552 = vmatmul.msk.bf16.gmra.mxu3 %vm687_vm4, %v4928_v32  ;;  %v1222_v32 = vunpack.c.l.b16 %v1131_v23  ;;  %v4584_v23 = vld [vmem:[%s5126_s29 + $0x54] sm:$0xf] }
  0x94   : > { %v1250_v44 = vpack.c.b16 %v1223_v35, %v1222_v32  ;;  %v1920_v32 = vshll.u32 %v4584_v23, 16  ;;  %v1926_v35 = vshll.u32 %v4585_v24, 16 }
  0x97   : > { %4617 = vmatmul.msk.bf16.gmra.mxu0 %vm687_vm4, %v2192_v50  ;;  %v1137_v50 = vrot.slane %v5166_v20, 5  ;;  %v1895_v20 = vrot.slane %v1893_v51, 4  ;;  %v1928_v51 = vrot.slane %v1926_v35, 5  ;;  %v1154_v35 = vrot.slane %v5261_v27, 5 }
  0x98   : > { %4407 = vmatmul.msk.bf16.gmra.mxu1 %vm687_vm4, %v4913_v48  ;;  %v1054_v48 = vld [vmem:[%s5126_s29 + $0x3c] sm:$0xe] }
  0x99   : > { %v4425_v43 = vrot.slane %v1054_v48, 9  ;;  %v1139_v59 = vrot.slane %v1137_v50, 4  ;;  %v1922_v48 = vrot.slane %v1920_v32, 5 }
  0x9b   : > { %v1138_v5 = vsel %vm5312_vm7, %v4425_v43, %v1137_v50  ;;  %v4916_v43 = vld [vmem:[%s5126_s29 + $0x48] sm:$0xff] }
  0x9d   : > { %v5407_v7 = vpop.f32.mrf.mxu1  ;;  %4440 = vmatmul.msk.bf16.gmra.mxu2 %vm687_vm4, %v1249_v60  ;;  %v1140_v60 = vrot.slane %v5171_v25, 5  ;;  %v1899_v25 = vor.u32 %v1898_v61, %v1895_v20  ;;  %v1936_v20 = vshll.u32 %v4586_v54, 16  ;;  %v4917_v54 = vld [vmem:[%s5126_s29 + $0x54] sm:$0xff] }
  0x9f   : > { %v1141_v6 = vsel %vm5312_vm7, %v1139_v59, %v1140_v60  ;;  %v1900_v15 = vrot.slane %v1899_v25, 4  ;;  %v1933_v60 = vor.u32 %v1932_v52, %v1928_v51  ;;  %v1938_v10 = vrot.slane %v1936_v20, 5 }
  0xa0   : > { %v1225_v14 = vunpack.c.l.b16 %v1141_v6 }
  0xa1   : > { %v1905_v29 = vsel %vm5138_vm3, %v1900_v15, %v1904_v62  ;;  %v1934_v25 = vrot.slane %v1933_v60, 4  ;;  %v1151_v15 = vrot.slane %v5256_v21, 5 }
  0xa2   : > { %4553 = vmatmul.msk.bf16.gmra.mxu3 %vm687_vm4, %v4929_v13  ;;  %v1224_v13 = vunpack.c.l.b16 %v1138_v5  ;;  %v2168_v45 = vunpack.c.l.b16 %v1905_v29  ;;  %v4588_v5 = vld [vmem:[%s5126_s29 + $0x64] sm:$0xf] }
  0xa3   : > { %v1954_v16 = vshrl.u32 %v4588_v5, 16  ;;  %v1939_v24 = vsel %vm5138_vm3, %v1934_v25, %v1938_v10  ;;  %v1153_v32 = vrot.slane %v1151_v15, 4  ;;  %v4989_v10 = vld [vmem:[%s5126_s29 + $0x64] sm:$0xf] }
  0xa4   : > { %v1251_v19 = vpack.c.b16 %v1225_v14, %v1224_v13  ;;  %v2195_v57 = vpack.c.b16 %v2169_v46, %v2168_v45  ;;  %v1944_v13 = vshll.u32 %v4587_v4, 16  ;;  %v1950_v14 = vshll.u32 %v4588_v5, 16 }
  0xa5   : > { %v5423_v34 = vpop.f32.mrf.mxu1  ;;  %v1956_v42 = vrot.slane %v1954_v16, 4 }
  0xa6   : > { %v1946_v30 = vrot.slane %v1944_v13, 5  ;;  %v1057_v13 = vld [vmem:[%s5126_s29 + $0x60] sm:$0xe] }
  0xa7   : > { %v5425_v37 = vpop.f32.mrf.mxu2  ;;  %4618 = vmatmul.msk.bf16.gmra.mxu0 %vm687_vm4, %v2193_v31  ;;  %v1055_v31 = vld [vmem:[%s5126_s29 + $0x48] sm:$0xe] }
  0xa8   : > { %4408 = vmatmul.msk.bf16.gmra.mxu1 %vm687_vm4, %v4914_v33  ;;  %v1917_v33 = vshrl.u32 %v4584_v23, 16  ;;  %v4426_v47 = vrot.slane %v1055_v31, 9  ;;  %v1952_v31 = vrot.slane %v1950_v14, 5 }
  0xaa   : > { %v5431_v41 = vpop.f32.mrf.mxu0  ;;  %v1919_v50 = vrot.slane %v1917_v33, 4  ;;  %v4932_v33 = vld [vmem:[%s5126_s29 + $0x54] sm:$0xff]  ;;  %v1957_v27 = vor.u32 %v1956_v42, %v1952_v31 }
  0xab   : > { %v5437_v49 = vpop.f32.mrf.mxu3 }
  0xac   : > { %v1923_v59 = vor.u32 %v1922_v48, %v1919_v50  ;;  %v1155_v48 = vsel %vm5312_vm7, %v1153_v32, %v1154_v35  ;;  %v1958_v60 = vrot.slane %v1957_v27, 4 }
  0xad   : > { %4441 = vmatmul.msk.bf16.gmra.mxu2 %vm687_vm4, %v1250_v44  ;;  %v1147_v44 = vrot.slane %v5215_v56, 5 }
  0xaf   : > { %v5443_v58 = vpop.f32.mrf.mxu1  ;;  %v5446_v63 = vpop.f32.mrf.mxu2  ;;  %v1148_v56 = vsel %vm5312_vm7, %v1146_v40, %v1147_v44  ;;  %v4589_v40 = vld [vmem:[%s5126_s29 + $0x68] sm:$0x1] }
  0xb0   : > { %v1227_v62 = vunpack.c.l.b16 %v1148_v56 }
  0xb2   : > { %4554 = vmatmul.msk.bf16.gmra.mxu3 %vm687_vm4, %v4930_v2  ;;  %v5454_v9 = vpop.f32.mrf.mxu0  ;;  %v1145_v2 = vsel %vm5312_vm7, %v4426_v47, %v1144_v26  ;;  %v2171_v47 = vunpack.c.l.b16 %v1939_v24 }
  0xb3   : > { %v5456_v0 = vpop.f32.mrf.mxu3  ;;  %v1226_v61 = vunpack.c.l.b16 %v1145_v2 }
  0xb5   : > { %v1252_v11 = vpack.c.b16 %v1227_v62, %v1226_v61  ;;  %v4590_v61 = vld [vmem:[%s5126_s29 + $0x6c] sm:$0xf]  ;;  %v4591_v62 = vld [vmem:[%s5126_s29 + $0x70] sm:$0xf] }
  0xb6   : > { %v1965_v14 = vshrl.u32 %v4590_v61, 16  ;;  %v1974_v16 = vshll.u32 %v4591_v62, 16 }
  0xb7   : > { %4619 = vmatmul.msk.bf16.gmra.mxu0 %vm687_vm4, %v2194_v8  ;;  %v5460_v28 = vpop.f32.mrf.mxu1  ;;  %v1924_v8 = vrot.slane %v1923_v59, 4 }
  0xb8   : > { %4409 = vmatmul.msk.bf16.gmra.mxu1 %vm687_vm4, %v4915_v12  ;;  %v1941_v12 = vshrl.u32 %v4587_v4, 16  ;;  %v1967_v35 = vrot.slane %v1965_v14, 4  ;;  %v4594_v14 = vld [vmem:[%s5126_s29 + $0x7c] sm:$0xf] }
  0xb9   : > { %v1929_v23 = vsel %vm5138_vm3, %v1924_v8, %v1928_v51  ;;  %v1960_v51 = vshll.u32 %v4589_v40, 16 }
  0xba   : > { %v5463_v22 = vpop.f32.mrf.mxu2  ;;  %v1943_v29 = vrot.slane %v1941_v12, 4 }
  0xbb   : > { %v1962_v20 = vrot.slane %v1960_v51, 5 }
  0xbc   : > { %v1947_v46 = vor.u32 %v1946_v30, %v1943_v29  ;;  %v4933_v30 = vld [vmem:[%s5126_s29 + $0x60] sm:$0xff] }
  0xbd   : > { %4442 = vmatmul.msk.bf16.gmra.mxu2 %vm687_vm4, %v1251_v19  ;;  %v1056_v19 = vld [vmem:[%s5126_s29 + $0x54] sm:$0xe]  ;;  %v1963_v25 = vsel %vm5138_vm3, %v1958_v60, %v1962_v20 }
  0xbe   : > { %v5473_v38 = vpop.f32.mrf.mxu0  ;;  %v4427_v21 = vrot.slane %v1056_v19, 9  ;;  %v1948_v59 = vrot.slane %v1947_v46, 4  ;;  %v1978_v19 = vshrl.u32 %v4591_v62, 16  ;;  %v4592_v46 = vld [vmem:[%s5126_s29 + $0x74] sm:$0x1] }
  0xbf   : > { %v5477_v39 = vpop.f32.mrf.mxu3 }
  0xc0   : > { %v1152_v50 = vsel %vm5312_vm7, %v4427_v21, %v1151_v15  ;;  %v1953_v8 = vsel %vm5138_vm3, %v1948_v59, %v1952_v31  ;;  %v1968_v15 = vshll.u32 %v4590_v61, 16  ;;  %v4428_v21 = vrot.slane %v1057_v13, 9  ;;  %v4593_v13 = vld [vmem:[%s5126_s29 + $0x78] sm:$0xf] }
  0xc1   : > { %v5480_v53 = vpop.f32.mrf.mxu1  ;;  %v1228_v56 = vunpack.c.l.b16 %v1152_v50  ;;  %v2172_v31 = vunpack.c.l.b16 %v1953_v8 }
  0xc2   : > { %4555 = vmatmul.msk.bf16.gmra.mxu3 %vm687_vm4, %v4931_v1  ;;  %v5484_v55 = vpop.f32.mrf.mxu2  ;;  %v2170_v1 = vunpack.c.l.b16 %v1929_v23  ;;  %v4990_v23 = vld [vmem:[%s5126_s29 + $0x68] sm:$0x1]  ;;  %v1970_v42 = vrot.slane %v1968_v15, 5  ;;  %v4991_v15 = vld [vmem:[%s5126_s29 + $0x70] sm:$0xf] }
  0xc3   : > { %v1161_v24 = vrot.slane %v4990_v23, 5  ;;  %v1058_v23 = vld [vmem:[%s5126_s29 + $0x6c] sm:$0xe] }
  0xc4   : > { %v2196_v52 = vpack.c.b16 %v2171_v47, %v2170_v1  ;;  %v1976_v1 = vrot.slane %v1974_v16, 5  ;;  %v1980_v47 = vrot.slane %v1978_v19, 4  ;;  %v1971_v51 = vor.u32 %v1970_v42, %v1967_v35  ;;  %v4992_v42 = vld [vmem:[%s5126_s29 + $0x74] sm:$0x1] }
  0xc5   : > { %v1165_v16 = vrot.slane %v4991_v15, 5 }
  0xc6   : > { %v5491_v3 = vpop.f32.mrf.mxu0 }
  0xc7   : > { %4620 = vmatmul.msk.bf16.gmra.mxu0 %vm687_vm4, %v2195_v57  ;;  %v5496_v6 = vpop.f32.mrf.mxu3  ;;  %v1229_v57 = vunpack.c.l.b16 %v1155_v48 }
  0xc8   : > { %4410 = vmatmul.msk.bf16.gmra.mxu1 %vm687_vm4, %v4916_v43 }
  0xc9   : > { %v5500_v17 = vpop.f32.mrf.mxu1  ;;  %v1253_v4 = vpack.c.b16 %v1229_v57, %v1228_v56  ;;  %v4918_v57 = vld [vmem:[%s5126_s29 + $0x60] sm:$0xff] }
  0xcd   : > { %v5507_v26 = vpop.f32.mrf.mxu2  ;;  %4443 = vmatmul.msk.bf16.gmra.mxu2 %vm687_vm4, %v1252_v11  ;;  %v1158_v11 = vrot.slane %v4989_v10, 5 }
  0xcf   : > { %v1160_v32 = vrot.slane %v1158_v11, 4  ;;  %v1159_v50 = vsel %vm5312_vm7, %v4428_v21, %v1158_v11  ;;  %v2002_v21 = vshrl.u32 %v4594_v14, 16 }
  0xd0   : > { %v5513_v44 = vpop.f32.mrf.mxu0  ;;  %v1230_v20 = vunpack.c.l.b16 %v1159_v50  ;;  %v4429_v50 = vrot.slane %v1058_v23, 9 }
  0xd1   : > { %v5515_v45 = vpop.f32.mrf.mxu3  ;;  %v1162_v48 = vsel %vm5312_vm7, %v1160_v32, %v1161_v24 }
  0xd2   : > { %4556 = vmatmul.msk.bf16.gmra.mxu3 %vm687_vm4, %v4932_v33  ;;  %v2173_v33 = vunpack.c.l.b16 %v1963_v25  ;;  %v1231_v61 = vunpack.c.l.b16 %v1162_v48  ;;  %v1167_v48 = vrot.slane %v1165_v16, 4 }
  0xd4   : > { %v2197_v27 = vpack.c.b16 %v2173_v33, %v2172_v31  ;;  %v1254_v11 = vpack.c.b16 %v1231_v61, %v1230_v20  ;;  %v1992_v31 = vshll.u32 %v4593_v13, 16  ;;  %v1998_v33 = vshll.u32 %v4594_v14, 16 }
  0xd5   : > { %v5523_v2 = vpop.f32.mrf.mxu1  ;;  %v5525_v43 = vpop.f32.mrf.mxu2  ;;  %v2004_v20 = vrot.slane %v2002_v21, 4 }
  0xd7   : > { %4621 = vmatmul.msk.bf16.gmra.mxu0 %vm687_vm4, %v2196_v52  ;;  %v1981_v52 = vor.u32 %v1980_v47, %v1976_v1  ;;  %v1168_v47 = vrot.slane %v4992_v42, 5 }
  0xd8   : > { %4411 = vmatmul.msk.bf16.gmra.mxu1 %vm687_vm4, %v4917_v54  ;;  %v5531_v5 = vpop.f32.mrf.mxu0  ;;  %v1984_v54 = vshll.u32 %v4592_v46, 16  ;;  %v4934_v46 = vld [vmem:[%s5126_s29 + $0x6c] sm:$0xff] }
  0xd9   : > { %v5538_v12 = vpop.f32.mrf.mxu3  ;;  %v1982_v8 = vrot.slane %v1981_v52, 4 }
  0xda   : > { %v1986_v25 = vrot.slane %v1984_v54, 5 }
  0xdd   : > { %4444 = vmatmul.msk.bf16.gmra.mxu2 %vm687_vm4, %v1253_v4  ;;  %v5543_v29 = vpop.f32.mrf.mxu1  ;;  %v1972_v4 = vrot.slane %v1971_v51, 4 }
  0xdf   : > { %v1977_v19 = vsel %vm5138_vm3, %v1972_v4, %v1976_v1  ;;  %v4595_v4 = vld [vmem:[%s5126_s29 + $0x80] sm:$0x1] }
  0xe0   : > { %v5546_v40 = vpop.f32.mrf.mxu2 }
  0xe2   : > { %4557 = vmatmul.msk.bf16.gmra.mxu3 %vm687_vm4, %v4933_v30  ;;  %v1989_v30 = vshrl.u32 %v4593_v13, 16  ;;  %v4919_v13 = vld [vmem:[%s5126_s29 + $0x6c] sm:$0xff] }
  0xe4   : > { %v5554_v56 = vpop.f32.mrf.mxu0  ;;  %v1991_v54 = vrot.slane %v1989_v30, 4 }
  0xe5   : > { %v5557_v59 = vpop.f32.mrf.mxu3  ;;  %v969_v60 = vpop.f32.mrf.mxu1 }
  0xe6   : > { %v970_v62 = vadd.f32 %v969_v60, %v5431_v41  ;;  %v1987_v41 = vsel %vm5138_vm3, %v1982_v8, %v1986_v25  ;;  %v2000_v60 = vrot.slane %v1998_v33, 5  ;;  %v1166_v8 = vsel %vm5312_vm7, %v4429_v50, %v1165_v16 }
  0xe7   : > { %4622 = vmatmul.msk.bf16.gmra.mxu0 %vm687_vm4, %v2197_v27  ;;  %v2174_v27 = vunpack.c.l.b16 %v1977_v19  ;;  %v2175_v51 = vunpack.c.l.b16 %v1987_v41  ;;  %v2008_v19 = vshll.u32 %v4595_v4, 16 }
  0xe8   : > { %v5561_v10 = vpop.f32.mrf.mxu2  ;;  %4412 = vmatmul.msk.bf16.gmra.mxu1 %vm687_vm4, %v4918_v57  ;;  %v1994_v57 = vrot.slane %v1992_v31, 5  ;;  %v2005_v15 = vor.u32 %v2004_v20, %v2000_v60 }
  0xe9   : > { %v2198_v25 = vpack.c.b16 %v2175_v51, %v2174_v27  ;;  %v2010_v42 = vrot.slane %v2008_v19, 5  ;;  %v4597_v27 = vld [vmem:[%s5126_s29 + $0x88] sm:$0xf]  ;;  %v4993_v51 = vld [vmem:[%s5126_s29 + $0x7c] sm:$0xf] }
  0xea   : > { %v1995_v14 = vor.u32 %v1994_v57, %v1991_v54  ;;  %v1059_v54 = vld [vmem:[%s5126_s29 + $0x78] sm:$0xe] }
  0xec   : > { %v5572_v24 = vpop.f32.mrf.mxu0  ;;  %v1996_v21 = vrot.slane %v1995_v14, 4 }
  0xed   : > { %v5574_v32 = vpop.f32.mrf.mxu3  ;;  %4445 = vmatmul.msk.bf16.gmra.mxu2 %vm687_vm4, %v1254_v11  ;;  %v971_v35 = vpop.f32.mrf.mxu1 }
  0xee   : > { %v972_v1 = vadd.f32 %v971_v35, %v5454_v9  ;;  %v1169_v9 = vsel %vm5312_vm7, %v1167_v48, %v1168_v47  ;;  %v2006_v35 = vrot.slane %v2005_v15, 4  ;;  %v4596_v47 = vld [vmem:[%s5126_s29 + $0x84] sm:$0xf]  ;;  %v4935_v15 = vld [vmem:[%s5126_s29 + $0x78] sm:$0xff] }
  0xef   : > { %v1233_v30 = vunpack.c.l.b16 %v1169_v9  ;;  %v2016_v57 = vshll.u32 %v4596_v47, 16  ;;  %v2026_v9 = vshrl.u32 %v4597_v27, 16 }
  0xf0   : > { %v1322_v52 = vpop.f32.mrf.mxu2  ;;  %v2011_v4 = vsel %vm5138_vm3, %v2006_v35, %v2010_v42 }
  0xf1   : > { %v1402_v61 = vadd.f32 %v1322_v52, %v970_v62  ;;  %v1232_v62 = vunpack.c.l.b16 %v1166_v8  ;;  %v1172_v52 = vrot.slane %v4993_v51, 5  ;;  %v2022_v8 = vshll.u32 %v4597_v27, 16 }
  0xf2   : > { %4558 = vmatmul.msk.bf16.gmra.mxu3 %vm687_vm4, %v4934_v46  ;;  %v2028_v35 = vrot.slane %v2026_v9, 4 }
  0xf3   : > { %v1255_v48 = vpack.c.b16 %v1233_v30, %v1232_v62 }
  0xf4   : > { %v2266_v11 = vpop.f32.mrf.mxu0 }
  0xf5   : > { %v1612_v41 = vpop.f32.mrf.mxu3  ;;  %v974_v23 = vpop.f32.mrf.mxu1 }
  0xf6   : > { %v1692_v31 = vadd.f32 %v1612_v41, %v1402_v61  ;;  %v975_v16 = vadd.f32 %v974_v23, %v5473_v38  ;;  %v2013_v38 = vshrl.u32 %v4596_v47, 16  ;;  %v2001_v61 = vsel %vm5138_vm3, %v1996_v21, %v2000_v60 }
  0xf7   : > { %4623 = vmatmul.msk.bf16.gmra.mxu0 %vm687_vm4, %v2198_v25  ;;  %v4994_v25 = vld [vmem:[%s5126_s29 + $0x80] sm:$0x1]  ;;  %v4430_v41 = vrot.slane %v1059_v54, 9  ;;  %v1174_v23 = vrot.slane %v1172_v52, 4  ;;  %v2176_v62 = vunpack.c.l.b16 %v2001_v61  ;;  %v2177_v60 = vunpack.c.l.b16 %v2011_v4 }
  0xf8   : > { %v1324_v33 = vpop.f32.mrf.mxu2  ;;  %4413 = vmatmul.msk.bf16.gmra.mxu1 %vm687_vm4, %v4919_v13  ;;  %v5591_v46 = vadd.f32 %v2266_v11, %v1692_v31  ;;  %v1175_v11 = vrot.slane %v4994_v25, 5  ;;  %v2015_v30 = vrot.slane %v2013_v38, 4  ;;  %v2018_v31 = vrot.slane %v2016_v57, 5  ;;  %v4920_v38 = vld [vmem:[%s5126_s29 + $0x78] sm:$0xff] }
  0xf9   : > { %v1403_v50 = vadd.f32 %v1324_v33, %v972_v1  ;;  %v2024_v21 = vrot.slane %v2022_v8, 5  ;;  %v2199_v27 = vpack.c.b16 %v2177_v60, %v2176_v62  ;;  %v4600_v62 = vld [vmem:[%s5126_s29 + $0x94] sm:$0xf]  ;;  %v4995_v60 = vld [vmem:[%s5126_s29 + $0x88] sm:$0xf] }
  0xfa   : > { %v2019_v51 = vor.u32 %v2018_v31, %v2015_v30  ;;  %v1179_v30 = vrot.slane %v4995_v60, 5  ;;  %v1060_v31 = vld [vmem:[%s5126_s29 + $0x84] sm:$0xe] }
  0xfb   : > { %v2029_v57 = vor.u32 %v2028_v35, %v2024_v21 }
  0xfc   : > { %v2268_v20 = vpop.f32.mrf.mxu0  ;;  %v2020_v25 = vrot.slane %v2019_v51, 4 }
  0xfd   : > { %v1614_v1 = vpop.f32.mrf.mxu3  ;;  %4446 = vmatmul.msk.bf16.gmra.mxu2 %vm687_vm4, %v1255_v48  ;;  %v976_v13 = vpop.f32.mrf.mxu1  ;;  %v4598_v48 = vld [vmem:[%s5126_s29 + $0x8c] sm:$0x1] }
  0xfe   : > { %v1693_v14 = vadd.f32 %v1614_v1, %v1403_v50  ;;  %v977_v19 = vadd.f32 %v976_v13, %v5491_v3  ;;  %v1173_v50 = vsel %vm5312_vm7, %v4430_v41, %v1172_v52  ;;  %v1176_v3 = vsel %vm5312_vm7, %v1174_v23, %v1175_v11 }
  0xff   : > { %v2032_v61 = vshll.u32 %v4598_v48, 16  ;;  %v1235_v8 = vunpack.c.l.b16 %v1176_v3  ;;  %v2030_v1 = vrot.slane %v2029_v57, 4  ;;  %v2050_v3 = vshrl.u32 %v4600_v62, 16  ;;  %v4936_v57 = vld [vmem:[%s5126_s29 + $0x84] sm:$0xff] }
 0x100   : > { %v1327_v33 = vpop.f32.mrf.mxu2  ;;  %v5604_v42 = vadd.f32 %v2268_v20, %v1693_v14  ;;  %v4599_v14 = vld [vmem:[%s5126_s29 + $0x90] sm:$0xf] }
 0x101   : > { %v1404_v47 = vadd.f32 %v1327_v33, %v975_v16  ;;  %v1234_v16 = vunpack.c.l.b16 %v1173_v50  ;;  %v2034_v13 = vrot.slane %v2032_v61, 5  ;;  %v2037_v33 = vshrl.u32 %v4599_v14, 16 }
 0x102   : > { %4559 = vmatmul.msk.bf16.gmra.mxu3 %vm687_vm4, %v4935_v15  ;;  %v2040_v48 = vshll.u32 %v4599_v14, 16  ;;  %v2046_v50 = vshll.u32 %v4600_v62, 16  ;;  %v4431_v61 = vrot.slane %v1060_v31, 9 }
 0x103   : > { %v1256_v23 = vpack.c.b16 %v1235_v8, %v1234_v16  ;;  %v2039_v8 = vrot.slane %v2037_v33, 4 }
 0x104   : > { %v2271_v54 = vpop.f32.mrf.mxu0 }
 0x105   : > { %v1617_v4 = vpop.f32.mrf.mxu3  ;;  %v979_v20 = vpop.f32.mrf.mxu1 }
 0x106   : > { %v1694_v9 = vadd.f32 %v1617_v4, %v1404_v47  ;;  %v980_v52 = vadd.f32 %v979_v20, %v5513_v44  ;;  %v2025_v44 = vsel %vm5138_vm3, %v2020_v25, %v2024_v21  ;;  %v2035_v47 = vsel %vm5138_vm3, %v2030_v1, %v2034_v13 }
 0x107   : > { %4624 = vmatmul.msk.bf16.gmra.mxu0 %vm687_vm4, %v2199_v27  ;;  %v4996_v27 = vld [vmem:[%s5126_s29 + $0x8c] sm:$0x1]  ;;  %v1181_v4 = vrot.slane %v1179_v30, 4  ;;  %v2178_v20 = vunpack.c.l.b16 %v2025_v44  ;;  %v2179_v16 = vunpack.c.l.b16 %v2035_v47  ;;  %v2042_v25 = vrot.slane %v2040_v48, 5  ;;  %v4921_v44 = vld [vmem:[%s5126_s29 + $0x84] sm:$0xff] }
 0x108   : > { %v1329_v11 = vpop.f32.mrf.mxu2  ;;  %4414 = vmatmul.msk.bf16.gmra.mxu1 %vm687_vm4, %v4920_v38  ;;  %v5617_v15 = vadd.f32 %v2271_v54, %v1694_v9  ;;  %v1182_v51 = vrot.slane %v4996_v27, 5  ;;  %v2052_v1 = vrot.slane %v2050_v3, 4 }
 0x109   : > { %v1405_v41 = vadd.f32 %v1329_v11, %v977_v19  ;;  %v2048_v11 = vrot.slane %v2046_v50, 5  ;;  %v2200_v62 = vpack.c.b16 %v2179_v16, %v2178_v20  ;;  %v2043_v31 = vor.u32 %v2042_v25, %v2039_v8  ;;  %v4603_v20 = vld [vmem:[%s5126_s29 + $0xa0] sm:$0xf]  ;;  %v4997_v16 = vld [vmem:[%s5126_s29 + $0x94] sm:$0xf] }
 0x10a   : > { %v1186_v8 = vrot.slane %v4997_v16, 5 }
 0x10b   : > { %v2053_v33 = vor.u32 %v2052_v1, %v2048_v11 }
 0x10c   : > { %v2273_v35 = vpop.f32.mrf.mxu0 }
 0x10d   : > { %v1619_v19 = vpop.f32.mrf.mxu3  ;;  %4447 = vmatmul.msk.bf16.gmra.mxu2 %vm687_vm4, %v1256_v23  ;;  %v981_v54 = vpop.f32.mrf.mxu1  ;;  %v4601_v23 = vld [vmem:[%s5126_s29 + $0x98] sm:$0x1] }
 0x10e   : > { %v1695_v38 = vadd.f32 %v1619_v19, %v1405_v41  ;;  %v982_v21 = vadd.f32 %v981_v54, %v5531_v5  ;;  %v1180_v41 = vsel %vm5312_vm7, %v4431_v61, %v1179_v30  ;;  %v1183_v5 = vsel %vm5312_vm7, %v1181_v4, %v1182_v51 }
 0x10f   : > { %v2056_v47 = vshll.u32 %v4601_v23, 16  ;;  %v1237_v50 = vunpack.c.l.b16 %v1183_v5  ;;  %v2044_v51 = vrot.slane %v2043_v31, 4  ;;  %v2054_v19 = vrot.slane %v2053_v33, 4  ;;  %v4937_v33 = vld [vmem:[%s5126_s29 + $0x90] sm:$0xff] }
 0x110   : > { %v1332_v9 = vpop.f32.mrf.mxu2  ;;  %v5630_v13 = vadd.f32 %v2273_v35, %v1695_v38  ;;  %v4602_v38 = vld [vmem:[%s5126_s29 + $0x9c] sm:$0xf]  ;;  %v2074_v5 = vshrl.u32 %v4603_v20, 16 }
 0x111   : > { %v1406_v14 = vadd.f32 %v1332_v9, %v980_v52  ;;  %v1236_v52 = vunpack.c.l.b16 %v1180_v41  ;;  %v2058_v54 = vrot.slane %v2056_v47, 5  ;;  %v1061_v9 = vld [vmem:[%s5126_s29 + $0x90] sm:$0xe]  ;;  %v2064_v25 = vshll.u32 %v4602_v38, 16 }
 0x112   : > { %4560 = vmatmul.msk.bf16.gmra.mxu3 %vm687_vm4, %v4936_v57  ;;  %v2070_v41 = vshll.u32 %v4603_v20, 16 }
 0x113   : > { %v1257_v4 = vpack.c.b16 %v1237_v50, %v1236_v52  ;;  %v2059_v23 = vsel %vm5138_vm3, %v2054_v19, %v2058_v54  ;;  %v2076_v19 = vrot.slane %v2074_v5, 4 }
 0x114   : > { %v2276_v60 = vpop.f32.mrf.mxu0 }
 0x115   : > { %v1622_v48 = vpop.f32.mrf.mxu3  ;;  %v984_v35 = vpop.f32.mrf.mxu1 }
 0x116   : > { %v1696_v3 = vadd.f32 %v1622_v48, %v1406_v14  ;;  %v985_v30 = vadd.f32 %v984_v35, %v5554_v56  ;;  %v2061_v56 = vshrl.u32 %v4602_v38, 16  ;;  %v2049_v14 = vsel %vm5138_vm3, %v2044_v51, %v2048_v11 }
 0x117   : > { %4625 = vmatmul.msk.bf16.gmra.mxu0 %vm687_vm4, %v2200_v62  ;;  %v4998_v62 = vld [vmem:[%s5126_s29 + $0x98] sm:$0x1]  ;;  %v4432_v48 = vrot.slane %v1061_v9, 9  ;;  %v1188_v35 = vrot.slane %v1186_v8, 4  ;;  %v2180_v52 = vunpack.c.l.b16 %v2049_v14  ;;  %v2181_v11 = vunpack.c.l.b16 %v2059_v23 }
 0x118   : > { %v1334_v27 = vpop.f32.mrf.mxu2  ;;  %4415 = vmatmul.msk.bf16.gmra.mxu1 %vm687_vm4, %v4921_v44  ;;  %v5643_v57 = vadd.f32 %v2276_v60, %v1696_v3  ;;  %v1189_v60 = vrot.slane %v4998_v62, 5  ;;  %v2063_v50 = vrot.slane %v2061_v56, 4  ;;  %v2066_v3 = vrot.slane %v2064_v25, 5  ;;  %v4922_v56 = vld [vmem:[%s5126_s29 + $0x90] sm:$0xff] }
 0x119   : > { %v1407_v61 = vadd.f32 %v1334_v27, %v982_v21  ;;  %v2072_v51 = vrot.slane %v2070_v41, 5  ;;  %v2201_v20 = vpack.c.b16 %v2181_v11, %v2180_v52  ;;  %v4606_v11 = vld [vmem:[%s5126_s29 + $0xac] sm:$0xf] }
 0x11a   : > { %v2067_v16 = vor.u32 %v2066_v3, %v2063_v50  ;;  %v1062_v50 = vld [vmem:[%s5126_s29 + $0x9c] sm:$0xe] }
 0x11b   : > { %v2077_v25 = vor.u32 %v2076_v19, %v2072_v51 }
 0x11c   : > { %v2278_v1 = vpop.f32.mrf.mxu0 }
 0x11d   : > { %v1624_v21 = vpop.f32.mrf.mxu3  ;;  %4448 = vmatmul.msk.bf16.gmra.mxu2 %vm687_vm4, %v1257_v4  ;;  %v986_v44 = vpop.f32.mrf.mxu1  ;;  %v4604_v4 = vld [vmem:[%s5126_s29 + $0xa4] sm:$0x1] }
 0x11e   : > { %v1697_v31 = vadd.f32 %v1624_v21, %v1407_v61  ;;  %v987_v47 = vadd.f32 %v986_v44, %v5572_v24  ;;  %v1187_v61 = vsel %vm5312_vm7, %v4432_v48, %v1186_v8  ;;  %v1190_v24 = vsel %vm5312_vm7, %v1188_v35, %v1189_v60  ;;  %v4605_v44 = vld [vmem:[%s5126_s29 + $0xa8] sm:$0xf]  ;;  %v4999_v35 = vld [vmem:[%s5126_s29 + $0xa0] sm:$0xf] }
 0x11f   : > { %v2080_v14 = vshll.u32 %v4604_v4, 16  ;;  %v1239_v41 = vunpack.c.l.b16 %v1190_v24  ;;  %v2068_v8 = vrot.slane %v2067_v16, 4  ;;  %v2078_v60 = vrot.slane %v2077_v25, 4 }
 0x120   : > { %v1337_v27 = vpop.f32.mrf.mxu2  ;;  %v5656_v54 = vadd.f32 %v2278_v1, %v1697_v31  ;;  %v1193_v52 = vrot.slane %v4999_v35, 5  ;;  %v2088_v19 = vshll.u32 %v4605_v44, 16  ;;  %v2098_v24 = vshrl.u32 %v4606_v11, 16 }
 0x121   : > { %v1408_v38 = vadd.f32 %v1337_v27, %v985_v30  ;;  %v1238_v30 = vunpack.c.l.b16 %v1187_v61  ;;  %v2082_v21 = vrot.slane %v2080_v14, 5  ;;  %v2073_v3 = vsel %vm5138_vm3, %v2068_v8, %v2072_v51 }
 0x122   : > { %4561 = vmatmul.msk.bf16.gmra.mxu3 %vm687_vm4, %v4937_v33  ;;  %v2085_v27 = vshrl.u32 %v4605_v44, 16  ;;  %v2094_v61 = vshll.u32 %v4606_v11, 16  ;;  %v1195_v25 = vrot.slane %v1193_v52, 4  ;;  %v2182_v51 = vunpack.c.l.b16 %v2073_v3  ;;  %v4607_v11 = vld [vmem:[%s5126_s29 + $0xb0] sm:$0x1]  ;;  %v4923_v3 = vld [vmem:[%s5126_s29 + $0x9c] sm:$0xff] }
 0x123   : > { %v1258_v48 = vpack.c.b16 %v1239_v41, %v1238_v30  ;;  %v2083_v4 = vsel %vm5138_vm3, %v2078_v60, %v2082_v21  ;;  %v2090_v8 = vrot.slane %v2088_v19, 5  ;;  %v2100_v21 = vrot.slane %v2098_v24, 4 }
 0x124   : > { %v2281_v9 = vpop.f32.mrf.mxu0  ;;  %v2183_v41 = vunpack.c.l.b16 %v2083_v4  ;;  %v2096_v60 = vrot.slane %v2094_v61, 5  ;;  %v2104_v4 = vshll.u32 %v4607_v11, 16 }
 0x125   : > { %v1627_v1 = vpop.f32.mrf.mxu3  ;;  %v989_v23 = vpop.f32.mrf.mxu1 }
 0x126   : > { %v1698_v5 = vadd.f32 %v1627_v1, %v1408_v38  ;;  %v4938_v1 = vld [vmem:[%s5126_s29 + $0x9c] sm:$0xff]  ;;  %v990_v30 = vadd.f32 %v989_v23, %v5407_v7  ;;  %v2202_v7 = vpack.c.b16 %v2183_v41, %v2182_v51  ;;  %v2106_v51 = vrot.slane %v2104_v4, 5 }
 0x127   : > { %4626 = vmatmul.msk.bf16.gmra.mxu0 %vm687_vm4, %v2201_v20  ;;  %v5000_v20 = vld [vmem:[%s5126_s29 + $0xa4] sm:$0x1] }
 0x128   : > { %v1339_v62 = vpop.f32.mrf.mxu2  ;;  %4416 = vmatmul.msk.bf16.gmra.mxu1 %vm687_vm4, %v4922_v56  ;;  %v5668_v31 = vadd.f32 %v2281_v9, %v1698_v5  ;;  %v1196_v16 = vrot.slane %v5000_v20, 5  ;;  %v4433_v56 = vrot.slane %v1062_v50, 9  ;;  %v2087_v5 = vrot.slane %v2085_v27, 4 }
 0x129   : > { %v1409_v33 = vadd.f32 %v1339_v62, %v987_v47 }
 0x12a   : > { %v2091_v23 = vor.u32 %v2090_v8, %v2087_v5 }
 0x12c   : > { %v2283_v38 = vpop.f32.mrf.mxu0 }
 0x12d   : > { %v1629_v47 = vpop.f32.mrf.mxu3  ;;  %4449 = vmatmul.msk.bf16.gmra.mxu2 %vm687_vm4, %v1258_v48  ;;  %v991_v9 = vpop.f32.mrf.mxu1  ;;  %v1194_v48 = vsel %vm5312_vm7, %v4433_v56, %v1193_v52  ;;  %v4608_v52 = vld [vmem:[%s5126_s29 + $0xb4] sm:$0xf]  ;;  %v2092_v56 = vrot.slane %v2091_v23, 4 }
 0x12e   : > { %v1699_v14 = vadd.f32 %v1629_v47, %v1409_v33  ;;  %v1197_v33 = vsel %vm5312_vm7, %v1195_v25, %v1196_v16  ;;  %v1240_v27 = vunpack.c.l.b16 %v1194_v48  ;;  %v4609_v47 = vld [vmem:[%s5126_s29 + $0xb8] sm:$0xf]  ;;  %v992_v16 = vadd.f32 %v991_v9, %v5423_v34 }
 0x12f   : > { %v1241_v19 = vunpack.c.l.b16 %v1197_v33  ;;  %v2109_v5 = vshrl.u32 %v4608_v52, 16  ;;  %v2112_v8 = vshll.u32 %v4608_v52, 16  ;;  %v2122_v48 = vshrl.u32 %v4609_v47, 16  ;;  %v1063_v33 = vld [vmem:[%s5126_s29 + $0xa8] sm:$0xe] }
 0x130   : > { %v1342_v62 = vpop.f32.mrf.mxu2  ;;  %v5681_v44 = vadd.f32 %v2283_v38, %v1699_v14  ;;  %v2101_v38 = vor.u32 %v2100_v21, %v2096_v60  ;;  %v5001_v21 = vld [vmem:[%s5126_s29 + $0xac] sm:$0xf]  ;;  %v2097_v9 = vsel %vm5138_vm3, %v2092_v56, %v2096_v60 }
 0x131   : > { %v1410_v35 = vadd.f32 %v1342_v62, %v990_v30  ;;  %v1259_v14 = vpack.c.b16 %v1241_v19, %v1240_v27  ;;  %v2118_v62 = vshll.u32 %v4609_v47, 16  ;;  %v2111_v27 = vrot.slane %v2109_v5, 4 }
 0x132   : > { %4562 = vmatmul.msk.bf16.gmra.mxu3 %vm687_vm4, %v4938_v1  ;;  %v2102_v1 = vrot.slane %v2101_v38, 4  ;;  %v2114_v19 = vrot.slane %v2112_v8, 5  ;;  %v2124_v47 = vrot.slane %v2122_v48, 4  ;;  %v4924_v48 = vld [vmem:[%s5126_s29 + $0xa8] sm:$0xff] }
 0x133   : > { %v2120_v38 = vrot.slane %v2118_v62, 5 }
 0x134   : > { %v2286_v50 = vpop.f32.mrf.mxu0  ;;  %v2107_v11 = vsel %vm5138_vm3, %v2102_v1, %v2106_v51 }
 0x135   : > { %v1632_v61 = vpop.f32.mrf.mxu3  ;;  %v994_v24 = vpop.f32.mrf.mxu1  ;;  %v2185_v56 = vunpack.c.l.b16 %v2107_v11  ;;  %v2125_v8 = vor.u32 %v2124_v47, %v2120_v38 }
 0x136   : > { %v1700_v20 = vadd.f32 %v1632_v61, %v1410_v35  ;;  %v1200_v35 = vrot.slane %v5001_v21, 5  ;;  %v4939_v61 = vld [vmem:[%s5126_s29 + $0xa8] sm:$0xff]  ;;  %v995_v60 = vadd.f32 %v994_v24, %v5443_v58 }
 0x137   : > { %4627 = vmatmul.msk.bf16.gmra.mxu0 %vm687_vm4, %v2202_v7  ;;  %v5002_v7 = vld [vmem:[%s5126_s29 + $0xb0] sm:$0x1] }
 0x138   : > { %v1344_v25 = vpop.f32.mrf.mxu2  ;;  %4417 = vmatmul.msk.bf16.gmra.mxu1 %vm687_vm4, %v4923_v3  ;;  %v5695_v30 = vadd.f32 %v2286_v50, %v1700_v20  ;;  %v1203_v23 = vrot.slane %v5002_v7, 5  ;;  %v4434_v20 = vrot.slane %v1063_v33, 9  ;;  %v1202_v52 = vrot.slane %v1200_v35, 4 }
 0x139   : > { %v1411_v41 = vadd.f32 %v1344_v25, %v992_v16  ;;  %v2184_v16 = vunpack.c.l.b16 %v2097_v9  ;;  %v4610_v25 = vld [vmem:[%s5126_s29 + $0xbc] sm:$0x1] }
 0x13a   : > { %v1204_v5 = vsel %vm5312_vm7, %v1202_v52, %v1203_v23  ;;  %v2128_v58 = vshll.u32 %v4610_v25, 16  ;;  %v4612_v52 = vld [vmem:[%s5126_s29 + $0xc4] sm:$0xf] }
 0x13b   : > { %v2203_v24 = vpack.c.b16 %v2185_v56, %v2184_v16  ;;  %v1243_v11 = vunpack.c.l.b16 %v1204_v5  ;;  %v1064_v16 = vld [vmem:[%s5126_s29 + $0xb4] sm:$0xe]  ;;  %v5004_v56 = vld [vmem:[%s5126_s29 + $0xb8] sm:$0xf]  ;;  %v2146_v5 = vshrl.u32 %v4612_v52, 16 }
 0x13c   : > { %v2288_v34 = vpop.f32.mrf.mxu0  ;;  %v1207_v25 = vrot.slane %v5004_v56, 5 }
 0x13d   : > { %v1634_v50 = vpop.f32.mrf.mxu3  ;;  %4450 = vmatmul.msk.bf16.gmra.mxu2 %vm687_vm4, %v1259_v14  ;;  %v996_v3 = vpop.f32.mrf.mxu1  ;;  %v2115_v14 = vor.u32 %v2114_v19, %v2111_v27  ;;  %v2130_v27 = vrot.slane %v2128_v58, 5  ;;  %v4611_v19 = vld [vmem:[%s5126_s29 + $0xc0] sm:$0xf]  ;;  %v5005_v58 = vld [vmem:[%s5126_s29 + $0x14] sm:$0x1] }
 0x13e   : > { %v1701_v4 = vadd.f32 %v1634_v50, %v1411_v41  ;;  %v1201_v41 = vsel %vm5312_vm7, %v4434_v20, %v1200_v35  ;;  %v2126_v35 = vrot.slane %v2125_v8, 4  ;;  %v997_v23 = vadd.f32 %v996_v3, %v5460_v28 }
 0x13f   : > { %v1242_v9 = vunpack.c.l.b16 %v1201_v41  ;;  %v2116_v50 = vrot.slane %v2115_v14, 4  ;;  %v2133_v3 = vshrl.u32 %v4611_v19, 16  ;;  %v2136_v14 = vshll.u32 %v4611_v19, 16  ;;  %v4940_v19 = vld [vmem:[%s5126_s29 + $0xb4] sm:$0xff] }
 0x140   : > { %v1347_v1 = vpop.f32.mrf.mxu2  ;;  %v5708_v51 = vadd.f32 %v2288_v34, %v1701_v4  ;;  %v5003_v4 = vld [vmem:[%s5126_s29 + $0x10] sm:$0xf]  ;;  %v2131_v28 = vsel %vm5138_vm3, %v2126_v35, %v2130_v27  ;;  %v2142_v41 = vshll.u32 %v4612_v52, 16  ;;  %v1209_v35 = vrot.slane %v1207_v25, 4  ;;  %v4631_v27 = vld [vmem:[%s5126_s29 + $0xc] sm:$0xe] }
 0x141   : > { %v1412_v21 = vadd.f32 %v1347_v1, %v995_v60  ;;  %v1260_v60 = vpack.c.b16 %v1243_v11, %v1242_v9  ;;  %v5006_v9 = vld [vmem:[%s5126_s29 + $0xbc] sm:$0x1]  ;;  %v4647_v52 = vrot.slane %v4631_v27, 9 }
 0x142   : > { %4563 = vmatmul.msk.bf16.gmra.mxu3 %vm687_vm4, %v4939_v61  ;;  %v2444_v61 = vrot.slane %v5003_v4, 5  ;;  %v2135_v4 = vrot.slane %v2133_v3, 4 }
 0x144   : > { %v2291_v62 = vpop.f32.mrf.mxu0  ;;  %v2446_v8 = vrot.slane %v2444_v61, 4 }
 0x145   : > { %v1637_v33 = vpop.f32.mrf.mxu3  ;;  %v999_v34 = vpop.f32.mrf.mxu1 }
 0x146   : > { %v1702_v7 = vadd.f32 %v1637_v33, %v1412_v21  ;;  %v2121_v21 = vsel %vm5138_vm3, %v2116_v50, %v2120_v38  ;;  %v4435_v33 = vrot.slane %v1064_v16, 9  ;;  %v1000_v56 = vadd.f32 %v999_v34, %v5480_v53 }
 0x147   : > { %4628 = vmatmul.msk.bf16.gmra.mxu0 %vm687_vm4, %v2203_v24  ;;  %v2447_v24 = vrot.slane %v5005_v58, 5  ;;  %v2186_v38 = vunpack.c.l.b16 %v2121_v21  ;;  %v2144_v16 = vrot.slane %v2142_v41, 5  ;;  %v2148_v58 = vrot.slane %v2146_v5, 4  ;;  %v4613_v21 = vld [vmem:[%s5126_s29 + $0xc8] sm:$0x1] }
 0x148   : > { %v1349_v20 = vpop.f32.mrf.mxu2  ;;  %4418 = vmatmul.msk.bf16.gmra.mxu1 %vm687_vm4, %v4924_v48  ;;  %v5724_v1 = vadd.f32 %v2291_v62, %v1702_v7  ;;  %v1210_v62 = vrot.slane %v5006_v9, 5  ;;  %v2187_v7 = vunpack.c.l.b16 %v2131_v28  ;;  %v2445_v28 = vsel %vm5312_vm7, %v4647_v52, %v2444_v61  ;;  %v4793_v41 = vld [vmem:[%s5126_s29 + $0x18] sm:$0xf] }
 0x149   : > { %v1413_v47 = vadd.f32 %v1349_v20, %v997_v23  ;;  %v2138_v20 = vrot.slane %v2136_v14, 5  ;;  %v2556_v53 = vunpack.c.l.b16 %v2445_v28  ;;  %v2152_v27 = vshll.u32 %v4613_v21, 16 }
 0x14a   : > { %v1211_v14 = vsel %vm5312_vm7, %v1209_v35, %v1210_v62  ;;  %v2204_v5 = vpack.c.b16 %v2187_v7, %v2186_v38  ;;  %v3115_v62 = vshrl.u32 %v4793_v41, 16  ;;  %v3118_v35 = vshll.u32 %v4793_v41, 16 }
 0x14c   : > { %v2293_v48 = vpop.f32.mrf.mxu0  ;;  %v3117_v21 = vrot.slane %v3115_v62, 4 }
 0x14d   : > { %v1639_v11 = vpop.f32.mrf.mxu3  ;;  %4451 = vmatmul.msk.bf16.gmra.mxu2 %vm687_vm4, %v1260_v60  ;;  %v1001_v50 = vpop.f32.mrf.mxu1  ;;  %v1208_v60 = vsel %vm5312_vm7, %v4435_v33, %v1207_v25  ;;  %v5748_v25 = vld [vmem:[%s5126_s29 + $0x1c] sm:$0xf]  ;;  %v2149_v33 = vor.u32 %v2148_v58, %v2144_v16 }
 0x14e   : > { %v1703_v23 = vadd.f32 %v1639_v11, %v1413_v47  ;;  %v2448_v47 = vsel %vm5312_vm7, %v2446_v8, %v2447_v24  ;;  %v2139_v11 = vor.u32 %v2138_v20, %v2135_v4  ;;  %v4925_v24 = vld [vmem:[%s5126_s29 + $0xb4] sm:$0xff]  ;;  %v3128_v38 = vshrl.u32 %v5748_v25, 16 }
 0x14f   : > { %v2557_v34 = vunpack.c.l.b16 %v2448_v47  ;;  %v1002_v4 = vadd.f32 %v1001_v50, %v5500_v17 }
 0x150   : > { %v1352_v9 = vpop.f32.mrf.mxu2  ;;  %v5752_v52 = vadd.f32 %v2293_v48, %v1703_v23  ;;  %v2140_v48 = vrot.slane %v2139_v11, 4  ;;  %v2150_v23 = vrot.slane %v2149_v33, 4  ;;  %v3130_v41 = vrot.slane %v3128_v38, 4 }
 0x151   : > { %v1414_v3 = vadd.f32 %v1352_v9, %v1000_v56  ;;  %v5750_v61 = vpack.c.b16 %v2557_v34, %v2556_v53  ;;  %v1244_v56 = vunpack.c.l.b16 %v1208_v60  ;;  %v1245_v9 = vunpack.c.l.b16 %v1211_v14 }
 0x152   : > { %4564 = vmatmul.msk.bf16.gmra.mxu3 %vm687_vm4, %v4940_v19  ;;  %6507 = vst [vmem:[#allocation2_spill] sm:$0xff] %v5752_v52  ;;  %v3124_v19 = vshll.u32 %v5748_v25, 16  ;;  %v2154_v60 = vrot.slane %v2152_v27, 5  ;;  %v3120_v14 = vrot.slane %v3118_v35, 5  ;;  %v2145_v17 = vsel %vm5138_vm3, %v2140_v48, %v2144_v16  ;;  %v4858_v48 = vld [vmem:[%s5126_s29 + $0x18] sm:$0xe] }
 0x153   : > { %v1261_v58 = vpack.c.b16 %v1245_v9, %v1244_v56  ;;  %v4941_v9 = vld [vmem:[%s5126_s29 + $0xc0] sm:$0xff]  ;;  %v2188_v16 = vunpack.c.l.b16 %v2145_v17 }
 0x154   : > { %v2296_v8 = vpop.f32.mrf.mxu0  ;;  %v3126_v34 = vrot.slane %v3124_v19, 5  ;;  %v2155_v50 = vsel %vm5138_vm3, %v2150_v23, %v2154_v60  ;;  %v3121_v27 = vor.u32 %v3120_v14, %v3117_v21  ;;  %v4796_v23 = vld [vmem:[%s5126_s29 + $0x24] sm:$0xf]  ;;  %v5778_v60 = vld [vmem:[%s5126_s29 + $0x28] sm:$0xf] }
 0x155   : > { %v1642_v28 = vpop.f32.mrf.mxu3  ;;  %v1004_v47 = vpop.f32.mrf.mxu1  ;;  %v2189_v35 = vunpack.c.l.b16 %v2155_v50 }
 0x156   : > { %v1704_v7 = vadd.f32 %v1642_v28, %v1414_v3  ;;  %v5763_v3 = vld [vmem:[%s5126_s29 + $0x20] sm:$0x1]  ;;  %v1005_v62 = vadd.f32 %v1004_v47, %v5523_v2  ;;  %v3122_v38 = vrot.slane %v3121_v27, 4  ;;  %v5007_v47 = vld [vmem:[%s5126_s29 + $0x1c] sm:$0xf] }
 0x157   : > { %4629 = vmatmul.msk.bf16.gmra.mxu0 %vm687_vm4, %v2204_v5  ;;  %v2451_v14 = vrot.slane %v5007_v47, 5  ;;  %v4632_v27 = vld [vmem:[%s5126_s29 + $0x18] sm:$0xe] }
 0x158   : > { %v1354_v20 = vpop.f32.mrf.mxu2  ;;  %4419 = vmatmul.msk.bf16.gmra.mxu1 %vm687_vm4, %v4925_v24  ;;  %v5760_v52 = vadd.f32 %v2296_v8, %v1704_v7  ;;  %v3131_v24 = vor.u32 %v3130_v41, %v3126_v34  ;;  %v3134_v8 = vshll.u32 %v5763_v3, 16  ;;  %v3127_v17 = vsel %vm5138_vm3, %v3122_v38, %v3126_v34 }
 0x159   : > { %v1415_v53 = vadd.f32 %v1354_v20, %v1002_v4  ;;  %v2205_v20 = vpack.c.b16 %v2189_v35, %v2188_v16  ;;  %v3789_v34 = vrot.slane %v5763_v3, 5  ;;  %v5008_v16 = vld [vmem:[%s5126_s29 + $0x20] sm:$0x1]  ;;  %v4648_v38 = vrot.slane %v4632_v27, 9 }
 0x15a   : > { %v3132_v7 = vrot.slane %v3131_v24, 4  ;;  %v3136_v4 = vrot.slane %v3134_v8, 5  ;;  %v3139_v24 = vshrl.u32 %v4796_v23, 16  ;;  %v3142_v8 = vshll.u32 %v4796_v23, 16 }
 0x15b   : > { %v2454_v35 = vrot.slane %v5008_v16, 5  ;;  %v2452_v27 = vsel %vm5312_vm7, %v4648_v38, %v2451_v14  ;;  %v4799_v38 = vld [vmem:[%s5126_s29 + $0x30] sm:$0xf] }
 0x15c   : > { %v2298_v5 = vpop.f32.mrf.mxu0  ;;  %v3137_v50 = vsel %vm5138_vm3, %v3132_v7, %v3136_v4  ;;  %v2453_v7 = vrot.slane %v2451_v14, 4  ;;  %v3144_v3 = vrot.slane %v3142_v8, 5 }
 0x15d   : > { %v1644_v11 = vpop.f32.mrf.mxu3  ;;  %4452 = vmatmul.msk.bf16.gmra.mxu2 %vm687_vm4, %v1261_v58  ;;  %v1006_v33 = vpop.f32.mrf.mxu1  ;;  %v3786_v58 = vrot.slane %v5748_v25, 5  ;;  %v3501_v23 = vunpack.c.l.b16 %v3137_v50 }
 0x15e   : > { %v1705_v56 = vadd.f32 %v1644_v11, %v1415_v53  ;;  %v4874_v11 = vrot.slane %v4858_v48, 9  ;;  %v4942_v48 = vld [vmem:[%s5126_s29 + $0x18] sm:$0xff]  ;;  %v2455_v50 = vsel %vm5312_vm7, %v2453_v7, %v2454_v35  ;;  %v5818_v7 = vld [vmem:[%s5126_s29 + $0x34] sm:$0xf] }
 0x160   : > { %v1357_v28 = vpop.f32.mrf.mxu2  ;;  %v5780_v21 = vadd.f32 %v2298_v5, %v1705_v56  ;;  %v3148_v5 = vshll.u32 %v5778_v60, 16  ;;  %v3152_v56 = vshrl.u32 %v5778_v60, 16 }
 0x161   : > { %v1416_v19 = vadd.f32 %v1357_v28, %v1005_v62  ;;  %v3788_v62 = vrot.slane %v3786_v58, 4 }
 0x162   : > { %4565 = vmatmul.msk.bf16.gmra.mxu3 %vm687_vm4, %v4941_v9  ;;  %v1007_v9 = vadd.f32 %v1006_v33, %v5543_v29  ;;  %v3141_v33 = vrot.slane %v3139_v24, 4  ;;  %v5801_v47 = vrot.slane %v3148_v5, 5 }
 0x164   : > { %v2301_v2 = vpop.f32.mrf.mxu0  ;;  %v3145_v5 = vor.u32 %v3144_v3, %v3141_v33  ;;  %v4859_v33 = vld [vmem:[%s5126_s29 + $0x24] sm:$0xe] }
 0x165   : > { %v1647_v53 = vpop.f32.mrf.mxu3  ;;  %v1009_v41 = vpop.f32.mrf.mxu1 }
 0x166   : > { %v1706_v25 = vadd.f32 %v1647_v53, %v1416_v19  ;;  %v3500_v19 = vunpack.c.l.b16 %v3127_v17  ;;  %v3154_v53 = vrot.slane %v3152_v56, 4  ;;  %v1010_v14 = vadd.f32 %v1009_v41, %v5425_v37 }
 0x167   : > { %4630 = vmatmul.msk.bf16.gmra.mxu0 %vm687_vm4, %v2205_v20  ;;  %v3787_v20 = vsel %vm5312_vm7, %v4874_v11, %v3786_v58  ;;  %v3793_v37 = vrot.slane %v5778_v60, 5 }
 0x168   : > { %v1359_v28 = vpop.f32.mrf.mxu2  ;;  %4664 = vmatmul.msk.bf16.vlgmr.msra.gmra.mxu1 %vm687_vm4, %v5750_v61  ;;  %v5799_v29 = vadd.f32 %v2301_v2, %v1706_v25  ;;  %v3790_v61 = vsel %vm5312_vm7, %v3788_v62, %v3789_v34  ;;  %v3532_v2 = vpack.c.b16 %v3501_v23, %v3500_v19  ;;  %v3898_v11 = vunpack.c.l.b16 %v3787_v20 }
 0x169   : > { %v1417_v4 = vadd.f32 %v1359_v28, %v1007_v9  ;;  %v5810_v9 = vld [vmem:[%s5126_s29 + $0x2c] sm:$0x1]  ;;  %v3899_v8 = vunpack.c.l.b16 %v3790_v61  ;;  %v3155_v56 = vor.u32 %v3154_v53, %v5801_v47  ;;  %v2558_v62 = vunpack.c.l.b16 %v2452_v27 }
 0x16a   : > { %v2559_v34 = vunpack.c.l.b16 %v2455_v50  ;;  %v3158_v16 = vshll.u32 %v5810_v9, 16  ;;  %v3163_v53 = vshrl.u32 %v4799_v38, 16  ;;  %v3166_v61 = vshll.u32 %v4799_v38, 16 }
 0x16b   : > { %v3930_v19 = vpack.c.b16 %v3899_v8, %v3898_v11  ;;  %v3172_v27 = vshll.u32 %v5818_v7, 16  ;;  %v3176_v50 = vshrl.u32 %v5818_v7, 16  ;;  %v5009_v11 = vld [vmem:[%s5126_s29 + $0x28] sm:$0xf]  ;;  %v3796_v60 = vrot.slane %v5810_v9, 5 }
 0x16c   : > { %v2303_v17 = vpop.f32.mrf.mxu0  ;;  %v2589_v23 = vpack.c.b16 %v2559_v34, %v2558_v62  ;;  %v3160_v20 = vrot.slane %v3158_v16, 5  ;;  %v2458_v8 = vrot.slane %v5009_v11, 5  ;;  %v4875_v62 = vrot.slane %v4859_v33, 9  ;;  %v4943_v11 = vld [vmem:[%s5126_s29 + $0x24] sm:$0xff] }
 0x16d   : > { %v1649_v58 = vpop.f32.mrf.mxu3  ;;  %4777 = vmatmul.msk.bf16.vlgmr.msra.gmra.mxu2 %vm687_vm4, %v4942_v48  ;;  %v1011_v24 = vpop.f32.mrf.mxu1  ;;  %v3156_v48 = vrot.slane %v3155_v56, 4  ;;  %v3168_v33 = vrot.slane %v3166_v61, 5  ;;  %v5839_v9 = vrot.slane %v3172_v27, 5 }
 0x16e   : > { %v1707_v25 = vadd.f32 %v1649_v58, %v1417_v4  ;;  %v3146_v4 = vrot.slane %v3145_v5, 4  ;;  %v5010_v5 = vld [vmem:[%s5126_s29 + $0x2c] sm:$0x1] }
 0x16f   : > { %v2461_v56 = vrot.slane %v5010_v5, 5  ;;  %v3161_v16 = vsel %vm5138_vm3, %v3156_v48, %v3160_v20  ;;  %v3794_v20 = vsel %vm5312_vm7, %v4875_v62, %v3793_v37 }
 0x170   : > { %v1362_v35 = vpop.f32.mrf.mxu2  ;;  %v5823_v41 = vadd.f32 %v2303_v17, %v1707_v25  ;;  %v4633_v17 = vld [vmem:[%s5126_s29 + $0x24] sm:$0xe]  ;;  %v1012_v25 = vadd.f32 %v1011_v24, %v5446_v63  ;;  %v3151_v34 = vsel %vm5138_vm3, %v3146_v4, %v5801_v47  ;;  %v2460_v24 = vrot.slane %v2458_v8, 4 }
 0x171   : > { %v1418_v28 = vadd.f32 %v1362_v35, %v1010_v14  ;;  %v3795_v35 = vrot.slane %v3793_v37, 4  ;;  %v4649_v63 = vrot.slane %v4633_v17, 9  ;;  %v3502_v47 = vunpack.c.l.b16 %v3151_v34 }
 0x172   : > { %4842 = vmatmul.msk.bf16.vlgmr.msra.gmra.mxu3 %vm687_vm4, %v3532_v2  ;;  %6508 = vst [vmem:[#allocation3_spill] sm:$0xff] %v5823_v41  ;;  %v3503_v4 = vunpack.c.l.b16 %v3161_v16  ;;  %v5845_v41 = vld [vmem:[%s5126_s29 + $0x38] sm:$0x1] }
 0x173   : > { %v3182_v37 = vshll.u32 %v5845_v41, 16 }
 0x174   : > { %v2306_v3 = vpop.f32.mrf.mxu0  ;;  %v3533_v17 = vpack.c.b16 %v3503_v4, %v3502_v47  ;;  %v5011_v4 = vld [vmem:[%s5126_s29 + $0x34] sm:$0xf] }
 0x175   : > { %v1652_v58 = vpop.f32.mrf.mxu3  ;;  %v1014_v2 = vpop.f32.mrf.mxu1 }
 0x176   : > { %v1708_v14 = vadd.f32 %v1652_v58, %v1418_v28  ;;  %v3165_v28 = vrot.slane %v3163_v53, 4  ;;  %v3178_v58 = vrot.slane %v3176_v50, 4  ;;  %v2462_v50 = vsel %vm5312_vm7, %v2460_v24, %v2461_v56  ;;  %v5864_v24 = vld [vmem:[%s5126_s29 + $0x40] sm:$0xf] }
 0x177   : > { %4891 = vmatmul.msk.bf16.vlgmr.msra.gmra.mxu0 %vm687_vm4, %v3930_v19 }
 0x178   : > { %v1364_v38 = vpop.f32.mrf.mxu2  ;;  %4665 = vmatmul.msk.bf16.gmra.mxu1 %vm687_vm4, %v2589_v23  ;;  %v5842_v5 = vadd.f32 %v2306_v3, %v1708_v14  ;;  %v3797_v23 = vsel %vm5312_vm7, %v3795_v35, %v3796_v60  ;;  %v3169_v53 = vor.u32 %v3168_v33, %v3165_v28  ;;  %v2459_v3 = vsel %vm5312_vm7, %v4649_v63, %v2458_v8 }
 0x179   : > { %v1419_v19 = vadd.f32 %v1364_v38, %v1012_v25  ;;  %v3179_v14 = vor.u32 %v3178_v58, %v5839_v9  ;;  %v1015_v60 = vadd.f32 %v1014_v2, %v5463_v22  ;;  %v3900_v25 = vunpack.c.l.b16 %v3794_v20  ;;  %v4860_v58 = vld [vmem:[%s5126_s29 + $0x30] sm:$0xe] }
 0x17a   : > { %v3901_v34 = vunpack.c.l.b16 %v3797_v23  ;;  %v2560_v35 = vunpack.c.l.b16 %v2459_v3  ;;  %v2561_v8 = vunpack.c.l.b16 %v2462_v50  ;;  %v3170_v28 = vrot.slane %v3169_v53, 4 }
 0x17b   : > { %v3180_v56 = vrot.slane %v3179_v14, 4  ;;  %v3184_v33 = vrot.slane %v3182_v37, 5  ;;  %v3800_v63 = vrot.slane %v5818_v7, 5  ;;  %v2465_v20 = vrot.slane %v5011_v4, 5  ;;  %v4634_v7 = vld [vmem:[%s5126_s29 + $0x30] sm:$0xe] }
 0x17c   : > { %v2308_v48 = vpop.f32.mrf.mxu0  ;;  %v2590_v47 = vpack.c.b16 %v2561_v8, %v2560_v35  ;;  %v4876_v50 = vrot.slane %v4860_v58, 9 }
 0x17d   : > { %v1654_v61 = vpop.f32.mrf.mxu3  ;;  %4778 = vmatmul.msk.bf16.gmra.mxu2 %vm687_vm4, %v4943_v11  ;;  %v1016_v27 = vpop.f32.mrf.mxu1  ;;  %v4802_v11 = vld [vmem:[%s5126_s29 + $0x3c] sm:$0xf]  ;;  %v3185_v3 = vsel %vm5138_vm3, %v3180_v56, %v3184_v33  ;;  %v4944_v33 = vld [vmem:[%s5126_s29 + $0x30] sm:$0xff] }
 0x17e   : > { %v1709_v62 = vadd.f32 %v1654_v61, %v1419_v19  ;;  %v3931_v19 = vpack.c.b16 %v3901_v34, %v3900_v25  ;;  %v3175_v61 = vsel %vm5138_vm3, %v3170_v28, %v5839_v9  ;;  %v3187_v14 = vshrl.u32 %v4802_v11, 16  ;;  %v5012_v34 = vld [vmem:[%s5126_s29 + $0x38] sm:$0x1] }
 0x17f   : > { %v3802_v25 = vrot.slane %v3800_v63, 4  ;;  %v3803_v9 = vrot.slane %v5845_v41, 5  ;;  %v3504_v8 = vunpack.c.l.b16 %v3175_v61  ;;  %v2467_v28 = vrot.slane %v2465_v20, 4 }
 0x180   : > { %v1367_v16 = vpop.f32.mrf.mxu2  ;;  %v5866_v22 = vadd.f32 %v2308_v48, %v1709_v62  ;;  %v3190_v48 = vshll.u32 %v4802_v11, 16  ;;  %v3196_v62 = vshll.u32 %v5864_v24, 16  ;;  %v3505_v58 = vunpack.c.l.b16 %v3185_v3 }
 0x181   : > { %v1420_v38 = vadd.f32 %v1367_v16, %v1015_v60  ;;  %v1017_v60 = vadd.f32 %v1016_v27, %v5484_v55  ;;  %v2468_v16 = vrot.slane %v5012_v34, 5  ;;  %v3801_v11 = vsel %vm5312_vm7, %v4876_v50, %v3800_v63 }
 0x182   : > { %4843 = vmatmul.msk.bf16.gmra.mxu3 %vm687_vm4, %v3533_v17  ;;  %v3200_v17 = vshrl.u32 %v5864_v24, 16  ;;  %v3189_v55 = vrot.slane %v3187_v14, 4  ;;  %v3192_v27 = vrot.slane %v3190_v48, 5  ;;  %v5887_v41 = vrot.slane %v3196_v62, 5 }
 0x183   : > { %v2469_v3 = vsel %vm5312_vm7, %v2467_v28, %v2468_v16  ;;  %v3902_v50 = vunpack.c.l.b16 %v3801_v11  ;;  %v4861_v11 = vld [vmem:[%s5126_s29 + $0x3c] sm:$0xe] }
 0x184   : > { %v2311_v2 = vpop.f32.mrf.mxu0  ;;  %v3202_v4 = vrot.slane %v3200_v17, 4  ;;  %v3193_v62 = vor.u32 %v3192_v27, %v3189_v55 }
 0x185   : > { %v1657_v23 = vpop.f32.mrf.mxu3  ;;  %v1019_v53 = vpop.f32.mrf.mxu1 }
 0x186   : > { %v1710_v37 = vadd.f32 %v1657_v23, %v1420_v38  ;;  %v4650_v38 = vrot.slane %v4634_v7, 9  ;;  %v5896_v7 = vld [vmem:[%s5126_s29 + $0x44] sm:$0x1]  ;;  %v3203_v17 = vor.u32 %v3202_v4, %v5887_v41  ;;  %v3194_v28 = vrot.slane %v3193_v62, 4 }
 0x187   : > { %4892 = vmatmul.msk.bf16.gmra.mxu0 %vm687_vm4, %v3931_v19 }
 0x188   : > { %v1369_v35 = vpop.f32.mrf.mxu2  ;;  %4666 = vmatmul.msk.bf16.gmra.mxu1 %vm687_vm4, %v2590_v47  ;;  %v5885_v19 = vadd.f32 %v2311_v2, %v1710_v37  ;;  %v3804_v47 = vsel %vm5312_vm7, %v3802_v25, %v3803_v9  ;;  %v2466_v61 = vsel %vm5312_vm7, %v4650_v38, %v2465_v20  ;;  %v3534_v2 = vpack.c.b16 %v3505_v58, %v3504_v8  ;;  %v5904_v38 = vld [vmem:[%s5126_s29 + $0x4c] sm:$0xf] }
 0x189   : > { %v1421_v56 = vadd.f32 %v1369_v35, %v1017_v60  ;;  %v3903_v48 = vunpack.c.l.b16 %v3804_v47  ;;  %v1020_v20 = vadd.f32 %v1019_v53, %v5507_v26  ;;  %v2562_v60 = vunpack.c.l.b16 %v2466_v61  ;;  %v4805_v35 = vld [vmem:[%s5126_s29 + $0x48] sm:$0xf] }
 0x18a   : > { %v2563_v25 = vunpack.c.l.b16 %v2469_v3  ;;  %v3206_v9 = vshll.u32 %v5896_v7, 16  ;;  %v3807_v26 = vrot.slane %v5864_v24, 5  ;;  %v3211_v27 = vshrl.u32 %v4805_v35, 16 }
 0x18b   : > { %v3932_v8 = vpack.c.b16 %v3903_v48, %v3902_v50  ;;  %v3214_v4 = vshll.u32 %v4805_v35, 16  ;;  %v3220_v47 = vshll.u32 %v5904_v38, 16  ;;  %v3224_v61 = vshrl.u32 %v5904_v38, 16  ;;  %v5014_v48 = vld [vmem:[%s5126_s29 + $0x44] sm:$0x1] }
 0x18c   : > { %v2313_v23 = vpop.f32.mrf.mxu0  ;;  %v3208_v58 = vrot.slane %v3206_v9, 5  ;;  %v2475_v62 = vrot.slane %v5014_v48, 5  ;;  %v3810_v24 = vrot.slane %v5896_v7, 5  ;;  %v3809_v9 = vrot.slane %v3807_v26, 4  ;;  %v5931_v48 = vld [vmem:[%s5126_s29 + $0x50] sm:$0x1] }
 0x18d   : > { %v1659_v63 = vpop.f32.mrf.mxu3  ;;  %4779 = vmatmul.msk.bf16.gmra.mxu2 %vm687_vm4, %v4944_v33  ;;  %v1021_v14 = vpop.f32.mrf.mxu1  ;;  %v2591_v33 = vpack.c.b16 %v2563_v25, %v2562_v60  ;;  %v3199_v60 = vsel %vm5138_vm3, %v3194_v28, %v5887_v41  ;;  %v3216_v35 = vrot.slane %v3214_v4, 5  ;;  %v5925_v7 = vrot.slane %v3220_v47, 5 }
 0x18e   : > { %v1711_v37 = vadd.f32 %v1659_v63, %v1421_v56  ;;  %v3204_v56 = vrot.slane %v3203_v17, 4  ;;  %v3506_v41 = vunpack.c.l.b16 %v3199_v60 }
 0x190   : > { %v1372_v34 = vpop.f32.mrf.mxu2  ;;  %v5909_v53 = vadd.f32 %v2313_v23, %v1711_v37  ;;  %v4635_v23 = vld [vmem:[%s5126_s29 + $0x3c] sm:$0xe]  ;;  %v1022_v37 = vadd.f32 %v1021_v14, %v5525_v43  ;;  %v3209_v25 = vsel %vm5138_vm3, %v3204_v56, %v3208_v58 }
 0x191   : > { %v1422_v16 = vadd.f32 %v1372_v34, %v1020_v20  ;;  %v4877_v20 = vrot.slane %v4861_v11, 9  ;;  %v3226_v11 = vrot.slane %v3224_v61, 4  ;;  %v4651_v43 = vrot.slane %v4635_v23, 9 }
 0x192   : > { %4844 = vmatmul.msk.bf16.gmra.mxu3 %vm687_vm4, %v3534_v2  ;;  %v5013_v2 = vld [vmem:[%s5126_s29 + $0x40] sm:$0xf]  ;;  %v3507_v28 = vunpack.c.l.b16 %v3209_v25 }
 0x193   : > { %v2472_v50 = vrot.slane %v5013_v2, 5  ;;  %v3808_v58 = vsel %vm5312_vm7, %v4877_v20, %v3807_v26  ;;  %v3230_v26 = vshll.u32 %v5931_v48, 16 }
 0x194   : > { %v2316_v55 = vpop.f32.mrf.mxu0  ;;  %v3535_v23 = vpack.c.b16 %v3507_v28, %v3506_v41  ;;  %v5015_v28 = vld [vmem:[%s5126_s29 + $0x4c] sm:$0xf] }
 0x195   : > { %v1662_v3 = vpop.f32.mrf.mxu3  ;;  %v1024_v63 = vpop.f32.mrf.mxu1  ;;  %v2474_v14 = vrot.slane %v2472_v50, 4 }
 0x196   : > { %v1712_v17 = vadd.f32 %v1662_v3, %v1422_v16  ;;  %v3213_v16 = vrot.slane %v3211_v27, 4  ;;  %v4945_v3 = vld [vmem:[%s5126_s29 + $0x3c] sm:$0xff] }
 0x197   : > { %4893 = vmatmul.msk.bf16.gmra.mxu0 %vm687_vm4, %v3932_v8  ;;  %v2476_v61 = vsel %vm5312_vm7, %v2474_v14, %v2475_v62  ;;  %v5950_v14 = vld [vmem:[%s5126_s29 + $0x58] sm:$0xf] }
 0x198   : > { %v1374_v34 = vpop.f32.mrf.mxu2  ;;  %4667 = vmatmul.msk.bf16.gmra.mxu1 %vm687_vm4, %v2591_v33  ;;  %v5928_v2 = vadd.f32 %v2316_v55, %v1712_v17  ;;  %v3811_v33 = vsel %vm5312_vm7, %v3809_v9, %v3810_v24  ;;  %v3217_v27 = vor.u32 %v3216_v35, %v3213_v16  ;;  %v2473_v55 = vsel %vm5312_vm7, %v4651_v43, %v2472_v50 }
 0x199   : > { %v1423_v8 = vadd.f32 %v1374_v34, %v1022_v37  ;;  %v3227_v17 = vor.u32 %v3226_v11, %v5925_v7  ;;  %v1025_v24 = vadd.f32 %v1024_v63, %v5546_v40  ;;  %v3904_v37 = vunpack.c.l.b16 %v3808_v58  ;;  %v4862_v11 = vld [vmem:[%s5126_s29 + $0x48] sm:$0xe] }
 0x19a   : > { %v3905_v60 = vunpack.c.l.b16 %v3811_v33  ;;  %v2564_v9 = vunpack.c.l.b16 %v2473_v55  ;;  %v2565_v50 = vunpack.c.l.b16 %v2476_v61  ;;  %v3218_v16 = vrot.slane %v3217_v27, 4 }
 0x19b   : > { %v3228_v62 = vrot.slane %v3227_v17, 4  ;;  %v3232_v35 = vrot.slane %v3230_v26, 5  ;;  %v3814_v43 = vrot.slane %v5904_v38, 5  ;;  %v2479_v58 = vrot.slane %v5015_v28, 5  ;;  %v4636_v38 = vld [vmem:[%s5126_s29 + $0x48] sm:$0xe] }
 0x19c   : > { %v2318_v56 = vpop.f32.mrf.mxu0  ;;  %v2592_v41 = vpack.c.b16 %v2565_v50, %v2564_v9  ;;  %v4878_v61 = vrot.slane %v4862_v11, 9 }
 0x19d   : > { %v1664_v4 = vpop.f32.mrf.mxu3  ;;  %4780 = vmatmul.msk.bf16.gmra.mxu2 %vm687_vm4, %v4945_v3  ;;  %v1026_v47 = vpop.f32.mrf.mxu1  ;;  %v4808_v3 = vld [vmem:[%s5126_s29 + $0x54] sm:$0xf]  ;;  %v3233_v55 = vsel %vm5138_vm3, %v3228_v62, %v3232_v35  ;;  %v4946_v35 = vld [vmem:[%s5126_s29 + $0x48] sm:$0xff] }
 0x19e   : > { %v1713_v20 = vadd.f32 %v1664_v4, %v1423_v8  ;;  %v3933_v8 = vpack.c.b16 %v3905_v60, %v3904_v37  ;;  %v3223_v4 = vsel %vm5138_vm3, %v3218_v16, %v5925_v7  ;;  %v3235_v17 = vshrl.u32 %v4808_v3, 16  ;;  %v5016_v60 = vld [vmem:[%s5126_s29 + $0x50] sm:$0x1] }
 0x19f   : > { %v3816_v37 = vrot.slane %v3814_v43, 4  ;;  %v3817_v7 = vrot.slane %v5931_v48, 5  ;;  %v3508_v50 = vunpack.c.l.b16 %v3223_v4  ;;  %v2481_v16 = vrot.slane %v2479_v58, 4 }
 0x1a0   : > { %v1377_v25 = vpop.f32.mrf.mxu2  ;;  %v5952_v40 = vadd.f32 %v2318_v56, %v1713_v20  ;;  %v3238_v56 = vshll.u32 %v4808_v3, 16  ;;  %v3244_v20 = vshll.u32 %v5950_v14, 16  ;;  %v3509_v11 = vunpack.c.l.b16 %v3233_v55 }
 0x1a1   : > { %v1424_v34 = vadd.f32 %v1377_v25, %v1025_v24  ;;  %v1027_v24 = vadd.f32 %v1026_v47, %v5561_v10  ;;  %v2482_v25 = vrot.slane %v5016_v60, 5  ;;  %v3815_v3 = vsel %vm5312_vm7, %v4878_v61, %v3814_v43 }
 0x1a2   : > { %4845 = vmatmul.msk.bf16.gmra.mxu3 %vm687_vm4, %v3535_v23  ;;  %v3248_v23 = vshrl.u32 %v5950_v14, 16  ;;  %v3237_v10 = vrot.slane %v3235_v17, 4  ;;  %v3240_v47 = vrot.slane %v3238_v56, 5  ;;  %v5973_v48 = vrot.slane %v3244_v20, 5 }
 0x1a3   : > { %v2483_v55 = vsel %vm5312_vm7, %v2481_v16, %v2482_v25  ;;  %v3906_v61 = vunpack.c.l.b16 %v3815_v3  ;;  %v4863_v3 = vld [vmem:[%s5126_s29 + $0x54] sm:$0xe] }
 0x1a4   : > { %v2321_v63 = vpop.f32.mrf.mxu0  ;;  %v3250_v28 = vrot.slane %v3248_v23, 4  ;;  %v3241_v20 = vor.u32 %v3240_v47, %v3237_v10 }
 0x1a5   : > { %v1667_v33 = vpop.f32.mrf.mxu3  ;;  %v1029_v27 = vpop.f32.mrf.mxu1 }
 0x1a6   : > { %v1714_v26 = vadd.f32 %v1667_v33, %v1424_v34  ;;  %v4652_v34 = vrot.slane %v4636_v38, 9  ;;  %v5982_v38 = vld [vmem:[%s5126_s29 + $0x5c] sm:$0x1]  ;;  %v3251_v23 = vor.u32 %v3250_v28, %v5973_v48  ;;  %v3242_v16 = vrot.slane %v3241_v20, 4 }
 0x1a7   : > { %4894 = vmatmul.msk.bf16.gmra.mxu0 %vm687_vm4, %v3933_v8 }
 0x1a8   : > { %v1379_v9 = vpop.f32.mrf.mxu2  ;;  %4668 = vmatmul.msk.bf16.gmra.mxu1 %vm687_vm4, %v2592_v41  ;;  %v5971_v8 = vadd.f32 %v2321_v63, %v1714_v26  ;;  %v3818_v41 = vsel %vm5312_vm7, %v3816_v37, %v3817_v7  ;;  %v2480_v4 = vsel %vm5312_vm7, %v4652_v34, %v2479_v58  ;;  %v3536_v63 = vpack.c.b16 %v3509_v11, %v3508_v50  ;;  %v5990_v34 = vld [vmem:[%s5126_s29 + $0x64] sm:$0xf] }
 0x1a9   : > { %v1425_v62 = vadd.f32 %v1379_v9, %v1027_v24  ;;  %v3907_v56 = vunpack.c.l.b16 %v3818_v41  ;;  %v1030_v58 = vadd.f32 %v1029_v27, %v5437_v49  ;;  %v2566_v24 = vunpack.c.l.b16 %v2480_v4  ;;  %v4811_v9 = vld [vmem:[%s5126_s29 + $0x60] sm:$0xf] }
 0x1aa   : > { %v2567_v37 = vunpack.c.l.b16 %v2483_v55  ;;  %v3254_v7 = vshll.u32 %v5982_v38, 16  ;;  %v3821_v49 = vrot.slane %v5950_v14, 5  ;;  %v3259_v47 = vshrl.u32 %v4811_v9, 16 }
 0x1ab   : > { %v3934_v50 = vpack.c.b16 %v3907_v56, %v3906_v61  ;;  %v3262_v28 = vshll.u32 %v4811_v9, 16  ;;  %v3268_v41 = vshll.u32 %v5990_v34, 16  ;;  %v3272_v4 = vshrl.u32 %v5990_v34, 16  ;;  %v5018_v56 = vld [vmem:[%s5126_s29 + $0x5c] sm:$0x1] }
 0x1ac   : > { %v2323_v33 = vpop.f32.mrf.mxu0  ;;  %v3256_v11 = vrot.slane %v3254_v7, 5  ;;  %v2489_v20 = vrot.slane %v5018_v56, 5  ;;  %v3824_v14 = vrot.slane %v5982_v38, 5  ;;  %v3823_v7 = vrot.slane %v3821_v49, 4 }
 0x1ad   : > { %v1669_v43 = vpop.f32.mrf.mxu3  ;;  %4781 = vmatmul.msk.bf16.gmra.mxu2 %vm687_vm4, %v4946_v35  ;;  %v1031_v17 = vpop.f32.mrf.mxu1  ;;  %v2593_v35 = vpack.c.b16 %v2567_v37, %v2566_v24  ;;  %v3247_v24 = vsel %vm5138_vm3, %v3242_v16, %v5973_v48  ;;  %v3264_v9 = vrot.slane %v3262_v28, 5  ;;  %v3270_v38 = vrot.slane %v3268_v41, 5  ;;  %v6015_v16 = vld [vmem:[%s5126_s29 + $0x68] sm:$0x1] }
 0x1ae   : > { %v1715_v26 = vadd.f32 %v1669_v43, %v1425_v62  ;;  %v3252_v62 = vrot.slane %v3251_v23, 4  ;;  %v3510_v56 = vunpack.c.l.b16 %v3247_v24 }
 0x1b0   : > { %v1382_v60 = vpop.f32.mrf.mxu2  ;;  %v5995_v27 = vadd.f32 %v2323_v33, %v1715_v26  ;;  %v4637_v33 = vld [vmem:[%s5126_s29 + $0x54] sm:$0xe]  ;;  %v1032_v26 = vadd.f32 %v1031_v17, %v5456_v0  ;;  %v3257_v37 = vsel %vm5138_vm3, %v3252_v62, %v3256_v11 }
 0x1b1   : > { %v1426_v25 = vadd.f32 %v1382_v60, %v1030_v58  ;;  %v4879_v58 = vrot.slane %v4863_v3, 9  ;;  %v3274_v3 = vrot.slane %v3272_v4, 4  ;;  %v3511_v48 = vunpack.c.l.b16 %v3257_v37 }
 0x1b2   : > { %4846 = vmatmul.msk.bf16.gmra.mxu3 %vm687_vm4, %v3536_v63  ;;  %6509 = vst [vmem:[#allocation4_spill] sm:$0xff] %v5995_v27  ;;  %v5017_v63 = vld [vmem:[%s5126_s29 + $0x58] sm:$0xf] }
 0x1b3   : > { %v2486_v61 = vrot.slane %v5017_v63, 5  ;;  %v4653_v63 = vrot.slane %v4637_v33, 9  ;;  %v3822_v62 = vsel %vm5312_vm7, %v4879_v58, %v3821_v49  ;;  %v3275_v4 = vor.u32 %v3274_v3, %v3270_v38 }
 0x1b4   : > { %v2326_v10 = vpop.f32.mrf.mxu0  ;;  %v3537_v58 = vpack.c.b16 %v3511_v48, %v3510_v56  ;;  %v3908_v33 = vunpack.c.l.b16 %v3822_v62 }
 0x1b5   : > { %v1672_v55 = vpop.f32.mrf.mxu3  ;;  %v1034_v43 = vpop.f32.mrf.mxu1  ;;  %v2488_v0 = vrot.slane %v2486_v61, 4 }
 0x1b6   : > { %v1716_v23 = vadd.f32 %v1672_v55, %v1426_v25  ;;  %v3261_v25 = vrot.slane %v3259_v47, 4 }
 0x1b7   : > { %4895 = vmatmul.msk.bf16.gmra.mxu0 %vm687_vm4, %v3934_v50  ;;  %v4947_v50 = vld [vmem:[%s5126_s29 + $0x54] sm:$0xff]  ;;  %v2490_v41 = vsel %vm5312_vm7, %v2488_v0, %v2489_v20  ;;  %v3828_v0 = vrot.slane %v5990_v34, 5  ;;  %v5020_v34 = vld [vmem:[%s5126_s29 + $0x68] sm:$0x1] }
 0x1b8   : > { %v1384_v60 = vpop.f32.mrf.mxu2  ;;  %4669 = vmatmul.msk.bf16.gmra.mxu1 %vm687_vm4, %v2593_v35  ;;  %v6012_v17 = vadd.f32 %v2326_v10, %v1716_v23  ;;  %v3825_v35 = vsel %vm5312_vm7, %v3823_v7, %v3824_v14  ;;  %v3265_v11 = vor.u32 %v3264_v9, %v3261_v25  ;;  %v2487_v10 = vsel %vm5312_vm7, %v4653_v63, %v2486_v61  ;;  %v4814_v9 = vld [vmem:[%s5126_s29 + $0x6c] sm:$0xf]  ;;  %v4864_v63 = vld [vmem:[%s5126_s29 + $0x60] sm:$0xe] }
 0x1b9   : > { %v1427_v55 = vadd.f32 %v1384_v60, %v1032_v26  ;;  %v3278_v23 = vshll.u32 %v6015_v16, 16  ;;  %v1035_v14 = vadd.f32 %v1034_v43, %v5477_v39  ;;  %v3909_v26 = vunpack.c.l.b16 %v3825_v35 }
 0x1ba   : > { %v2568_v37 = vunpack.c.l.b16 %v2487_v10  ;;  %v2569_v7 = vunpack.c.l.b16 %v2490_v41  ;;  %v3266_v61 = vrot.slane %v3265_v11, 4  ;;  %v3276_v25 = vrot.slane %v3275_v4, 4  ;;  %v5019_v11 = vld [vmem:[%s5126_s29 + $0x64] sm:$0xf] }
 0x1bb   : > { %v3280_v20 = vrot.slane %v3278_v23, 5  ;;  %v3935_v3 = vpack.c.b16 %v3909_v26, %v3908_v33  ;;  %v3283_v10 = vshrl.u32 %v4814_v9, 16  ;;  %v3286_v4 = vshll.u32 %v4814_v9, 16 }
 0x1bc   : > { %v2328_v27 = vpop.f32.mrf.mxu0  ;;  %v2594_v43 = vpack.c.b16 %v2569_v7, %v2568_v37  ;;  %v3271_v62 = vsel %vm5138_vm3, %v3266_v61, %v3270_v38  ;;  %v3830_v37 = vrot.slane %v3828_v0, 4  ;;  %v3831_v7 = vrot.slane %v6015_v16, 5  ;;  %v4948_v61 = vld [vmem:[%s5126_s29 + $0x60] sm:$0xff] }
 0x1bd   : > { %v1674_v47 = vpop.f32.mrf.mxu3  ;;  %4782 = vmatmul.msk.bf16.gmra.mxu2 %vm687_vm4, %v4947_v50  ;;  %v1036_v28 = vpop.f32.mrf.mxu1  ;;  %v3281_v35 = vsel %vm5138_vm3, %v3276_v25, %v3280_v20  ;;  %v3512_v26 = vunpack.c.l.b16 %v3271_v62 }
 0x1be   : > { %v1717_v49 = vadd.f32 %v1674_v47, %v1427_v55  ;;  %v6031_v55 = vld [vmem:[%s5126_s29 + $0x70] sm:$0xf]  ;;  %v2493_v47 = vrot.slane %v5019_v11, 5  ;;  %v1037_v38 = vadd.f32 %v1036_v28, %v5496_v6  ;;  %v6056_v28 = vld [vmem:[%s5126_s29 + $0x74] sm:$0x1]  ;;  %v3832_v16 = vsel %vm5312_vm7, %v3830_v37, %v3831_v7 }
 0x1bf   : > { %v3292_v23 = vshll.u32 %v6031_v55, 16 }
 0x1c0   : > { %v1387_v24 = vpop.f32.mrf.mxu2  ;;  %v6033_v50 = vadd.f32 %v2328_v27, %v1717_v49  ;;  %v4638_v27 = vld [vmem:[%s5126_s29 + $0x60] sm:$0xe]  ;;  %v3296_v49 = vshrl.u32 %v6031_v55, 16  ;;  %v2495_v20 = vrot.slane %v2493_v47, 4 }
 0x1c1   : > { %v1428_v60 = vadd.f32 %v1387_v24, %v1035_v14  ;;  %v4880_v14 = vrot.slane %v4864_v63, 9  ;;  %v3513_v24 = vunpack.c.l.b16 %v3281_v35  ;;  %v4654_v25 = vrot.slane %v4638_v27, 9 }
 0x1c2   : > { %4847 = vmatmul.msk.bf16.gmra.mxu3 %vm687_vm4, %v3537_v58  ;;  %v2496_v58 = vrot.slane %v5020_v34, 5  ;;  %v6053_v11 = vrot.slane %v3292_v23, 5  ;;  %v3298_v6 = vrot.slane %v3296_v49, 4  ;;  %v3302_v23 = vshll.u32 %v6056_v28, 16 }
 0x1c4   : > { %v2331_v39 = vpop.f32.mrf.mxu0  ;;  %v3304_v7 = vrot.slane %v3302_v23, 5 }
 0x1c5   : > { %v1677_v56 = vpop.f32.mrf.mxu3  ;;  %v1039_v48 = vpop.f32.mrf.mxu1 }
 0x1c6   : > { %v1718_v41 = vadd.f32 %v1677_v56, %v1428_v60  ;;  %v3285_v56 = vrot.slane %v3283_v10, 4  ;;  %v2494_v10 = vsel %vm5312_vm7, %v4654_v25, %v2493_v47  ;;  %v1040_v49 = vadd.f32 %v1039_v48, %v5515_v45  ;;  %v4817_v47 = vld [vmem:[%s5126_s29 + $0x78] sm:$0xf] }
 0x1c7   : > { %4896 = vmatmul.msk.bf16.gmra.mxu0 %vm687_vm4, %v3935_v3  ;;  %v3288_v3 = vrot.slane %v3286_v4, 5  ;;  %v3835_v25 = vrot.slane %v6031_v55, 5 }
 0x1c8   : > { %v1389_v33 = vpop.f32.mrf.mxu2  ;;  %4670 = vmatmul.msk.bf16.gmra.mxu1 %vm687_vm4, %v2594_v43  ;;  %v6051_v9 = vadd.f32 %v2331_v39, %v1718_v41  ;;  %v3829_v43 = vsel %vm5312_vm7, %v4880_v14, %v3828_v0  ;;  %v3538_v39 = vpack.c.b16 %v3513_v24, %v3512_v26  ;;  %v2497_v41 = vsel %vm5312_vm7, %v2495_v20, %v2496_v58 }
 0x1c9   : > { %v1429_v60 = vadd.f32 %v1389_v33, %v1037_v38  ;;  %v3289_v4 = vor.u32 %v3288_v3, %v3285_v56  ;;  %v3299_v0 = vor.u32 %v3298_v6, %v6053_v11  ;;  %v3910_v34 = vunpack.c.l.b16 %v3829_v43  ;;  %v6077_v56 = vld [vmem:[%s5126_s29 + $0x7c] sm:$0xf] }
 0x1ca   : > { %v3911_v38 = vunpack.c.l.b16 %v3832_v16  ;;  %v2570_v33 = vunpack.c.l.b16 %v2494_v10  ;;  %v2571_v26 = vunpack.c.l.b16 %v2497_v41  ;;  %v3307_v3 = vshrl.u32 %v4817_v47, 16  ;;  %v5021_v10 = vld [vmem:[%s5126_s29 + $0x70] sm:$0xf] }
 0x1cb   : > { %v3290_v58 = vrot.slane %v3289_v4, 4  ;;  %v3300_v37 = vrot.slane %v3299_v0, 4  ;;  %v3310_v6 = vshll.u32 %v4817_v47, 16  ;;  %v2500_v41 = vrot.slane %v5021_v10, 5 }
 0x1cc   : > { %v2333_v63 = vpop.f32.mrf.mxu0  ;;  %v2595_v20 = vpack.c.b16 %v2571_v26, %v2570_v33  ;;  %v3837_v23 = vrot.slane %v3835_v25, 4 }
 0x1cd   : > { %v1679_v62 = vpop.f32.mrf.mxu3  ;;  %4783 = vmatmul.msk.bf16.gmra.mxu2 %vm687_vm4, %v4948_v61  ;;  %v1041_v35 = vpop.f32.mrf.mxu1  ;;  %v3936_v61 = vpack.c.b16 %v3911_v38, %v3910_v34  ;;  %v3295_v55 = vsel %vm5138_vm3, %v3290_v58, %v6053_v11  ;;  %v3320_v34 = vshrl.u32 %v6077_v56, 16  ;;  %v3309_v11 = vrot.slane %v3307_v3, 4  ;;  %v6101_v3 = vld [vmem:[%s5126_s29 + $0x80] sm:$0x1] }
 0x1ce   : > { %v1719_v27 = vadd.f32 %v1679_v62, %v1429_v60  ;;  %v4865_v60 = vld [vmem:[%s5126_s29 + $0x6c] sm:$0xe]  ;;  %v1042_v0 = vadd.f32 %v1041_v35, %v5538_v12  ;;  %v3312_v33 = vrot.slane %v3310_v6, 5  ;;  %v2502_v47 = vrot.slane %v2500_v41, 4 }
 0x1cf   : > { %v4881_v62 = vrot.slane %v4865_v60, 9  ;;  %v3514_v12 = vunpack.c.l.b16 %v3295_v55 }
 0x1d0   : > { %v1392_v14 = vpop.f32.mrf.mxu2  ;;  %v6074_v45 = vadd.f32 %v2333_v63, %v1719_v27  ;;  %v3305_v63 = vsel %vm5138_vm3, %v3300_v37, %v3304_v7  ;;  %v3838_v27 = vrot.slane %v6056_v28, 5  ;;  %v5022_v28 = vld [vmem:[%s5126_s29 + $0x74] sm:$0x1]  ;;  %v3313_v6 = vor.u32 %v3312_v33, %v3309_v11  ;;  %v4866_v33 = vld [vmem:[%s5126_s29 + $0x78] sm:$0xe] }
 0x1d1   : > { %v1430_v24 = vadd.f32 %v1392_v14, %v1040_v49  ;;  %v3316_v49 = vshll.u32 %v6077_v56, 16  ;;  %v2503_v58 = vrot.slane %v5022_v28, 5  ;;  %v3515_v35 = vunpack.c.l.b16 %v3305_v63  ;;  %v6115_v28 = vld [vmem:[%s5126_s29 + $0x88] sm:$0xf] }
 0x1d2   : > { %4848 = vmatmul.msk.bf16.gmra.mxu3 %vm687_vm4, %v3538_v39  ;;  %v4639_v39 = vld [vmem:[%s5126_s29 + $0x6c] sm:$0xe]  ;;  %v3836_v7 = vsel %vm5312_vm7, %v4881_v62, %v3835_v25  ;;  %v3839_v60 = vsel %vm5312_vm7, %v3837_v23, %v3838_v27  ;;  %v3326_v23 = vshll.u32 %v6101_v3, 16  ;;  %v3314_v11 = vrot.slane %v3313_v6, 4 }
 0x1d3   : > { %v4655_v14 = vrot.slane %v4639_v39, 9  ;;  %v2504_v25 = vsel %vm5312_vm7, %v2502_v47, %v2503_v58  ;;  %v3912_v55 = vunpack.c.l.b16 %v3836_v7  ;;  %v3913_v63 = vunpack.c.l.b16 %v3839_v60 }
 0x1d4   : > { %v2336_v48 = vpop.f32.mrf.mxu0 }
 0x1d5   : > { %v1682_v43 = vpop.f32.mrf.mxu3  ;;  %v1044_v16 = vpop.f32.mrf.mxu1  ;;  %v2501_v10 = vsel %vm5312_vm7, %v4655_v14, %v2500_v41  ;;  %v4820_v41 = vld [vmem:[%s5126_s29 + $0x84] sm:$0xf]  ;;  %v3937_v14 = vpack.c.b16 %v3913_v63, %v3912_v55 }
 0x1d6   : > { %v1720_v4 = vadd.f32 %v1682_v43, %v1430_v24  ;;  %v4949_v24 = vld [vmem:[%s5126_s29 + $0x6c] sm:$0xff]  ;;  %v1045_v27 = vadd.f32 %v1044_v16, %v5557_v59  ;;  %v3328_v59 = vrot.slane %v3326_v23, 5  ;;  %v4882_v16 = vrot.slane %v4866_v33, 9  ;;  %v4950_v33 = vld [vmem:[%s5126_s29 + $0x78] sm:$0xff] }
 0x1d7   : > { %4897 = vmatmul.msk.bf16.gmra.mxu0 %vm687_vm4, %v3936_v61  ;;  %v3318_v61 = vrot.slane %v3316_v49, 5  ;;  %v3331_v60 = vshrl.u32 %v4820_v41, 16 }
 0x1d8   : > { %v1394_v38 = vpop.f32.mrf.mxu2  ;;  %4671 = vmatmul.msk.bf16.gmra.mxu1 %vm687_vm4, %v2595_v20  ;;  %v6094_v37 = vadd.f32 %v2336_v48, %v1720_v4  ;;  %v3322_v20 = vrot.slane %v3320_v34, 4  ;;  %v3539_v4 = vpack.c.b16 %v3515_v35, %v3514_v12  ;;  %v2572_v34 = vunpack.c.l.b16 %v2501_v10 }
 0x1d9   : > { %v1431_v26 = vadd.f32 %v1394_v38, %v1042_v0  ;;  %v2573_v38 = vunpack.c.l.b16 %v2504_v25  ;;  %v3319_v7 = vsel %vm5138_vm3, %v3314_v11, %v3318_v61  ;;  %v3845_v10 = vrot.slane %v6101_v3, 5  ;;  %v4640_v25 = vld [vmem:[%s5126_s29 + $0x78] sm:$0xe] }
 0x1da   : > { %v3323_v0 = vor.u32 %v3322_v20, %v3318_v61  ;;  %v3334_v20 = vshll.u32 %v4820_v41, 16  ;;  %v5024_v41 = vld [vmem:[%s5126_s29 + $0x80] sm:$0x1] }
 0x1db   : > { %v2596_v35 = vpack.c.b16 %v2573_v38, %v2572_v34  ;;  %v3333_v34 = vrot.slane %v3331_v60, 4 }
 0x1dc   : > { %v2338_v43 = vpop.f32.mrf.mxu0  ;;  %v3324_v47 = vrot.slane %v3323_v0, 4  ;;  %v3516_v0 = vunpack.c.l.b16 %v3319_v7  ;;  %v3336_v38 = vrot.slane %v3334_v20, 5  ;;  %v4822_v7 = vld [vmem:[%s5126_s29 + $0x8c] sm:$0x1] }
 0x1dd   : > { %v1684_v39 = vpop.f32.mrf.mxu3  ;;  %4784 = vmatmul.msk.bf16.gmra.mxu2 %vm687_vm4, %v4949_v24  ;;  %v1046_v48 = vpop.f32.mrf.mxu1 }
 0x1de   : > { %v1721_v62 = vadd.f32 %v1684_v39, %v1431_v26  ;;  %v3842_v26 = vrot.slane %v6077_v56, 5  ;;  %v5023_v56 = vld [vmem:[%s5126_s29 + $0x7c] sm:$0xf]  ;;  %v1047_v61 = vadd.f32 %v1046_v48, %v5574_v32 }
 0x1e0   : > { %v1397_v49 = vpop.f32.mrf.mxu2  ;;  %v6117_v58 = vadd.f32 %v2338_v43, %v1721_v62  ;;  %v3844_v63 = vrot.slane %v3842_v26, 4  ;;  %v3340_v43 = vshll.u32 %v6115_v28, 16  ;;  %v3344_v62 = vshrl.u32 %v6115_v28, 16 }
 0x1e1   : > { %v1432_v24 = vadd.f32 %v1397_v49, %v1045_v27  ;;  %v3329_v27 = vsel %vm5138_vm3, %v3324_v47, %v3328_v59  ;;  %v3843_v23 = vsel %vm5312_vm7, %v4882_v16, %v3842_v26  ;;  %v4656_v49 = vrot.slane %v4640_v25, 9 }
 0x1e2   : > { %4849 = vmatmul.msk.bf16.gmra.mxu3 %vm687_vm4, %v3539_v4  ;;  %v2507_v4 = vrot.slane %v5023_v56, 5  ;;  %v3517_v48 = vunpack.c.l.b16 %v3329_v27  ;;  %v3846_v47 = vsel %vm5312_vm7, %v3844_v63, %v3845_v10  ;;  %v6139_v59 = vrot.slane %v3340_v43, 5 }
 0x1e3   : > { %v3914_v16 = vunpack.c.l.b16 %v3843_v23  ;;  %v3915_v20 = vunpack.c.l.b16 %v3846_v47  ;;  %v3337_v25 = vor.u32 %v3336_v38, %v3333_v34  ;;  %v3350_v43 = vshll.u32 %v4822_v7, 16  ;;  %v6153_v47 = vld [vmem:[%s5126_s29 + $0x94] sm:$0xf] }
 0x1e4   : > { %v2341_v12 = vpop.f32.mrf.mxu0 }
 0x1e5   : > { %v1687_v6 = vpop.f32.mrf.mxu3  ;;  %v2664_v39 = vpop.f32.mrf.mxu1  ;;  %v3352_v38 = vrot.slane %v3350_v43, 5 }
 0x1e6   : > { %v1722_v55 = vadd.f32 %v1687_v6, %v1432_v24  ;;  %v2509_v24 = vrot.slane %v2507_v4, 4  ;;  %v2744_v27 = vadd.f32 %v2664_v39, %v5591_v46 }
 0x1e7   : > { %4898 = vmatmul.msk.bf16.gmra.mxu0 %vm687_vm4, %v3937_v14  ;;  %v2510_v14 = vrot.slane %v5024_v41, 5  ;;  %v4823_v41 = vld [vmem:[%s5126_s29 + $0x90] sm:$0xf] }
 0x1e8   : > { %v1399_v3 = vpop.f32.mrf.mxu2  ;;  %4672 = vmatmul.msk.bf16.gmra.mxu1 %vm687_vm4, %v2596_v35  ;;  %v6135_v32 = vadd.f32 %v2341_v12, %v1722_v55  ;;  %v3346_v35 = vrot.slane %v3344_v62, 4  ;;  %v2508_v12 = vsel %vm5312_vm7, %v4656_v49, %v2507_v4  ;;  %v3540_v55 = vpack.c.b16 %v3517_v48, %v3516_v0  ;;  %v4867_v62 = vld [vmem:[%s5126_s29 + $0x84] sm:$0xe] }
 0x1e9   : > { %v1433_v11 = vadd.f32 %v1399_v3, %v1047_v61  ;;  %v2511_v10 = vsel %vm5312_vm7, %v2509_v24, %v2510_v14  ;;  %v3849_v61 = vrot.slane %v6115_v28, 5  ;;  %v2574_v23 = vunpack.c.l.b16 %v2508_v12  ;;  %v5025_v12 = vld [vmem:[%s5126_s29 + $0x88] sm:$0xf] }
 0x1ea   : > { %v3347_v63 = vor.u32 %v3346_v35, %v6139_v59  ;;  %v3938_v4 = vpack.c.b16 %v3915_v20, %v3914_v16  ;;  %v3338_v49 = vrot.slane %v3337_v25, 4  ;;  %v3852_v28 = vrot.slane %v4822_v7, 5  ;;  %v6164_v7 = vld [vmem:[%s6501_s2] ss:$0 sm:$0xff] }
 0x1eb   : > { %v3851_v24 = vrot.slane %v3849_v61, 4  ;;  %v3355_v14 = vshrl.u32 %v4823_v41, 16  ;;  %v3358_v35 = vshll.u32 %v4823_v41, 16  ;;  %v3364_v16 = vshll.u32 %v6153_v47, 16 }
 0x1ec   : > { %v2343_v26 = vpop.f32.mrf.mxu0  ;;  %v3348_v34 = vrot.slane %v3347_v63, 4  ;;  %v3368_v25 = vshrl.u32 %v6153_v47, 16 }
 0x1ed   : > { %v1689_v60 = vpop.f32.mrf.mxu3  ;;  %4785 = vmatmul.msk.bf16.gmra.mxu2 %vm687_vm4, %v4950_v33  ;;  %v2666_v6 = vpop.f32.mrf.mxu1  ;;  %v2575_v33 = vunpack.c.l.b16 %v2511_v10  ;;  %v2514_v10 = vrot.slane %v5025_v12, 5  ;;  %v6180_v41 = vrot.slane %v3364_v16, 5 }
 0x1ee   : > { %v1723_v56 = vadd.f32 %v1689_v60, %v1433_v11  ;;  %v4883_v11 = vrot.slane %v4867_v62, 9  ;;  %v3353_v63 = vsel %vm5138_vm3, %v3348_v34, %v3352_v38  ;;  %v3853_v62 = vsel %vm5312_vm7, %v3851_v24, %v3852_v28  ;;  %v5026_v34 = vld [vmem:[%s5126_s29 + $0x8c] sm:$0x1] }
 0x1ef   : > { %v2597_v48 = vpack.c.b16 %v2575_v33, %v2574_v23  ;;  %v2745_v23 = vadd.f32 %v2666_v6, %v5604_v42  ;;  %v3360_v33 = vrot.slane %v3358_v35, 5  ;;  %v3370_v38 = vrot.slane %v3368_v25, 4  ;;  %v6191_v42 = vld [vmem:[%s5126_s29 + $0x98] sm:$0x1] }
 0x1f0   : > { %v2954_v3 = vpop.f32.mrf.mxu2  ;;  %v6156_v46 = vadd.f32 %v2343_v26, %v1723_v56  ;;  %v3343_v26 = vsel %vm5138_vm3, %v3338_v49, %v6139_v59  ;;  %v4641_v56 = vld [vmem:[%s5126_s29 + $0x84] sm:$0xe]  ;;  %v3850_v43 = vsel %vm5312_vm7, %v4883_v11, %v3849_v61  ;;  %v2517_v61 = vrot.slane %v5026_v34, 5  ;;  %v4826_v34 = vld [vmem:[%s5126_s29 + $0x9c] sm:$0xf] }
 0x1f1   : > { %v3034_v0 = vadd.f32 %v2954_v3, %v2744_v27  ;;  %v3357_v27 = vrot.slane %v3355_v14, 4  ;;  %v4657_v49 = vrot.slane %v4641_v56, 9  ;;  %v3518_v28 = vunpack.c.l.b16 %v3343_v26 }
 0x1f2   : > { %4850 = vmatmul.msk.bf16.gmra.mxu3 %vm687_vm4, %v3540_v55  ;;  %v3519_v14 = vunpack.c.l.b16 %v3353_v63  ;;  %v3917_v35 = vunpack.c.l.b16 %v3853_v62  ;;  %v3371_v26 = vor.u32 %v3370_v38, %v6180_v41 }
 0x1f3   : > { %v2515_v12 = vsel %vm5312_vm7, %v4657_v49, %v2514_v10 }
 0x1f4   : > { %v4006_v39 = vpop.f32.mrf.mxu0  ;;  %v3541_v63 = vpack.c.b16 %v3519_v14, %v3518_v28 }
 0x1f5   : > { %v3608_v60 = vpop.f32.mrf.mxu3  ;;  %v2669_v20 = vpop.f32.mrf.mxu1 }
 0x1f6   : > { %v3688_v55 = vadd.f32 %v3608_v60, %v3034_v0  ;;  %v2516_v0 = vrot.slane %v2514_v10, 4  ;;  %v6204_v10 = vld [vmem:[%s5126_s29 + $0xa0] sm:$0xf] }
 0x1f7   : > { %4899 = vmatmul.msk.bf16.gmra.mxu0 %vm687_vm4, %v3938_v4  ;;  %v4951_v4 = vld [vmem:[%s5126_s29 + $0x84] sm:$0xff]  ;;  %v3388_v28 = vshll.u32 %v6204_v10, 16  ;;  %v3392_v14 = vshrl.u32 %v6204_v10, 16 }
 0x1f8   : > { %v4086_v3 = vadd.f32 %v4006_v39, %v3688_v55  ;;  %v2956_v59 = vpop.f32.mrf.mxu2  ;;  %4673 = vmatmul.msk.bf16.gmra.mxu1 %vm687_vm4, %v2597_v48  ;;  %v3916_v48 = vunpack.c.l.b16 %v3850_v43  ;;  %v2518_v25 = vsel %vm5312_vm7, %v2516_v0, %v2517_v61  ;;  %v3361_v55 = vor.u32 %v3360_v33, %v3357_v27 }
 0x1f9   : > { %v3035_v24 = vadd.f32 %v2956_v59, %v2745_v23  ;;  %v3374_v43 = vshll.u32 %v6191_v42, 16  ;;  %v2576_v59 = vunpack.c.l.b16 %v2515_v12  ;;  %v3372_v27 = vrot.slane %v3371_v26, 4 }
 0x1fa   : > { %v4122_v11 = vadd.f32 %v6164_v7, %v4086_v3  ;;  %v2746_v3 = vadd.f32 %v2669_v20, %v5617_v15  ;;  %v3939_v49 = vpack.c.b16 %v3917_v35, %v3916_v48  ;;  %v3362_v0 = vrot.slane %v3361_v55, 4  ;;  %v5027_v55 = vld [vmem:[%s5126_s29 + $0x94] sm:$0xf] }
 0x1fb   : > { %v3376_v38 = vrot.slane %v3374_v43, 5  ;;  %v3856_v15 = vrot.slane %v6153_v47, 5  ;;  %v3379_v20 = vshrl.u32 %v4826_v34, 16  ;;  %v2521_v26 = vrot.slane %v5027_v55, 5 }
 0x1fc   : > { %v4154_v6 = vmax.f32 %v4122_v11, 0.0  ;;  %v4008_v39 = vpop.f32.mrf.mxu0  ;;  %v4868_v11 = vld [vmem:[%s5126_s29 + $0x90] sm:$0xe] }
 0x1fd   : > { %v3610_v16 = vpop.f32.mrf.mxu3  ;;  %4786 = vmatmul.msk.bf16.gmra.mxu2 %vm687_vm4, %v4951_v4  ;;  %v2671_v60 = vpop.f32.mrf.mxu1  ;;  %v2577_v4 = vunpack.c.l.b16 %v2518_v25  ;;  %v4884_v12 = vrot.slane %v4868_v11, 9  ;;  %v3859_v25 = vrot.slane %v6191_v42, 5  ;;  %v3858_v43 = vrot.slane %v3856_v15, 4  ;;  %v5028_v11 = vld [vmem:[%s5126_s29 + $0x98] sm:$0x1] }
 0x1fe   : > { %4186 = vst [vmem:[%s6188_s19] sm:$0xff] %v4154_v6  ;;  %v3689_v56 = vadd.f32 %v3610_v16, %v3035_v24  ;;  %v3382_v24 = vshll.u32 %v4826_v34, 16  ;;  %v2747_v34 = vadd.f32 %v2671_v60, %v5630_v13 }
 0x1ff   : > { %v2598_v48 = vpack.c.b16 %v2577_v4, %v2576_v59  ;;  %v3394_v59 = vrot.slane %v3392_v14, 4  ;;  %v3860_v13 = vsel %vm5312_vm7, %v3858_v43, %v3859_v25 }
 0x200   : > { %v4087_v62 = vadd.f32 %v4008_v39, %v3689_v56  ;;  %v2959_v23 = vpop.f32.mrf.mxu2  ;;  %v3367_v56 = vsel %vm5138_vm3, %v3362_v0, %v6180_v41  ;;  %v3384_v42 = vrot.slane %v3382_v24, 5  ;;  %v6227_v41 = vld [vmem:[%s5126_s29 + $0xa4] sm:$0x1]  ;;  %v4952_v0 = vld [vmem:[%s5126_s29 + $0x90] sm:$0xff]  ;;  %v3919_v43 = vunpack.c.l.b16 %v3860_v13 }
 0x201   : > { %v3036_v61 = vadd.f32 %v2959_v23, %v2746_v3  ;;  %v3381_v3 = vrot.slane %v3379_v20, 4  ;;  %v6222_v23 = vrot.slane %v3388_v28, 5  ;;  %v3857_v28 = vsel %vm5312_vm7, %v4884_v12, %v3856_v15 }
 0x202   : > { %v4123_v33 = vadd.f32 %v6164_v7, %v4087_v62  ;;  %4851 = vmatmul.msk.bf16.gmra.mxu3 %vm687_vm4, %v3541_v63  ;;  %v3377_v63 = vsel %vm5138_vm3, %v3372_v27, %v3376_v38  ;;  %v4642_v62 = vld [vmem:[%s5126_s29 + $0x90] sm:$0xe]  ;;  %v3520_v27 = vunpack.c.l.b16 %v3367_v56  ;;  %v2523_v38 = vrot.slane %v2521_v26, 4 }
 0x203   : > { %v3521_v24 = vunpack.c.l.b16 %v3377_v63  ;;  %v3385_v60 = vor.u32 %v3384_v42, %v3381_v3  ;;  %v3395_v14 = vor.u32 %v3394_v59, %v6222_v23  ;;  %v3918_v63 = vunpack.c.l.b16 %v3857_v28 }
 0x204   : > { %v4155_v6 = vmax.f32 %v4123_v33, 0.0  ;;  %v4011_v39 = vpop.f32.mrf.mxu0  ;;  %v3863_v59 = vrot.slane %v6204_v10, 5 }
 0x205   : > { %v3613_v35 = vpop.f32.mrf.mxu3  ;;  %v2674_v16 = vpop.f32.mrf.mxu1  ;;  %v3542_v25 = vpack.c.b16 %v3521_v24, %v3520_v27  ;;  %v3396_v3 = vrot.slane %v3395_v14, 4  ;;  %v3940_v27 = vpack.c.b16 %v3919_v43, %v3918_v63 }
 0x206   : > { %4187 = vst [vmem:[%s6188_s19 + $0x8] sm:$0xff] %v4155_v6  ;;  %v3690_v47 = vadd.f32 %v3613_v35, %v3036_v61  ;;  %v4658_v61 = vrot.slane %v4642_v62, 9  ;;  %v2524_v6 = vrot.slane %v5028_v11, 5  ;;  %v3386_v62 = vrot.slane %v3385_v60, 4 }
 0x207   : > { %4900 = vmatmul.msk.bf16.gmra.mxu0 %vm687_vm4, %v3939_v49  ;;  %v3866_v60 = vrot.slane %v6227_v41, 5 }
 0x208   : > { %v4088_v4 = vadd.f32 %v4011_v39, %v3690_v47  ;;  %v2961_v33 = vpop.f32.mrf.mxu2  ;;  %4674 = vmatmul.msk.bf16.gmra.mxu1 %vm687_vm4, %v2598_v48  ;;  %v3398_v39 = vshll.u32 %v6227_v41, 16  ;;  %v2522_v56 = vsel %vm5312_vm7, %v4658_v61, %v2521_v26  ;;  %v2525_v15 = vsel %vm5312_vm7, %v2523_v38, %v2524_v6  ;;  %v4869_v61 = vld [vmem:[%s5126_s29 + $0x9c] sm:$0xe]  ;;  %v4829_v38 = vld [vmem:[%s5126_s29 + $0xa8] sm:$0xf] }
 0x209   : > { %v3037_v20 = vadd.f32 %v2961_v33, %v2747_v34  ;;  %v2748_v34 = vadd.f32 %v2674_v16, %v5643_v57  ;;  %v2578_v33 = vunpack.c.l.b16 %v2522_v56  ;;  %v3391_v10 = vsel %vm5138_vm3, %v3386_v62, %v6222_v23 }
 0x20a   : > { %v4124_v49 = vadd.f32 %v6164_v7, %v4088_v4  ;;  %v3400_v42 = vrot.slane %v3398_v39, 5  ;;  %v4885_v16 = vrot.slane %v4869_v61, 9  ;;  %v3403_v14 = vshrl.u32 %v4829_v38, 16  ;;  %v5030_v61 = vld [vmem:[%s5126_s29 + $0xa4] sm:$0x1] }
 0x20b   : > { %v3406_v56 = vshll.u32 %v4829_v38, 16  ;;  %v3522_v63 = vunpack.c.l.b16 %v3391_v10  ;;  %v2531_v38 = vrot.slane %v5030_v61, 5 }
 0x20c   : > { %v4156_v48 = vmax.f32 %v4124_v49, 0.0  ;;  %v4013_v35 = vpop.f32.mrf.mxu0  ;;  %v3401_v57 = vsel %vm5138_vm3, %v3396_v3, %v3400_v42  ;;  %v3865_v49 = vrot.slane %v3863_v59, 4  ;;  %v3864_v41 = vsel %vm5312_vm7, %v4885_v16, %v3863_v59 }
 0x20d   : > { %v3615_v55 = vpop.f32.mrf.mxu3  ;;  %4787 = vmatmul.msk.bf16.gmra.mxu2 %vm687_vm4, %v4952_v0  ;;  %v2676_v47 = vpop.f32.mrf.mxu1  ;;  %v2579_v0 = vunpack.c.l.b16 %v2525_v15  ;;  %v4643_v15 = vld [vmem:[%s5126_s29 + $0x9c] sm:$0xe]  ;;  %v3523_v43 = vunpack.c.l.b16 %v3401_v57  ;;  %v3920_v16 = vunpack.c.l.b16 %v3864_v41 }
 0x20e   : > { %4188 = vst [vmem:[%s6188_s19 + $0x10] sm:$0xff] %v4156_v48  ;;  %v3691_v12 = vadd.f32 %v3615_v55, %v3037_v20  ;;  %v6256_v20 = vld [vmem:[%s5126_s29 + $0xac] sm:$0xf]  ;;  %v2749_v3 = vadd.f32 %v2676_v47, %v5656_v54  ;;  %v6277_v47 = vld [vmem:[%s5126_s29 + $0xb0] sm:$0x1] }
 0x20f   : > { %v2599_v13 = vpack.c.b16 %v2579_v0, %v2578_v33  ;;  %v4659_v33 = vrot.slane %v4643_v15, 9 }
 0x210   : > { %v4089_v4 = vadd.f32 %v4013_v35, %v3691_v12  ;;  %v2964_v26 = vpop.f32.mrf.mxu2  ;;  %v5029_v35 = vld [vmem:[%s5126_s29 + $0xa0] sm:$0xf]  ;;  %v3412_v12 = vshll.u32 %v6256_v20, 16 }
 0x211   : > { %v3038_v6 = vadd.f32 %v2964_v26, %v2748_v34  ;;  %v2528_v55 = vrot.slane %v5029_v35, 5  ;;  %v3405_v34 = vrot.slane %v3403_v14, 4  ;;  %v4953_v26 = vld [vmem:[%s5126_s29 + $0x9c] sm:$0xff]  ;;  %v3543_v35 = vpack.c.b16 %v3523_v43, %v3522_v63 }
 0x212   : > { %v4125_v11 = vadd.f32 %v6164_v7, %v4089_v4  ;;  %4852 = vmatmul.msk.bf16.gmra.mxu3 %vm687_vm4, %v3542_v25  ;;  %v3416_v25 = vshrl.u32 %v6256_v20, 16  ;;  %v3867_v4 = vsel %vm5312_vm7, %v3865_v49, %v3866_v60 }
 0x213   : > { %v2530_v0 = vrot.slane %v2528_v55, 4 }
 0x214   : > { %v4157_v24 = vmax.f32 %v4125_v11, 0.0  ;;  %v4016_v28 = vpop.f32.mrf.mxu0  ;;  %v3408_v11 = vrot.slane %v3406_v56, 5  ;;  %v3418_v54 = vrot.slane %v3416_v25, 4 }
 0x215   : > { %v3618_v39 = vpop.f32.mrf.mxu3  ;;  %v2679_v48 = vpop.f32.mrf.mxu1  ;;  %v2532_v60 = vsel %vm5312_vm7, %v2530_v0, %v2531_v38 }
 0x216   : > { %4189 = vst [vmem:[%s6188_s19 + $0x18] sm:$0xff] %v4157_v24  ;;  %v3692_v23 = vadd.f32 %v3618_v39, %v3038_v6  ;;  %v6274_v6 = vrot.slane %v3412_v12, 5  ;;  %v3921_v24 = vunpack.c.l.b16 %v3867_v4  ;;  %v3409_v14 = vor.u32 %v3408_v11, %v3405_v34 }
 0x217   : > { %4901 = vmatmul.msk.bf16.gmra.mxu0 %vm687_vm4, %v3940_v27  ;;  %v2750_v12 = vadd.f32 %v2679_v48, %v5668_v31 }
 0x218   : > { %v4090_v62 = vadd.f32 %v4016_v28, %v3692_v23  ;;  %v2966_v42 = vpop.f32.mrf.mxu2  ;;  %4675 = vmatmul.msk.bf16.gmra.mxu1 %vm687_vm4, %v2599_v13  ;;  %v2529_v13 = vsel %vm5312_vm7, %v4659_v33, %v2528_v55  ;;  %v3419_v56 = vor.u32 %v3418_v54, %v6274_v6  ;;  %v3422_v23 = vshll.u32 %v6277_v47, 16  ;;  %v6290_v55 = vld [vmem:[%s5126_s29 + $0xb8] sm:$0xf]  ;;  %v4870_v33 = vld [vmem:[%s5126_s29 + $0xa8] sm:$0xe] }
 0x219   : > { %v3039_v27 = vadd.f32 %v2966_v42, %v2749_v3  ;;  %v2580_v41 = vunpack.c.l.b16 %v2529_v13  ;;  %v4832_v3 = vld [vmem:[%s5126_s29 + $0xb4] sm:$0xf]  ;;  %v3941_v42 = vpack.c.b16 %v3921_v24, %v3920_v16  ;;  %v3410_v4 = vrot.slane %v3409_v14, 4  ;;  %v4644_v14 = vld [vmem:[%s5126_s29 + $0xa8] sm:$0xe] }
 0x21a   : > { %v4126_v59 = vadd.f32 %v6164_v7, %v4090_v62  ;;  %v2581_v62 = vunpack.c.l.b16 %v2532_v60  ;;  %v3420_v43 = vrot.slane %v3419_v56, 4  ;;  %v3427_v0 = vshrl.u32 %v4832_v3, 16 }
 0x21b   : > { %v3430_v31 = vshll.u32 %v4832_v3, 16  ;;  %v3436_v48 = vshll.u32 %v6290_v55, 16  ;;  %v3440_v61 = vshrl.u32 %v6290_v55, 16  ;;  %v3415_v24 = vsel %vm5138_vm3, %v3410_v4, %v6274_v6 }
 0x21c   : > { %v4158_v10 = vmax.f32 %v4126_v59, 0.0  ;;  %v4018_v57 = vpop.f32.mrf.mxu0  ;;  %v2600_v59 = vpack.c.b16 %v2581_v62, %v2580_v41  ;;  %v4886_v60 = vrot.slane %v4870_v33, 9  ;;  %v6313_v41 = vld [vmem:[%s5126_s29 + $0xbc] sm:$0x1]  ;;  %v4954_v62 = vld [vmem:[%s5126_s29 + $0xa8] sm:$0xff]  ;;  %v4660_v3 = vrot.slane %v4644_v14, 9 }
 0x21d   : > { %v3620_v49 = vpop.f32.mrf.mxu3  ;;  %4788 = vmatmul.msk.bf16.gmra.mxu2 %vm687_vm4, %v4953_v26  ;;  %v2681_v28 = vpop.f32.mrf.mxu1  ;;  %v3424_v26 = vrot.slane %v3422_v23, 5  ;;  %v3442_v56 = vrot.slane %v3440_v61, 4 }
 0x21e   : > { %4190 = vst [vmem:[%s6188_s19 + $0x20] sm:$0xff] %v4158_v10  ;;  %v3693_v39 = vadd.f32 %v3620_v49, %v3039_v27  ;;  %v3870_v27 = vrot.slane %v6256_v20, 5  ;;  %v3429_v20 = vrot.slane %v3427_v0, 4 }
 0x21f   : > { %v3425_v13 = vsel %vm5138_vm3, %v3420_v43, %v3424_v26  ;;  %v3524_v26 = vunpack.c.l.b16 %v3415_v24 }
 0x220   : > { %v4091_v15 = vadd.f32 %v4018_v57, %v3693_v39  ;;  %v2969_v25 = vpop.f32.mrf.mxu2  ;;  %v5031_v57 = vld [vmem:[%s5126_s29 + $0xac] sm:$0xf]  ;;  %v3432_v39 = vrot.slane %v3430_v31, 5  ;;  %v3872_v6 = vrot.slane %v3870_v27, 4  ;;  %v3525_v33 = vunpack.c.l.b16 %v3425_v13 }
 0x221   : > { %v3040_v63 = vadd.f32 %v2969_v25, %v2750_v12  ;;  %v2535_v16 = vrot.slane %v5031_v57, 5  ;;  %v3873_v25 = vrot.slane %v6277_v47, 5  ;;  %v3446_v47 = vshll.u32 %v6313_v41, 16 }
 0x222   : > { %v4127_v34 = vadd.f32 %v6164_v7, %v4091_v15  ;;  %4853 = vmatmul.msk.bf16.gmra.mxu3 %vm687_vm4, %v3543_v35  ;;  %v6307_v35 = vrot.slane %v3436_v48, 5  ;;  %v2751_v15 = vadd.f32 %v2681_v28, %v5681_v44  ;;  %v3871_v44 = vsel %vm5312_vm7, %v4886_v60, %v3870_v27 }
 0x223   : > { %v2537_v4 = vrot.slane %v2535_v16, 4  ;;  %v3433_v28 = vor.u32 %v3432_v39, %v3429_v20  ;;  %v3874_v61 = vsel %vm5312_vm7, %v3872_v6, %v3873_v25  ;;  %v3544_v57 = vpack.c.b16 %v3525_v33, %v3524_v26 }
 0x224   : > { %v4159_v38 = vmax.f32 %v4127_v34, 0.0  ;;  %v4021_v11 = vpop.f32.mrf.mxu0  ;;  %v3443_v0 = vor.u32 %v3442_v56, %v6307_v35  ;;  %v3923_v24 = vunpack.c.l.b16 %v3874_v61  ;;  %v3448_v14 = vrot.slane %v3446_v47, 5  ;;  %v4645_v47 = vld [vmem:[%s5126_s29 + $0xb4] sm:$0xe] }
 0x225   : > { %v3623_v54 = vpop.f32.mrf.mxu3  ;;  %v2684_v10 = vpop.f32.mrf.mxu1  ;;  %v3434_v13 = vrot.slane %v3433_v28, 4 }
 0x226   : > { %4191 = vst [vmem:[%s6188_s19 + $0x28] sm:$0xff] %v4159_v38  ;;  %v3694_v49 = vadd.f32 %v3623_v54, %v3040_v63  ;;  %v3444_v60 = vrot.slane %v3443_v0, 4  ;;  %v2752_v39 = vadd.f32 %v2684_v10, %v5695_v30  ;;  %v3877_v30 = vrot.slane %v6290_v55, 5  ;;  %v6339_v10 = vld [vmem:[%s5126_s29 + $0xc4] sm:$0xf] }
 0x227   : > { %4902 = vmatmul.msk.bf16.gmra.mxu0 %vm687_vm4, %v3941_v42  ;;  %v5032_v42 = vld [vmem:[%s5126_s29 + $0xb0] sm:$0x1]  ;;  %v3460_v55 = vshll.u32 %v6339_v10, 16 }
 0x228   : > { %v4092_v23 = vadd.f32 %v4021_v11, %v3694_v49  ;;  %v2971_v12 = vpop.f32.mrf.mxu2  ;;  %4676 = vmatmul.msk.bf16.gmra.mxu1 %vm687_vm4, %v2600_v59  ;;  %v2538_v34 = vrot.slane %v5032_v42, 5  ;;  %v2536_v59 = vsel %vm5312_vm7, %v4660_v3, %v2535_v16  ;;  %v3922_v49 = vunpack.c.l.b16 %v3871_v44  ;;  %v4835_v16 = vld [vmem:[%s5126_s29 + $0xc0] sm:$0xf]  ;;  %v5033_v44 = vld [vmem:[%s5126_s29 + $0xb8] sm:$0xf] }
 0x229   : > { %v3041_v43 = vadd.f32 %v2971_v12, %v2751_v15  ;;  %v2542_v28 = vrot.slane %v5033_v44, 5  ;;  %v3454_v0 = vshll.u32 %v4835_v16, 16 }
 0x22a   : > { %v4128_v63 = vadd.f32 %v6164_v7, %v4092_v23  ;;  %v2539_v27 = vsel %vm5312_vm7, %v2537_v4, %v2538_v34  ;;  %v2582_v23 = vunpack.c.l.b16 %v2536_v59  ;;  %v3942_v25 = vpack.c.b16 %v3923_v24, %v3922_v49 }
 0x22b   : > { %v2583_v15 = vunpack.c.l.b16 %v2539_v27  ;;  %v3449_v34 = vsel %vm5138_vm3, %v3444_v60, %v3448_v14  ;;  %v3879_v59 = vrot.slane %v3877_v30, 4  ;;  %v3880_v49 = vrot.slane %v6313_v41, 5 }
 0x22c   : > { %v4160_v31 = vmax.f32 %v4128_v63, 0.0  ;;  %v4023_v48 = vpop.f32.mrf.mxu0  ;;  %v4871_v63 = vld [vmem:[%s5126_s29 + $0xb4] sm:$0xe]  ;;  %v3527_v61 = vunpack.c.l.b16 %v3449_v34  ;;  %v4661_v60 = vrot.slane %v4645_v47, 9  ;;  %v2544_v14 = vrot.slane %v2542_v28, 4 }
 0x22d   : > { %v3625_v38 = vpop.f32.mrf.mxu3  ;;  %4789 = vmatmul.msk.bf16.gmra.mxu2 %vm687_vm4, %v4954_v62  ;;  %v2686_v11 = vpop.f32.mrf.mxu1  ;;  %v3439_v62 = vsel %vm5138_vm3, %v3434_v13, %v6307_v35  ;;  %v2601_v42 = vpack.c.b16 %v2583_v15, %v2582_v23  ;;  %v4955_v13 = vld [vmem:[%s5126_s29 + $0xb4] sm:$0xff] }
 0x22e   : > { %4192 = vst [vmem:[%s6188_s19 + $0x30] sm:$0xff] %v4160_v31  ;;  %v3695_v54 = vadd.f32 %v3625_v38, %v3041_v43  ;;  %v3451_v43 = vshrl.u32 %v4835_v16, 16  ;;  %v3464_v31 = vshrl.u32 %v6339_v10, 16  ;;  %v4887_v38 = vrot.slane %v4871_v63, 9 }
 0x22f   : > { %v3462_v16 = vrot.slane %v3460_v55, 5 }
 0x230   : > { %v4093_v20 = vadd.f32 %v4023_v48, %v3695_v54  ;;  %v2974_v56 = vpop.f32.mrf.mxu2  ;;  %v3526_v48 = vunpack.c.l.b16 %v3439_v62  ;;  %v2753_v54 = vadd.f32 %v2686_v11, %v5708_v51  ;;  %v3453_v24 = vrot.slane %v3451_v43, 4 }
 0x231   : > { %v3042_v6 = vadd.f32 %v2974_v56, %v2752_v39  ;;  %v3456_v56 = vrot.slane %v3454_v0, 5  ;;  %v3878_v41 = vsel %vm5312_vm7, %v4887_v38, %v3877_v30 }
 0x232   : > { %v4129_v12 = vadd.f32 %v6164_v7, %v4093_v20  ;;  %4854 = vmatmul.msk.bf16.gmra.mxu3 %vm687_vm4, %v3544_v57  ;;  %v5034_v20 = vld [vmem:[%s5126_s29 + $0xbc] sm:$0x1]  ;;  %v3545_v43 = vpack.c.b16 %v3527_v61, %v3526_v48  ;;  %v3924_v44 = vunpack.c.l.b16 %v3878_v41 }
 0x233   : > { %v2545_v39 = vrot.slane %v5034_v20, 5  ;;  %v3457_v34 = vor.u32 %v3456_v56, %v3453_v24  ;;  %v3884_v24 = vrot.slane %v6339_v10, 5 }
 0x234   : > { %v4161_v3 = vmax.f32 %v4129_v12, 0.0  ;;  %v4026_v4 = vpop.f32.mrf.mxu0  ;;  %v3466_v12 = vrot.slane %v3464_v31, 4 }
 0x235   : > { %v3628_v26 = vpop.f32.mrf.mxu3  ;;  %v2689_v33 = vpop.f32.mrf.mxu1  ;;  %v3458_v38 = vrot.slane %v3457_v34, 4 }
 0x236   : > { %4193 = vst [vmem:[%s6188_s19 + $0x38] sm:$0xff] %v4161_v3  ;;  %v3696_v35 = vadd.f32 %v3628_v26, %v3042_v6  ;;  %v6357_v6 = vld [vmem:[%s5126_s29 + $0xc8] sm:$0x1]  ;;  %v3467_v26 = vor.u32 %v3466_v12, %v3462_v16  ;;  %v2754_v47 = vadd.f32 %v2689_v33, %v5724_v1 }
 0x237   : > { %4903 = vmatmul.msk.bf16.gmra.mxu0 %vm687_vm4, %v3942_v25  ;;  %v3881_v25 = vsel %vm5312_vm7, %v3879_v59, %v3880_v49  ;;  %v3470_v30 = vshll.u32 %v6357_v6, 16 }
 0x238   : > { %v4094_v27 = vadd.f32 %v4026_v4, %v3696_v35  ;;  %v2976_v57 = vpop.f32.mrf.mxu2  ;;  %4677 = vmatmul.msk.bf16.gmra.mxu1 %vm687_vm4, %v2601_v42  ;;  %v2543_v4 = vsel %vm5312_vm7, %v4661_v60, %v2542_v28  ;;  %v2546_v42 = vsel %vm5312_vm7, %v2544_v14, %v2545_v39  ;;  %v3925_v0 = vunpack.c.l.b16 %v3881_v25  ;;  %v6377_v60 = vld [vmem:[%s5126_s29 + $0xd0] sm:$0xf]  ;;  %v5035_v39 = vld [vmem:[%s5126_s29 + $0xc4] sm:$0xf] }
 0x239   : > { %v3043_v15 = vadd.f32 %v2976_v57, %v2753_v54  ;;  %v2584_v28 = vunpack.c.l.b16 %v2543_v4  ;;  %v2585_v31 = vunpack.c.l.b16 %v2546_v42  ;;  %v3468_v61 = vrot.slane %v3467_v26, 4  ;;  %v4872_v57 = vld [vmem:[%s5126_s29 + $0xc0] sm:$0xe] }
 0x23a   : > { %v4130_v23 = vadd.f32 %v6164_v7, %v4094_v27  ;;  %v3472_v27 = vrot.slane %v3470_v30, 5  ;;  %v3943_v54 = vpack.c.b16 %v3925_v0, %v3924_v44  ;;  %v2549_v56 = vrot.slane %v5035_v39, 5  ;;  %v6510_v42 = vld [vmem:[#allocation2_spill] sm:$0xff] }
 0x23b   : > { %v2602_v33 = vpack.c.b16 %v2585_v31, %v2584_v28  ;;  %v3484_v25 = vshll.u32 %v6377_v60, 16  ;;  %v4956_v26 = vld [vmem:[%s5126_s29 + $0xc0] sm:$0xff] }
 0x23c   : > { %v4162_v51 = vmax.f32 %v4130_v23, 0.0  ;;  %v4028_v11 = vpop.f32.mrf.mxu0  ;;  %v3473_v12 = vsel %vm5138_vm3, %v3468_v61, %v3472_v27  ;;  %v2551_v0 = vrot.slane %v2549_v56, 4 }
 0x23d   : > { %v3630_v62 = vpop.f32.mrf.mxu3  ;;  %4790 = vmatmul.msk.bf16.gmra.mxu2 %vm687_vm4, %v4955_v13  ;;  %v2691_v3 = vpop.f32.mrf.mxu1  ;;  %v4838_v13 = vld [vmem:[%s5126_s29 + $0xcc] sm:$0xf]  ;;  %v3529_v31 = vunpack.c.l.b16 %v3473_v12 }
 0x23e   : > { %4194 = vst [vmem:[%s6188_s19 + $0x40] sm:$0xff] %v4162_v51  ;;  %v3697_v63 = vadd.f32 %v3630_v62, %v3043_v15  ;;  %v3463_v15 = vsel %vm5138_vm3, %v3458_v38, %v3462_v16  ;;  %v4888_v51 = vrot.slane %v4872_v57, 9  ;;  %v3475_v10 = vshrl.u32 %v4838_v13, 16  ;;  %v4840_v57 = vld [vmem:[%s5126_s29 + $0xd4] sm:$0x1] }
 0x23f   : > { %v3478_v41 = vshll.u32 %v4838_v13, 16  ;;  %v3488_v62 = vshrl.u32 %v6377_v60, 16  ;;  %v2755_v34 = vadd.f32 %v2691_v3, %v6510_v42  ;;  %v3886_v16 = vrot.slane %v3884_v24, 4 }
 0x240   : > { %v4095_v35 = vadd.f32 %v4028_v11, %v3697_v63  ;;  %v2979_v55 = vpop.f32.mrf.mxu2  ;;  %v4646_v11 = vld [vmem:[%s5126_s29 + $0xc0] sm:$0xe]  ;;  %v3528_v30 = vunpack.c.l.b16 %v3463_v15  ;;  %v3885_v3 = vsel %vm5312_vm7, %v4888_v51, %v3884_v24  ;;  %v3477_v38 = vrot.slane %v3475_v10, 4 }
 0x241   : > { %v3044_v48 = vadd.f32 %v2979_v55, %v2754_v47  ;;  %v4662_v44 = vrot.slane %v4646_v11, 9  ;;  %v3490_v61 = vrot.slane %v3488_v62, 4  ;;  %v3926_v39 = vunpack.c.l.b16 %v3885_v3 }
 0x242   : > { %v4131_v59 = vadd.f32 %v6164_v7, %v4095_v35  ;;  %4855 = vmatmul.msk.bf16.gmra.mxu3 %vm687_vm4, %v3545_v43  ;;  %v3887_v43 = vrot.slane %v6357_v6, 5  ;;  %v5036_v35 = vld [vmem:[%s5126_s29 + $0xc8] sm:$0x1]  ;;  %v3494_v51 = vshll.u32 %v4840_v57, 16 }
 0x243   : > { %v2552_v47 = vrot.slane %v5036_v35, 5 }
 0x244   : > { %v4163_v49 = vmax.f32 %v4131_v59, 0.0  ;;  %v4031_v1 = vpop.f32.mrf.mxu0  ;;  %v3480_v59 = vrot.slane %v3478_v41, 5 }
 0x245   : > { %v3633_v14 = vpop.f32.mrf.mxu3  ;;  %v2694_v20 = vpop.f32.mrf.mxu1  ;;  %v2553_v24 = vsel %vm5312_vm7, %v2551_v0, %v2552_v47 }
 0x246   : > { %4195 = vst [vmem:[%s6188_s19 + $0x48] sm:$0xff] %v4163_v49  ;;  %v3698_v23 = vadd.f32 %v3633_v14, %v3044_v48  ;;  %v3486_v48 = vrot.slane %v3484_v25, 5  ;;  %v3546_v14 = vpack.c.b16 %v3529_v31, %v3528_v30  ;;  %v3481_v15 = vor.u32 %v3480_v59, %v3477_v38 }
 0x247   : > { %4904 = vmatmul.msk.bf16.gmra.mxu0 %vm687_vm4, %v3943_v54  ;;  %v3888_v54 = vsel %vm5312_vm7, %v3886_v16, %v3887_v43  ;;  %v2756_v10 = vadd.f32 %v2694_v20, %v5760_v52  ;;  %v2587_v62 = vunpack.c.l.b16 %v2553_v24  ;;  %v3496_v16 = vrot.slane %v3494_v51, 5 }
 0x248   : > { %v4096_v4 = vadd.f32 %v4031_v1, %v3698_v23  ;;  %v2981_v63 = vpop.f32.mrf.mxu2  ;;  %4678 = vmatmul.msk.bf16.gmra.mxu1 %vm687_vm4, %v2602_v33  ;;  %v2550_v33 = vsel %vm5312_vm7, %v4662_v44, %v2549_v56  ;;  %v3927_v23 = vunpack.c.l.b16 %v3888_v54  ;;  %v3491_v12 = vor.u32 %v3490_v61, %v3486_v48  ;;  %v4873_v44 = vld [vmem:[%s5126_s29 + $0xcc] sm:$0xe] }
 0x249   : > { %v3045_v28 = vadd.f32 %v2981_v63, %v2755_v34  ;;  %v2586_v25 = vunpack.c.l.b16 %v2550_v33  ;;  %v3482_v34 = vrot.slane %v3481_v15, 4  ;;  %v3891_v52 = vrot.slane %v6377_v60, 5  ;;  %v4957_v61 = vld [vmem:[%s5126_s29 + $0xcc] sm:$0xff] }
 0x24a   : > { %v4132_v55 = vadd.f32 %v6164_v7, %v4096_v4  ;;  %v3944_v42 = vpack.c.b16 %v3927_v23, %v3926_v39  ;;  %v3492_v63 = vrot.slane %v3491_v12, 4  ;;  %v3894_v59 = vrot.slane %v4840_v57, 5 }
 0x24b   : > { %v2603_v30 = vpack.c.b16 %v2587_v62, %v2586_v25  ;;  %v3487_v47 = vsel %vm5138_vm3, %v3482_v34, %v3486_v48  ;;  %v3893_v60 = vrot.slane %v3891_v52, 4 }
 0x24c   : > { %v4164_v6 = vmax.f32 %v4132_v55, 0.0  ;;  %v4033_v27 = vpop.f32.mrf.mxu0  ;;  %v3497_v55 = vsel %vm5138_vm3, %v3492_v63, %v3496_v16  ;;  %v3530_v54 = vunpack.c.l.b16 %v3487_v47 }
 0x24d   : > { %v3635_v49 = vpop.f32.mrf.mxu3  ;;  %4791 = vmatmul.msk.bf16.gmra.mxu2 %vm687_vm4, %v4956_v26  ;;  %v2696_v1 = vpop.f32.mrf.mxu1 }
 0x24e   : > { %4196 = vst [vmem:[%s6188_s19 + $0x50] sm:$0xff] %v4164_v6  ;;  %v3699_v13 = vadd.f32 %v3635_v49, %v3045_v28  ;;  %v4889_v28 = vrot.slane %v4873_v44, 9  ;;  %v2757_v3 = vadd.f32 %v2696_v1, %v5780_v21  ;;  %v3531_v49 = vunpack.c.l.b16 %v3497_v55 }
 0x24f   : > { %v3895_v21 = vsel %vm5312_vm7, %v3893_v60, %v3894_v59 }
 0x250   : > { %v4097_v11 = vadd.f32 %v4033_v27, %v3699_v13  ;;  %v2984_v41 = vpop.f32.mrf.mxu2  ;;  %v3892_v36 = vsel %vm5312_vm7, %v4889_v28, %v3891_v52  ;;  %v3547_v13 = vpack.c.b16 %v3531_v49, %v3530_v54  ;;  %v3929_v39 = vunpack.c.l.b16 %v3895_v21 }
 0x251   : > { %v3046_v4 = vadd.f32 %v2984_v41, %v2756_v10 }
 0x252   : > { %v4133_v56 = vadd.f32 %v6164_v7, %v4097_v11  ;;  %4856 = vmatmul.msk.bf16.gmra.mxu3 %vm687_vm4, %v3546_v14  ;;  %v3928_v14 = vunpack.c.l.b16 %v3892_v36 }
 0x254   : > { %v4165_v43 = vmax.f32 %v4133_v56, 0.0  ;;  %v4036_v26 = vpop.f32.mrf.mxu0  ;;  %v3945_v11 = vpack.c.b16 %v3929_v39, %v3928_v14 }
 0x255   : > { %v3638_v20 = vpop.f32.mrf.mxu3  ;;  %v2699_v0 = vpop.f32.mrf.mxu1 }
 0x256   : > { %4197 = vst [vmem:[%s6188_s19 + $0x58] sm:$0xff] %v4165_v43  ;;  %v3700_v35 = vadd.f32 %v3638_v20, %v3046_v4  ;;  %v2758_v15 = vadd.f32 %v2699_v0, %v5799_v29 }
 0x257   : > { %4905 = vmatmul.msk.bf16.gmra.mxu0 %vm687_vm4, %v3944_v42  ;;  %v6511_v42 = vld [vmem:[#allocation3_spill] sm:$0xff] }
 0x258   : > { %v4098_v31 = vadd.f32 %v4036_v26, %v3700_v35  ;;  %v2986_v38 = vpop.f32.mrf.mxu2  ;;  %4679 = vmatmul.msk.bf16.gmra.mxu1 %vm687_vm4, %v2603_v30 }
 0x259   : > { %v3047_v27 = vadd.f32 %v2986_v38, %v2757_v3 }
 0x25a   : > { %v4134_v6 = vadd.f32 %v6164_v7, %v4098_v31 }
 0x25c   : > { %v4166_v48 = vmax.f32 %v4134_v6, 0.0  ;;  %v4038_v33 = vpop.f32.mrf.mxu0 }
 0x25d   : > { %v3640_v1 = vpop.f32.mrf.mxu3  ;;  %4792 = vmatmul.msk.bf16.gmra.mxu2 %vm687_vm4, %v4957_v61  ;;  %v2701_v24 = vpop.f32.mrf.mxu1 }
 0x25e   : > { %4198 = vst [vmem:[%s6188_s19 + $0x60] sm:$0xff] %v4166_v48  ;;  %v3701_v57 = vadd.f32 %v3640_v1, %v3047_v27  ;;  %v2759_v34 = vadd.f32 %v2701_v24, %v6511_v42 }
 0x260   : > { %v4099_v23 = vadd.f32 %v4038_v33, %v3701_v57  ;;  %v2989_v12 = vpop.f32.mrf.mxu2 }
 0x261   : > { %v3048_v18 = vadd.f32 %v2989_v12, %v2758_v15 }
 0x262   : > { %v4135_v51 = vadd.f32 %v6164_v7, %v4099_v23  ;;  %4857 = vmatmul.msk.bf16.gmra.mxu3 %vm687_vm4, %v3547_v13 }
 0x264   : > { %v4167_v10 = vmax.f32 %v4135_v51, 0.0  ;;  %v4041_v41 = vpop.f32.mrf.mxu0 }
 0x265   : > { %v3643_v25 = vpop.f32.mrf.mxu3  ;;  %v2704_v62 = vpop.f32.mrf.mxu1 }
 0x266   : > { %4199 = vst [vmem:[%s6188_s19 + $0x68] sm:$0xff] %v4167_v10  ;;  %v3702_v56 = vadd.f32 %v3643_v25, %v3048_v18  ;;  %v2760_v0 = vadd.f32 %v2704_v62, %v5842_v5 }
 0x267   : > { %4906 = vmatmul.msk.bf16.gmra.mxu0 %vm687_vm4, %v3945_v11 }
 0x268   : > { %v4100_v4 = vadd.f32 %v4041_v41, %v3702_v56  ;;  %v2991_v29 = vpop.f32.mrf.mxu2 }
 0x269   : > { %v3049_v16 = vadd.f32 %v2991_v29, %v2759_v34 }
 0x26a   : > { %v4136_v63 = vadd.f32 %v6164_v7, %v4100_v4 }
 0x26c   : > { %v4168_v43 = vmax.f32 %v4136_v63, 0.0  ;;  %v4043_v26 = vpop.f32.mrf.mxu0 }
 0x26d   : > { %v3645_v30 = vpop.f32.mrf.mxu3  ;;  %v2706_v44 = vpop.f32.mrf.mxu1 }
 0x26e   : > { %4200 = vst [vmem:[%s6188_s19 + $0x70] sm:$0xff] %v4168_v43  ;;  %v3703_v52 = vadd.f32 %v3645_v30, %v3049_v16  ;;  %v2761_v61 = vadd.f32 %v2706_v44, %v5866_v22 }
 0x270   : > { %v4101_v20 = vadd.f32 %v4043_v26, %v3703_v52  ;;  %v2994_v35 = vpop.f32.mrf.mxu2 }
 0x271   : > { %v3050_v55 = vadd.f32 %v2994_v35, %v2760_v0  ;;  %v6454_v0 = vld [vmem:[%s6501_s2] ss:$0 sm:$0xff] }
 0x272   : > { %v4137_v47 = vadd.f32 %v6164_v7, %v4101_v20 }
 0x274   : > { %v4169_v28 = vmax.f32 %v4137_v47, 0.0  ;;  %v4046_v31 = vpop.f32.mrf.mxu0 }
 0x275   : > { %v3648_v3 = vpop.f32.mrf.mxu3  ;;  %v2709_v38 = vpop.f32.mrf.mxu1 }
 0x276   : > { %4201 = vst [vmem:[%s6188_s19 + $0x78] sm:$0xff] %v4169_v28  ;;  %v3704_v60 = vadd.f32 %v3648_v3, %v3050_v55  ;;  %v2762_v1 = vadd.f32 %v2709_v38, %v5885_v19 }
 0x278   : > { %v4102_v59 = vadd.f32 %v4046_v31, %v3704_v60  ;;  %v2996_v6 = vpop.f32.mrf.mxu2 }
 0x279   : > { %v3051_v54 = vadd.f32 %v2996_v6, %v2761_v61 }
 0x27a   : > { %v4138_v27 = vadd.f32 %v6164_v7, %v4102_v59 }
 0x27c   : > { %v4170_v5 = vmax.f32 %v4138_v27, 0.0  ;;  %v4048_v49 = vpop.f32.mrf.mxu0 }
 0x27d   : > { %v3650_v48 = vpop.f32.mrf.mxu3  ;;  %v2711_v33 = vpop.f32.mrf.mxu1 }
 0x27e   : > { %4202 = vst [vmem:[%s6188_s19 + $0x80] sm:$0xff] %v4170_v5  ;;  %v3705_v36 = vadd.f32 %v3650_v48, %v3051_v54  ;;  %v2763_v51 = vadd.f32 %v2711_v33, %v5909_v53  ;;  %v6512_v48 = vld [vmem:[#allocation4_spill] sm:$0xff] }
 0x280   : > { %v4103_v21 = vadd.f32 %v4048_v49, %v3705_v36  ;;  %v2999_v24 = vpop.f32.mrf.mxu2 }
 0x281   : > { %v3052_v13 = vadd.f32 %v2999_v24, %v2762_v1 }
 0x282   : > { %v4139_v57 = vadd.f32 %v6164_v7, %v4103_v21 }
 0x284   : > { %v4171_v22 = vmax.f32 %v4139_v57, 0.0  ;;  %v4051_v14 = vpop.f32.mrf.mxu0 }
 0x285   : > { %v3653_v39 = vpop.f32.mrf.mxu3  ;;  %v2714_v23 = vpop.f32.mrf.mxu1 }
 0x286   : > { %4203 = vst [vmem:[%s6188_s19 + $0x88] sm:$0xff] %v4171_v22  ;;  %v3706_v15 = vadd.f32 %v3653_v39, %v3052_v13  ;;  %v2764_v42 = vadd.f32 %v2714_v23, %v5928_v2 }
 0x288   : > { %v4104_v12 = vadd.f32 %v4051_v14, %v3706_v15  ;;  %v3001_v18 = vpop.f32.mrf.mxu2 }
 0x289   : > { %v3053_v10 = vadd.f32 %v3001_v18, %v2763_v51 }
 0x28a   : > { %v4140_v11 = vadd.f32 %v6164_v7, %v4104_v12 }
 0x28c   : > { %v4172_v19 = vmax.f32 %v4140_v11, 0.0  ;;  %v4053_v41 = vpop.f32.mrf.mxu0 }
 0x28d   : > { %v3655_v25 = vpop.f32.mrf.mxu3  ;;  %v2716_v62 = vpop.f32.mrf.mxu1 }
 0x28e   : > { %4204 = vst [vmem:[%s6188_s19 + $0x90] sm:$0xff] %v4172_v19  ;;  %v3707_v56 = vadd.f32 %v3655_v25, %v3053_v10  ;;  %v2765_v52 = vadd.f32 %v2716_v62, %v5952_v40 }
 0x290   : > { %v4105_v4 = vadd.f32 %v4053_v41, %v3707_v56  ;;  %v3004_v34 = vpop.f32.mrf.mxu2 }
 0x291   : > { %v3054_v63 = vadd.f32 %v3004_v34, %v2764_v42 }
 0x292   : > { %v4141_v29 = vadd.f32 %v6164_v7, %v4105_v4 }
 0x294   : > { %v4173_v16 = vmax.f32 %v4141_v29, 0.0  ;;  %v4056_v53 = vpop.f32.mrf.mxu0 }
 0x295   : > { %v3658_v43 = vpop.f32.mrf.mxu3  ;;  %v2719_v26 = vpop.f32.mrf.mxu1 }
 0x296   : > { %4205 = vst [vmem:[%s6188_s19 + $0x98] sm:$0xff] %v4173_v16  ;;  %v3708_v30 = vadd.f32 %v3658_v43, %v3054_v63  ;;  %v2766_v38 = vadd.f32 %v2719_v26, %v5971_v8 }
 0x298   : > { %v4106_v44 = vadd.f32 %v4056_v53, %v3708_v30  ;;  %v3006_v20 = vpop.f32.mrf.mxu2 }
 0x299   : > { %v3055_v7 = vadd.f32 %v3006_v20, %v2765_v52 }
 0x29a   : > { %v4142_v2 = vadd.f32 %v6454_v0, %v4106_v44 }
 0x29c   : > { %v4174_v35 = vmax.f32 %v4142_v2, 0.0  ;;  %v4058_v47 = vpop.f32.mrf.mxu0 }
 0x29d   : > { %v3660_v55 = vpop.f32.mrf.mxu3  ;;  %v2721_v28 = vpop.f32.mrf.mxu1 }
 0x29e   : > { %4206 = vst [vmem:[%s6188_s19 + $0xa0] sm:$0xff] %v4174_v35  ;;  %v3709_v31 = vadd.f32 %v3660_v55, %v3055_v7  ;;  %v2767_v33 = vadd.f32 %v2721_v28, %v6512_v48 }
 0x2a0   : > { %v4107_v3 = vadd.f32 %v4058_v47, %v3709_v31  ;;  %v3009_v40 = vpop.f32.mrf.mxu2 }
 0x2a1   : > { %v3056_v59 = vadd.f32 %v3009_v40, %v2766_v38 }
 0x2a2   : > { %v4143_v60 = vadd.f32 %v6454_v0, %v4107_v3 }
 0x2a4   : > { %v4175_v61 = vmax.f32 %v4143_v60, 0.0  ;;  %v4061_v6 = vpop.f32.mrf.mxu0 }
 0x2a5   : > { %v3663_v27 = vpop.f32.mrf.mxu3  ;;  %v2724_v54 = vpop.f32.mrf.mxu1 }
 0x2a6   : > { %4207 = vst [vmem:[%s6188_s19 + $0xa8] sm:$0xff] %v4175_v61  ;;  %v3710_v5 = vadd.f32 %v3663_v27, %v3056_v59  ;;  %v2768_v39 = vadd.f32 %v2724_v54, %v6012_v17 }
 0x2a8   : > { %v4108_v49 = vadd.f32 %v4061_v6, %v3710_v5  ;;  %v3011_v36 = vpop.f32.mrf.mxu2 }
 0x2a9   : > { %v3057_v1 = vadd.f32 %v3011_v36, %v2767_v33 }
 0x2aa   : > { %v4144_v21 = vadd.f32 %v6454_v0, %v4108_v49 }
 0x2ac   : > { %v4176_v8 = vmax.f32 %v4144_v21, 0.0  ;;  %v4063_v24 = vpop.f32.mrf.mxu0 }
 0x2ad   : > { %v3665_v57 = vpop.f32.mrf.mxu3  ;;  %v2726_v13 = vpop.f32.mrf.mxu1 }
 0x2ae   : > { %4208 = vst [vmem:[%s6188_s19 + $0xb0] sm:$0xff] %v4176_v8  ;;  %v3711_v22 = vadd.f32 %v3665_v57, %v3057_v1  ;;  %v2769_v25 = vadd.f32 %v2726_v13, %v6033_v50 }
 0x2b0   : > { %v4109_v14 = vadd.f32 %v4063_v24, %v3711_v22  ;;  %v3014_v23 = vpop.f32.mrf.mxu2 }
 0x2b1   : > { %v3058_v12 = vadd.f32 %v3014_v23, %v2768_v39 }
 0x2b2   : > { %v4145_v15 = vadd.f32 %v6454_v0, %v4109_v14 }
 0x2b4   : > { %v4177_v51 = vmax.f32 %v4145_v15, 0.0  ;;  %v4066_v18 = vpop.f32.mrf.mxu0 }
 0x2b5   : > { %v3668_v11 = vpop.f32.mrf.mxu3  ;;  %v2729_v10 = vpop.f32.mrf.mxu1 }
 0x2b6   : > { %4209 = vst [vmem:[%s6188_s19 + $0xb8] sm:$0xff] %v4177_v51  ;;  %v3712_v19 = vadd.f32 %v3668_v11, %v3058_v12  ;;  %v2770_v53 = vadd.f32 %v2729_v10, %v6051_v9 }
 0x2b8   : > { %v4110_v41 = vadd.f32 %v4066_v18, %v3712_v19  ;;  %v3016_v62 = vpop.f32.mrf.mxu2 }
 0x2b9   : > { %v3059_v4 = vadd.f32 %v3016_v62, %v2769_v25 }
 0x2ba   : > { %v4146_v56 = vadd.f32 %v6454_v0, %v4110_v41 }
 0x2bc   : > { %v4178_v17 = vmax.f32 %v4146_v56, 0.0  ;;  %v4068_v42 = vpop.f32.mrf.mxu0 }
 0x2bd   : > { %v3670_v34 = vpop.f32.mrf.mxu3  ;;  %v2731_v29 = vpop.f32.mrf.mxu1 }
 0x2be   : > { %4210 = vst [vmem:[%s6188_s19 + $0xc0] sm:$0xff] %v4178_v17  ;;  %v3713_v63 = vadd.f32 %v3670_v34, %v3059_v4  ;;  %v2771_v35 = vadd.f32 %v2731_v29, %v6074_v45 }
 0x2c0   : > { %v4111_v16 = vadd.f32 %v4068_v42, %v3713_v63  ;;  %v3019_v43 = vpop.f32.mrf.mxu2 }
 0x2c1   : > { %v3060_v30 = vadd.f32 %v3019_v43, %v2770_v53 }
 0x2c2   : > { %v4147_v26 = vadd.f32 %v6454_v0, %v4111_v16 }
 0x2c4   : > { %v4179_v50 = vmax.f32 %v4147_v26, 0.0  ;;  %v4071_v44 = vpop.f32.mrf.mxu0 }
 0x2c5   : > { %v3673_v52 = vpop.f32.mrf.mxu3  ;;  %v2734_v2 = vpop.f32.mrf.mxu1 }
 0x2c6   : > { %4211 = vst [vmem:[%s6188_s19 + $0xc8] sm:$0xff] %v4179_v50  ;;  %v3714_v20 = vadd.f32 %v3673_v52, %v3060_v30  ;;  %v2772_v60 = vadd.f32 %v2734_v2, %v6094_v37 }
 0x2c8   : > { %v4112_v7 = vadd.f32 %v4071_v44, %v3714_v20  ;;  %v3021_v47 = vpop.f32.mrf.mxu2 }
 0x2c9   : > { %v3061_v28 = vadd.f32 %v3021_v47, %v2771_v35 }
 0x2ca   : > { %v4148_v55 = vadd.f32 %v6454_v0, %v4112_v7 }
 0x2cc   : > { %v4180_v9 = vmax.f32 %v4148_v55, 0.0  ;;  %v4073_v31 = vpop.f32.mrf.mxu0 }
 0x2cd   : > { %v3675_v3 = vpop.f32.mrf.mxu3  ;;  %v2736_v61 = vpop.f32.mrf.mxu1 }
 0x2ce   : > { %4212 = vst [vmem:[%s6188_s19 + $0xd0] sm:$0xff] %v4180_v9  ;;  %v3715_v38 = vadd.f32 %v3675_v3, %v3061_v28  ;;  %v2773_v33 = vadd.f32 %v2736_v61, %v6117_v58 }
 0x2d0   : > { %v4113_v40 = vadd.f32 %v4073_v31, %v3715_v38  ;;  %v3024_v59 = vpop.f32.mrf.mxu2 }
 0x2d1   : > { %v3062_v27 = vadd.f32 %v3024_v59, %v2772_v60 }
 0x2d2   : > { %v4149_v6 = vadd.f32 %v6454_v0, %v4113_v40 }
 0x2d4   : > { %v4181_v45 = vmax.f32 %v4149_v6, 0.0  ;;  %v4076_v54 = vpop.f32.mrf.mxu0 }
 0x2d5   : > { %v3678_v5 = vpop.f32.mrf.mxu3  ;;  %v2739_v37 = vpop.f32.mrf.mxu1 }
 0x2d6   : > { %4213 = vst [vmem:[%s6188_s19 + $0xd8] sm:$0xff] %v4181_v45  ;;  %v3716_v49 = vadd.f32 %v3678_v5, %v3062_v27  ;;  %v2774_v14 = vadd.f32 %v2739_v37, %v6135_v32 }
 0x2d8   : > { %v4114_v48 = vadd.f32 %v4076_v54, %v3716_v49  ;;  %v3026_v36 = vpop.f32.mrf.mxu2 }
 0x2d9   : > { %v3063_v1 = vadd.f32 %v3026_v36, %v2773_v33 }
 0x2da   : > { %v4150_v21 = vadd.f32 %v6454_v0, %v4114_v48 }
 0x2dc   : > { %v4182_v8 = vmax.f32 %v4150_v21, 0.0  ;;  %v4078_v24 = vpop.f32.mrf.mxu0 }
 0x2dd   : > { %v3680_v57 = vpop.f32.mrf.mxu3  ;;  %v2741_v12 = vpop.f32.mrf.mxu1 }
 0x2de   : > { %4214 = vst [vmem:[%s6188_s19 + $0xe0] sm:$0xff] %v4182_v8  ;;  %v3717_v13 = vadd.f32 %v3680_v57, %v3063_v1  ;;  %v2775_v19 = vadd.f32 %v2741_v12, %v6156_v46 }
 0x2e0   : > { %v4115_v22 = vadd.f32 %v4078_v24, %v3717_v13  ;;  %v3029_v39 = vpop.f32.mrf.mxu2 }
 0x2e1   : > { %v3064_v15 = vadd.f32 %v3029_v39, %v2774_v14 }
 0x2e2   : > { %v4151_v23 = vadd.f32 %v6454_v0, %v4115_v22 }
 0x2e4   : > { %v4183_v58 = vmax.f32 %v4151_v23, 0.0  ;;  %v4081_v51 = vpop.f32.mrf.mxu0 }
 0x2e5   : > { %v3683_v18 = vpop.f32.mrf.mxu3 }
 0x2e6   : > { %4215 = vst [vmem:[%s6188_s19 + $0xe8] sm:$0xff] %v4183_v58  ;;  %v3718_v11 = vadd.f32 %v3683_v18, %v3064_v15 }
 0x2e8   : > { %v4116_v10 = vadd.f32 %v4081_v51, %v3718_v11  ;;  %v3031_v41 = vpop.f32.mrf.mxu2 }
 0x2e9   : > { %v3065_v62 = vadd.f32 %v3031_v41, %v2775_v19 }
 0x2ea   : > { %v4152_v25 = vadd.f32 %v6454_v0, %v4116_v10 }
 0x2ec   : > { %v4184_v32 = vmax.f32 %v4152_v25, 0.0  ;;  %v4083_v17 = vpop.f32.mrf.mxu0 }
 0x2ed   : > { %v3685_v56 = vpop.f32.mrf.mxu3 }
 0x2ee   : > { %4216 = vst [vmem:[%s6188_s19 + $0xf0] sm:$0xff] %v4184_v32  ;;  %v3719_v4 = vadd.f32 %v3685_v56, %v3065_v62 }
 0x2f0   : > { %v4117_v42 = vadd.f32 %v4083_v17, %v3719_v4 }
 0x2f2   : > { %v4153_v34 = vadd.f32 %v6454_v0, %v4117_v42 }
 0x2f4   : > { %v4185_v29 = vmax.f32 %v4153_v34, 0.0 }
 0x2f6   : > { %4217 = vst [vmem:[%s6188_s19 + $0xf8] sm:$0xff] %v4185_v29 }
 0x2f7 PF: > { %s13_s14 = sadd.s32 1, %s5060_s14   ;;  %s6513_s12 = smov %s5056_s13 }
 0x2f8   : > { %p10_p5 = scmp.ge.s32.totalorder %s13_s14, 4   ;;  %s6514_s13 = smov %s6516_s15 }
 0x2fa   :  { %12 = sbr.rel (!%p10_p5) target bundleno = 2 (0x2), region = 73 }

</bundles_post_ra>
